<compile_context>
chip_gen: v6e
topology: v6e:2x2x1
jax: 0.10.0
libtpu: 0.0.40
codegen_flags: <defaults>
</compile_context>

<pallas_src>
import jax
import jax.numpy as jnp
from jax.experimental import pallas as pl
from jax.experimental.pallas import tpu as pltpu

BN_EPS = 1e-5


def domain_discriminator_kernel(
    x_ref,
    w0_ref, b0_ref,
    w1_ref, b1_ref,
    w2_ref, b2_ref,
    out_ref,            # (TB, 2*out_size): [:, :out] = logits, [:, out:] = softmax
):
    x = x_ref[...]

    # fc0 (BN already folded into w0/b0) + relu
    h = jnp.dot(x, w0_ref[...], preferred_element_type=jnp.float32) + b0_ref[...]
    h = jnp.maximum(h, 0.0)

    # fc1 + relu
    h = jnp.dot(h, w1_ref[...], preferred_element_type=jnp.float32) + b1_ref[...]
    h = jnp.maximum(h, 0.0)

    # fc2 (last layer: no BN, no activation)
    logits = jnp.dot(h, w2_ref[...], preferred_element_type=jnp.float32) + b2_ref[...]

    # softmax over the feature axis, numerically stabilised; reciprocal -> EUP
    m = jnp.max(logits, axis=1, keepdims=True)
    e = jnp.exp(logits - m)
    probs = e * pl.reciprocal(jnp.sum(e, axis=1, keepdims=True), approx=False)

    # single lane-contiguous store per step (logits | probs)
    out_ref[...] = jnp.concatenate([logits, probs], axis=1)


def domain_discriminator(x, params, tb=512):
    """Runs the MLP as a batch-tiled Pallas pipeline.

    Weights stay VMEM-resident across grid steps; x / output blocks stream.
    """
    B, F = x.shape
    out_size = params["w2"].shape[1]

    # --- fold eval-mode BatchNorm into fc0 (host side, numerically identical) ---
    scale = params["gamma0"] * jax.lax.rsqrt(params["var0"] + BN_EPS)   # (1, H0)
    w0 = params["w0"] * scale                                           # (F, H0)
    b0 = (params["b0"] - params["mean0"]) * scale + params["beta0"]     # (1, H0)

    # --- batch tiling: TB multiple of 8 (f32 sublane), pad B up to multiple ---
    TB = min(tb, max(8, ((B + 7) // 8) * 8))
    TB = ((TB + 7) // 8) * 8
    Bp = ((B + TB - 1) // TB) * TB
    if Bp != B:
        x = jnp.pad(x, ((0, Bp - B), (0, 0)))
    grid = (Bp // TB,)

    def _resident(shape):
        # whole-array block, constant index_map -> stays in VMEM across steps
        n = len(shape)
        return pl.BlockSpec(shape, lambda i, n=n: (0,) * n)

    args = (x, w0, b0, params["w1"], params["b1"], params["w2"], params["b2"])

    fn = pl.pallas_call(
        domain_discriminator_kernel,
        out_shape=jax.ShapeDtypeStruct((Bp, 2 * out_size), jnp.float32),
        grid=grid,
        in_specs=[
            pl.BlockSpec((TB, F), lambda i: (i, 0)),       # x streams over batch
            _resident(w0.shape), _resident(b0.shape),
            _resident(params["w1"].shape), _resident(params["b1"].shape),
            _resident(params["w2"].shape), _resident(params["b2"].shape),
        ],
        out_specs=pl.BlockSpec((TB, 2 * out_size), lambda i: (i, 0)),
        compiler_params=pltpu.CompilerParams(
            dimension_semantics=("parallel",),             # megacore on v7x
        ),
    )
    out = fn(*args)
    logits = out[:B, :out_size]
    probs = out[:B, out_size:]
    return logits, probs


def _init_params(key, in_size, hidden, out_size):
    """PyTorch-style init: Linear W,b ~ U(-1/sqrt(fan_in), +1/sqrt(fan_in));
    BatchNorm1d buffers at their defaults (eval mode)."""
    sizes = [in_size] + hidden + [out_size]
    keys = jax.random.split(key, 6)
    params = {}
    for li in range(3):
        fan_in, fan_out = sizes[li], sizes[li + 1]
        bound = 1.0 / jnp.sqrt(jnp.float32(fan_in))
        params[f"w{li}"] = jax.random.uniform(
            keys[2 * li], (fan_in, fan_out),
            minval=-bound, maxval=bound, dtype=jnp.float32)
        params[f"b{li}"] = jax.random.uniform(
            keys[2 * li + 1], (1, fan_out),
            minval=-bound, maxval=bound, dtype=jnp.float32)
    h0 = sizes[1]
    params["gamma0"] = jnp.ones((1, h0), jnp.float32)
    params["beta0"] = jnp.zeros((1, h0), jnp.float32)
    params["mean0"] = jnp.zeros((1, h0), jnp.float32)
    params["var0"] = jnp.ones((1, h0), jnp.float32)
    return params


def _reference(x, p):
    h = x @ p["w0"] + p["b0"]
    h = (h - p["mean0"]) / jnp.sqrt(p["var0"] + BN_EPS) * p["gamma0"] + p["beta0"]
    h = jnp.maximum(h, 0.0)
    h = jnp.maximum(h @ p["w1"] + p["b1"], 0.0)
    logits = h @ p["w2"] + p["b2"]
    return logits, jax.nn.softmax(logits, axis=1)


if __name__ == "__main__":
    B = 1000                    # padded to 1024 internally; 2 grid steps at TB=512
    DOMAIN_FEATURE_SIZE = 32
    HIDDEN = [64, 32]
    OUTPUT_SIZE = 4

    key = jax.random.PRNGKey(0)
    kx, kp = jax.random.split(key)
    x = jax.random.normal(kx, (B, DOMAIN_FEATURE_SIZE), dtype=jnp.float32)
    params = _init_params(kp, DOMAIN_FEATURE_SIZE, HIDDEN, OUTPUT_SIZE)

    logits, probs = domain_discriminator(x, params, tb=512)
    jax.block_until_ready((logits, probs))

    ref_logits, ref_probs = _reference(x, params)
    assert logits.shape == (B, OUTPUT_SIZE) and probs.shape == (B, OUTPUT_SIZE)
    assert jnp.allclose(logits, ref_logits, atol=1e-4, rtol=1e-4)
    assert jnp.allclose(probs, ref_probs, atol=1e-4, rtol=1e-4)
    assert jnp.allclose(jnp.sum(probs, axis=1), 1.0, atol=1e-5)

    print("KERNEL_OK")
</pallas_src>

<mosaic_0001>
module attributes {stable_mosaic.version = 11 : i64} {
  func.func @domain_discriminator_kernel(%arg0: i32, %arg1: memref<512x32xf32, #tpu.memory_space<vmem>>, %arg2: memref<32x64xf32, #tpu.memory_space<vmem>>, %arg3: memref<1x64xf32, #tpu.memory_space<vmem>>, %arg4: memref<64x32xf32, #tpu.memory_space<vmem>>, %arg5: memref<1x32xf32, #tpu.memory_space<vmem>>, %arg6: memref<32x4xf32, #tpu.memory_space<vmem>>, %arg7: memref<1x4xf32, #tpu.memory_space<vmem>>, %arg8: memref<512x8xf32, #tpu.memory_space<vmem>>) attributes {dimension_semantics = [#tpu.dimension_semantics<parallel>], iteration_bounds = array<i64: 2>, scalar_prefetch = 0 : i64, scratch_operands = 0 : i64, tpu.core_type = #tpu.core_type<tc>, window_params = [{transform_indices = @transform_0, window_bounds = array<i64: 512, 32>}, {pipeline_mode = #tpu.pipeline_mode<synchronous>, transform_indices = @transform_1, window_bounds = array<i64: 32, 64>}, {pipeline_mode = #tpu.pipeline_mode<synchronous>, transform_indices = @transform_2, window_bounds = array<i64: 1, 64>}, {pipeline_mode = #tpu.pipeline_mode<synchronous>, transform_indices = @transform_3, window_bounds = array<i64: 64, 32>}, {pipeline_mode = #tpu.pipeline_mode<synchronous>, transform_indices = @transform_4, window_bounds = array<i64: 1, 32>}, {pipeline_mode = #tpu.pipeline_mode<synchronous>, transform_indices = @transform_5, window_bounds = array<i64: 32, 4>}, {pipeline_mode = #tpu.pipeline_mode<synchronous>, transform_indices = @transform_6, window_bounds = array<i64: 1, 4>}, {transform_indices = @transform_7, window_bounds = array<i64: 512, 8>}]} {
    %c0 = arith.constant 0 : index
    %c0_0 = arith.constant 0 : index
    %0 = vector.load %arg1[%c0, %c0_0] : memref<512x32xf32, #tpu.memory_space<vmem>>, vector<512x32xf32>
    %c0_1 = arith.constant 0 : index
    %c0_2 = arith.constant 0 : index
    %1 = vector.load %arg2[%c0_1, %c0_2] : memref<32x64xf32, #tpu.memory_space<vmem>>, vector<32x64xf32>
    %cst = arith.constant dense<0.000000e+00> : vector<512x64xf32>
    %2 = tpu.matmul %0, %1, %cst {dimension_numbers = #tpu.dot_dimension_numbers<[1], [0], [0], [1], [0, 0, 1, 1], [], []>} : vector<512x32xf32>, vector<32x64xf32>, vector<512x64xf32> -> vector<512x64xf32>
    %c0_3 = arith.constant 0 : index
    %c0_4 = arith.constant 0 : index
    %3 = vector.load %arg3[%c0_3, %c0_4] : memref<1x64xf32, #tpu.memory_space<vmem>>, vector<1x64xf32>
    %4 = vector.broadcast %3 : vector<1x64xf32> to vector<512x64xf32>
    %5 = arith.addf %2, %4 : vector<512x64xf32>
    %cst_5 = arith.constant 0.000000e+00 : f32
    %6 = vector.broadcast %cst_5 : f32 to vector<512x64xf32>
    %7 = arith.maximumf %5, %6 : vector<512x64xf32>
    %c0_6 = arith.constant 0 : index
    %c0_7 = arith.constant 0 : index
    %8 = vector.load %arg4[%c0_6, %c0_7] : memref<64x32xf32, #tpu.memory_space<vmem>>, vector<64x32xf32>
    %cst_8 = arith.constant dense<0.000000e+00> : vector<512x32xf32>
    %9 = tpu.matmul %7, %8, %cst_8 {dimension_numbers = #tpu.dot_dimension_numbers<[1], [0], [0], [1], [0, 0, 1, 1], [], []>} : vector<512x64xf32>, vector<64x32xf32>, vector<512x32xf32> -> vector<512x32xf32>
    %c0_9 = arith.constant 0 : index
    %c0_10 = arith.constant 0 : index
    %10 = vector.load %arg5[%c0_9, %c0_10] : memref<1x32xf32, #tpu.memory_space<vmem>>, vector<1x32xf32>
    %11 = vector.broadcast %10 : vector<1x32xf32> to vector<512x32xf32>
    %12 = arith.addf %9, %11 : vector<512x32xf32>
    %cst_11 = arith.constant 0.000000e+00 : f32
    %13 = vector.broadcast %cst_11 : f32 to vector<512x32xf32>
    %14 = arith.maximumf %12, %13 : vector<512x32xf32>
    %c0_12 = arith.constant 0 : index
    %c0_13 = arith.constant 0 : index
    %15 = vector.load %arg6[%c0_12, %c0_13] : memref<32x4xf32, #tpu.memory_space<vmem>>, vector<32x4xf32>
    %cst_14 = arith.constant dense<0.000000e+00> : vector<512x4xf32>
    %16 = tpu.matmul %14, %15, %cst_14 {dimension_numbers = #tpu.dot_dimension_numbers<[1], [0], [0], [1], [0, 0, 1, 1], [], []>} : vector<512x32xf32>, vector<32x4xf32>, vector<512x4xf32> -> vector<512x4xf32>
    %c0_15 = arith.constant 0 : index
    %c0_16 = arith.constant 0 : index
    %17 = vector.load %arg7[%c0_15, %c0_16] : memref<1x4xf32, #tpu.memory_space<vmem>>, vector<1x4xf32>
    %18 = vector.broadcast %17 : vector<1x4xf32> to vector<512x4xf32>
    %19 = arith.addf %16, %18 : vector<512x4xf32>
    %cst_17 = arith.constant dense<0xFF800000> : vector<512xf32>
    %20 = vector.multi_reduction <maximumf>, %19, %cst_17 [1] : vector<512x4xf32> to vector<512xf32>
    %21 = vector.shape_cast %20 : vector<512xf32> to vector<512x1xf32>
    %22 = vector.broadcast %21 : vector<512x1xf32> to vector<512x4xf32>
    %23 = arith.subf %19, %22 : vector<512x4xf32>
    %24 = math.exp %23 : vector<512x4xf32>
    %cst_18 = arith.constant dense<0.000000e+00> : vector<512xf32>
    %25 = vector.multi_reduction <add>, %24, %cst_18 [1] : vector<512x4xf32> to vector<512xf32>
    %26 = vector.shape_cast %25 : vector<512xf32> to vector<512x1xf32>
    %27 = tpu.reciprocal %26 : vector<512x1xf32> -> vector<512x1xf32>
    %28 = vector.broadcast %27 : vector<512x1xf32> to vector<512x4xf32>
    %29 = arith.mulf %24, %28 : vector<512x4xf32>
    %30 = tpu.concatenate %19, %29 in 1 : vector<512x4xf32>, vector<512x4xf32> -> vector<512x8xf32>
    %c0_19 = arith.constant 0 : index
    %c0_20 = arith.constant 0 : index
    %31 = vector.load %arg8[%c0_19, %c0_20] : memref<512x8xf32, #tpu.memory_space<vmem>>, vector<512x8xf32>
    tpu.vector_store %arg8[%c0_19, %c0_20], %30 {strides = array<i32>} : memref<512x8xf32, #tpu.memory_space<vmem>>, vector<512x8xf32>,
    return
  }
  func.func @transform_0(%arg0: i32) -> (i32, i32) {
    %c0_i32 = arith.constant 0 : i32
    %c0_i32_0 = arith.constant 0 : i32
    return %arg0, %c0_i32 : i32, i32
  }
  func.func @transform_1(%arg0: i32) -> (i32, i32) {
    %c0_i32 = arith.constant 0 : i32
    %c0_i32_0 = arith.constant 0 : i32
    %c0_i32_1 = arith.constant 0 : i32
    return %c0_i32, %c0_i32_0 : i32, i32
  }
  func.func @transform_2(%arg0: i32) -> (i32, i32) {
    %c0_i32 = arith.constant 0 : i32
    %c0_i32_0 = arith.constant 0 : i32
    %c0_i32_1 = arith.constant 0 : i32
    return %c0_i32, %c0_i32_0 : i32, i32
  }
  func.func @transform_3(%arg0: i32) -> (i32, i32) {
    %c0_i32 = arith.constant 0 : i32
    %c0_i32_0 = arith.constant 0 : i32
    %c0_i32_1 = arith.constant 0 : i32
    return %c0_i32, %c0_i32_0 : i32, i32
  }
  func.func @transform_4(%arg0: i32) -> (i32, i32) {
    %c0_i32 = arith.constant 0 : i32
    %c0_i32_0 = arith.constant 0 : i32
    %c0_i32_1 = arith.constant 0 : i32
    return %c0_i32, %c0_i32_0 : i32, i32
  }
  func.func @transform_5(%arg0: i32) -> (i32, i32) {
    %c0_i32 = arith.constant 0 : i32
    %c0_i32_0 = arith.constant 0 : i32
    %c0_i32_1 = arith.constant 0 : i32
    return %c0_i32, %c0_i32_0 : i32, i32
  }
  func.func @transform_6(%arg0: i32) -> (i32, i32) {
    %c0_i32 = arith.constant 0 : i32
    %c0_i32_0 = arith.constant 0 : i32
    %c0_i32_1 = arith.constant 0 : i32
    return %c0_i32, %c0_i32_0 : i32, i32
  }
  func.func @transform_7(%arg0: i32) -> (i32, i32) {
    %c0_i32 = arith.constant 0 : i32
    %c0_i32_0 = arith.constant 0 : i32
    return %arg0, %c0_i32 : i32, i32
  }
}

</mosaic_0001>

<bundles_post_ra>
// kernel: tpu_custom_call.1
= control target key start
LH: loop header
LB: loop body
LE: loop exit
PB: predicated region body
PF: predicated region fallthrough
CT: control target
= control target key end

     0   :  { %s4446_s24 = smov 0   ;;  %s5996_s0 = inlined_call_operand.vmem [shape: f32[1024,32], index: 0, kind: input, shape index: {}]   ;;  %s5997_s1 = inlined_call_operand.vmem [shape: f32[32,64], index: 1, kind: input, shape index: {}]   ;;  %s5998_s2 = inlined_call_operand.vmem [shape: f32[1,64], index: 2, kind: input, shape index: {}]   ;;  %s5999_s3 = inlined_call_operand.vmem [shape: f32[64,32], index: 3, kind: input, shape index: {}]   ;;  %s6000_s4 = inlined_call_operand.vmem [shape: f32[1,32], index: 4, kind: input, shape index: {}]   ;;  %s6001_s5 = inlined_call_operand.vmem [shape: f32[32,4], index: 5, kind: input, shape index: {}]   ;;  %s6002_s6 = inlined_call_operand.vmem [shape: f32[1,4], index: 6, kind: input, shape index: {}]   ;;  %s6003_s7 = inlined_call_operand.vmem [shape: f32[1024,8], index: 7, kind: output, shape index: {}]  }
   0x1 LB: > { %s3390_s25 = sadd.s32 4294967295, %s4403_s24   ;;  %p3394_p0 = scmp.ge.s32.totalorder %s4403_s24, 1  ;;  %s4403_s24 = sphi %s4446_s24, %s17_s24  }
   0x2   : > { %p238_p1 = scmp.lt.s32.totalorder %s4403_s24, 3 }
   0x4   : > { %p239_p2 = pnand %p3394_p0, %p238_p1 }
   0x6   : > { %242 = sbr.rel (%p239_p2) target bundleno = 1173 (0x495), region = 48 }
   0xb   : > { %v349_v0 = vld [vmem:[%s5997_s1 + $0x18] sm:$0xff]  ;;  %v348_v1 = vld [vmem:[%s5997_s1 + $0x10] sm:$0xff]  ;;  %s3395_s30 = sshll.u32 %s3390_s25, 6  ;;  %v347_v2 = vld [vmem:[%s5997_s1 + $0x8] sm:$0xff]  ;;  %vm357_vm0 = vcmask 261120   ;;  %vm1014_vm1 = vcmask 523264  }
   0xc   : > { %3804 = vmatprep.subr.mxu0 %v349_v0  ;;  %p271_p3 = scmp.lt.s32.totalorder %s3395_s30, 127  ;;  %4124 = vmatprep.subr.mxu1 %v349_v0  ;;  %v346_v3 = vld [vmem:[%s5997_s1] sm:$0xff]  ;;  %v1006_v4 = vld [vmem:[%s5999_s3 + $0x38] sm:$0xff]  ;;  %v1005_v13 = vld [vmem:[%s5999_s3 + $0x30] sm:$0xff]  ;;  %vm2244_vm2 = vcmask 31744   ;;  %s4405_s27 = smov 4  }
   0xd   : > { %3805 = vmatpush3.msra.mxu0 %v349_v0  ;;  %4128 = vmatpush3.msra.mxu1 %v349_v0  ;;  %v1004_v19 = vld [vmem:[%s5999_s3 + $0x28] sm:$0xff]  ;;  %v1003_v22 = vld [vmem:[%s5999_s3 + $0x20] sm:$0xff]  ;;  %v1002_v25 = vld [vmem:[%s5999_s3 + $0x18] sm:$0xff]  ;;  %vm3269_vm3 = vcmask 64512  }
   0xe   : > { %3806 = vmatprep.subr.mxu0 %v348_v1  ;;  %s6258_s30 = smov (!%p271_p3, %s3395_s30), 127  ;;  %4125 = vmatprep.subr.mxu1 %v348_v1  ;;  %v1001_v28 = vld [vmem:[%s5999_s3 + $0x10] sm:$0xff]  ;;  %v1000_v31 = vld [vmem:[%s5999_s3 + $0x8] sm:$0xff]  ;;  %v999_v34 = vld [vmem:[%s5999_s3] sm:$0xff] }
   0xf   : > { %3807 = vmatpush3.msra.mxu0 %v348_v1  ;;  %4129 = vmatpush3.msra.mxu1 %v348_v1  ;;  %s3396_s12 = sshll.u32 %s6258_s30, 3 }
  0x10   : > { %3808 = vmatprep.subr.mxu0 %v347_v2  ;;  %4126 = vmatprep.subr.mxu1 %v347_v2  ;;  %s4474_s15 = scalar_lea.vmem %s5996_s0, %s3396_s12  ;;  %s5719_s8 = scalar_lea.vmem %s6003_s7, %s3396_s12 }
  0x11   : > { %3809 = vmatpush3.msra.mxu0 %v347_v2  ;;  %4130 = vmatpush3.msra.mxu1 %v347_v2  ;;  %v282_v5 = vld [vmem:[%s4474_s15] sm:$0xff]  ;;  %v283_v6 = vld [vmem:[%s4474_s15 + $0x8] sm:$0xff]  ;;  %v284_v7 = vld [vmem:[%s4474_s15 + $0x10] sm:$0xff] }
  0x12   : > { %3810 = vmatprep.subr.mxu0 %v346_v3  ;;  %4127 = vmatprep.subr.mxu1 %v346_v3  ;;  %v285_v8 = vld [vmem:[%s4474_s15 + $0x18] sm:$0xff]  ;;  %v286_v9 = vld [vmem:[%s4474_s15 + $0x20] sm:$0xff]  ;;  %v287_v10 = vld [vmem:[%s4474_s15 + $0x28] sm:$0xff] }
  0x13   : > { %3811 = vmatpush3.msra.mxu0 %v346_v3  ;;  %3812 = vmatprep.mubr.msk.f32.mxu0 %vm357_vm0, %v282_v5  ;;  %v288_v11 = vld [vmem:[%s4474_s15 + $0x30] sm:$0xff]  ;;  %v314_v12 = vld [vmem:[%s4474_s15 + $0x100] sm:$0xff]  ;;  %v289_v14 = vld [vmem:[%s4474_s15 + $0x38] sm:$0xff] }
  0x14   : > { %3813 = vmatmul.mubr.msk.f32.vlgmr.msra.gmra.mxu0 %vm357_vm0, %v283_v6  ;;  %4131 = vmatpush3.msra.mxu1 %v346_v3  ;;  %v315_v15 = vld [vmem:[%s4474_s15 + $0x108] sm:$0xff]  ;;  %v316_v16 = vld [vmem:[%s4474_s15 + $0x110] sm:$0xff]  ;;  %v290_v17 = vld [vmem:[%s4474_s15 + $0x40] sm:$0xff] }
  0x15   : > { %3815 = vmatprep.mubr.msk.f32.mxu0 %vm357_vm0, %v284_v7  ;;  %3908 = vmatprep.subr.mxu1 %v1006_v4  ;;  %v317_v18 = vld [vmem:[%s4474_s15 + $0x118] sm:$0xff]  ;;  %v318_v20 = vld [vmem:[%s4474_s15 + $0x120] sm:$0xff]  ;;  %v291_v21 = vld [vmem:[%s4474_s15 + $0x48] sm:$0xff] }
  0x16   : > { %3860 = vmatprep.mubr.msk.f32.mxu1 %vm357_vm0, %v314_v12  ;;  %v292_v23 = vld [vmem:[%s4474_s15 + $0x50] sm:$0xff]  ;;  %v319_v24 = vld [vmem:[%s4474_s15 + $0x128] sm:$0xff]  ;;  %v293_v27 = vld [vmem:[%s4474_s15 + $0x58] sm:$0xff] }
  0x17   : > { %3861 = vmatmul.mubr.msk.f32.vlgmr.msra.gmra.mxu1 %vm357_vm0, %v315_v15  ;;  %v320_v26 = vld [vmem:[%s4474_s15 + $0x130] sm:$0xff]  ;;  %v294_v29 = vld [vmem:[%s4474_s15 + $0x60] sm:$0xff]  ;;  %v321_v30 = vld [vmem:[%s4474_s15 + $0x138] sm:$0xff] }
  0x18   : > { %3816 = vmatmul.mubr.msk.f32.gmra.mxu0 %vm357_vm0, %v285_v8  ;;  %3863 = vmatprep.mubr.msk.f32.mxu1 %vm357_vm0, %v316_v16  ;;  %v322_v32 = vld [vmem:[%s4474_s15 + $0x140] sm:$0xff]  ;;  %v295_v33 = vld [vmem:[%s4474_s15 + $0x68] sm:$0xff]  ;;  %v296_v35 = vld [vmem:[%s4474_s15 + $0x70] sm:$0xff] }
  0x19   : > { %3818 = vmatprep.mubr.msk.f32.mxu0 %vm357_vm0, %v286_v9  ;;  %3909 = vmatpush3.msra.mxu1 %v1006_v4  ;;  %v323_v36 = vld [vmem:[%s4474_s15 + $0x148] sm:$0xff]  ;;  %v324_v37 = vld [vmem:[%s4474_s15 + $0x150] sm:$0xff]  ;;  %v297_v38 = vld [vmem:[%s4474_s15 + $0x78] sm:$0xff] }
  0x1a   : > { %3910 = vmatprep.subr.mxu1 %v1005_v13  ;;  %v298_v39 = vld [vmem:[%s4474_s15 + $0x80] sm:$0xff]  ;;  %v325_v40 = vld [vmem:[%s4474_s15 + $0x158] sm:$0xff]  ;;  %v299_v42 = vld [vmem:[%s4474_s15 + $0x88] sm:$0xff] }
  0x1b   : > { %3911 = vmatpush3.msra.mxu1 %v1005_v13  ;;  %v326_v41 = vld [vmem:[%s4474_s15 + $0x160] sm:$0xff]  ;;  %v300_v43 = vld [vmem:[%s4474_s15 + $0x90] sm:$0xff]  ;;  %v327_v44 = vld [vmem:[%s4474_s15 + $0x168] sm:$0xff] }
  0x1c   : > { %3819 = vmatmul.mubr.msk.f32.gmra.mxu0 %vm357_vm0, %v287_v10  ;;  %3864 = vmatmul.mubr.msk.f32.gmra.mxu1 %vm357_vm0, %v317_v18  ;;  %v328_v45 = vld [vmem:[%s4474_s15 + $0x170] sm:$0xff]  ;;  %v301_v46 = vld [vmem:[%s4474_s15 + $0x98] sm:$0xff]  ;;  %v302_v47 = vld [vmem:[%s4474_s15 + $0xa0] sm:$0xff] }
  0x1d   : > { %3821 = vmatprep.mubr.msk.f32.mxu0 %vm357_vm0, %v288_v11  ;;  %3912 = vmatprep.subr.mxu1 %v1004_v19  ;;  %v329_v48 = vld [vmem:[%s4474_s15 + $0x178] sm:$0xff]  ;;  %v330_v49 = vld [vmem:[%s4474_s15 + $0x180] sm:$0xff]  ;;  %v303_v50 = vld [vmem:[%s4474_s15 + $0xa8] sm:$0xff] }
  0x1e   : > { %3866 = vmatprep.mubr.msk.f32.mxu1 %vm357_vm0, %v318_v20  ;;  %3913 = vmatpush3.msra.mxu1 %v1004_v19  ;;  %v304_v51 = vld [vmem:[%s4474_s15 + $0xb0] sm:$0xff]  ;;  %v331_v52 = vld [vmem:[%s4474_s15 + $0x188] sm:$0xff]  ;;  %v305_v54 = vld [vmem:[%s4474_s15 + $0xb8] sm:$0xff] }
  0x1f   : > { %3914 = vmatprep.subr.mxu1 %v1003_v22  ;;  %v332_v53 = vld [vmem:[%s4474_s15 + $0x190] sm:$0xff]  ;;  %v306_v55 = vld [vmem:[%s4474_s15 + $0xc0] sm:$0xff]  ;;  %v333_v56 = vld [vmem:[%s4474_s15 + $0x198] sm:$0xff] }
  0x20   : > { %3822 = vmatmul.mubr.msk.f32.gmra.mxu0 %vm357_vm0, %v289_v14  ;;  %3915 = vmatpush3.msra.mxu1 %v1003_v22  ;;  %v334_v57 = vld [vmem:[%s4474_s15 + $0x1a0] sm:$0xff]  ;;  %v307_v58 = vld [vmem:[%s4474_s15 + $0xc8] sm:$0xff]  ;;  %v308_v59 = vld [vmem:[%s4474_s15 + $0xd0] sm:$0xff] }
  0x21   : > { %3824 = vmatprep.mubr.msk.f32.mxu0 %vm357_vm0, %v290_v17  ;;  %3867 = vmatmul.mubr.msk.f32.gmra.mxu1 %vm357_vm0, %v319_v24  ;;  %v335_v60 = vld [vmem:[%s4474_s15 + $0x1a8] sm:$0xff]  ;;  %v336_v61 = vld [vmem:[%s4474_s15 + $0x1b0] sm:$0xff]  ;;  %v309_v62 = vld [vmem:[%s4474_s15 + $0xd8] sm:$0xff] }
  0x22   : > { %3916 = vmatprep.subr.mxu1 %v1002_v25  ;;  %3869 = vmatprep.mubr.msk.f32.mxu1 %vm357_vm0, %v320_v26  ;;  %v310_v63 = vld [vmem:[%s4474_s15 + $0xe0] sm:$0xff]  ;;  %v337_v0 = vld [vmem:[%s4474_s15 + $0x1b8] sm:$0xff]  ;;  %v311_v2 = vld [vmem:[%s4474_s15 + $0xe8] sm:$0xff] }
  0x23   : > { %3917 = vmatpush3.msra.mxu1 %v1002_v25  ;;  %v338_v1 = vld [vmem:[%s4474_s15 + $0x1c0] sm:$0xff]  ;;  %v312_v3 = vld [vmem:[%s4474_s15 + $0xf0] sm:$0xff]  ;;  %v339_v4 = vld [vmem:[%s4474_s15 + $0x1c8] sm:$0xff] }
  0x24   : > { %3825 = vmatmul.mubr.msk.f32.gmra.mxu0 %vm357_vm0, %v291_v21  ;;  %3918 = vmatprep.subr.mxu1 %v1001_v28  ;;  %v340_v5 = vld [vmem:[%s4474_s15 + $0x1d0] sm:$0xff]  ;;  %v313_v6 = vld [vmem:[%s4474_s15 + $0xf8] sm:$0xff]  ;;  %v342_v8 = vld [vmem:[%s4474_s15 + $0x1e0] sm:$0xff] }
  0x25   : > { %3827 = vmatprep.mubr.msk.f32.mxu0 %vm357_vm0, %v292_v23  ;;  %3919 = vmatpush3.msra.mxu1 %v1001_v28  ;;  %v341_v7 = vld [vmem:[%s4474_s15 + $0x1d8] sm:$0xff]  ;;  %v343_v9 = vld [vmem:[%s4474_s15 + $0x1e8] sm:$0xff]  ;;  %v344_v10 = vld [vmem:[%s4474_s15 + $0x1f0] sm:$0xff] }
  0x26   : > { %3870 = vmatmul.mubr.msk.f32.gmra.mxu1 %vm357_vm0, %v321_v30  ;;  %3920 = vmatprep.subr.mxu1 %v1000_v31  ;;  %v345_v11 = vld [vmem:[%s4474_s15 + $0x1f8] sm:$0xff]  ;;  %v4631_v12 = vld [vmem:[%s5998_s2] ss:$0 sm:$0xff]  ;;  %v1658_v19 = vld [vmem:[%s6001_s5 + $0x10] sm:$0xff] }
  0x27   : > { %3872 = vmatprep.mubr.msk.f32.mxu1 %vm357_vm0, %v322_v32  ;;  %3921 = vmatpush3.msra.mxu1 %v1000_v31  ;;  %v1659_v18 = vld [vmem:[%s6001_s5 + $0x18] sm:$0xff]  ;;  %v1657_v24 = vld [vmem:[%s6001_s5 + $0x8] sm:$0xff] }
  0x28   : > { %3828 = vmatmul.mubr.msk.f32.gmra.mxu0 %vm357_vm0, %v293_v27  ;;  %3922 = vmatprep.subr.mxu1 %v999_v34  ;;  %v1656_v27 = vld [vmem:[%s6001_s5] sm:$0xff] }
  0x29   : > { %3830 = vmatprep.mubr.msk.f32.mxu0 %vm357_vm0, %v294_v29  ;;  %3923 = vmatpush3.msra.mxu1 %v999_v34 }
  0x2a   : > { %3873 = vmatmul.mubr.msk.f32.gmra.mxu1 %vm357_vm0, %v323_v36  ;;  %4020 = vmatprep.subr.mxu0 %v1659_v18 }
  0x2b   : > { %3875 = vmatprep.mubr.msk.f32.mxu1 %vm357_vm0, %v324_v37  ;;  %4021 = vmatpush3.msra.mxu0 %v1659_v18 }
  0x2c   : > { %3831 = vmatmul.mubr.msk.f32.gmra.mxu0 %vm357_vm0, %v295_v33  ;;  %4022 = vmatprep.subr.mxu0 %v1658_v19 }
  0x2d   : > { %3833 = vmatprep.mubr.msk.f32.mxu0 %vm357_vm0, %v296_v35  ;;  %4023 = vmatpush3.msra.mxu0 %v1658_v19 }
  0x2e   : > { %3876 = vmatmul.mubr.msk.f32.gmra.mxu1 %vm357_vm0, %v325_v40  ;;  %4024 = vmatprep.subr.mxu0 %v1657_v24 }
  0x2f   : > { %3878 = vmatprep.mubr.msk.f32.mxu1 %vm357_vm0, %v326_v41  ;;  %4025 = vmatpush3.msra.mxu0 %v1657_v24 }
  0x30   : > { %3834 = vmatmul.mubr.msk.f32.gmra.mxu0 %vm357_vm0, %v297_v38  ;;  %4026 = vmatprep.subr.mxu0 %v1656_v27 }
  0x31   : > { %3836 = vmatprep.mubr.msk.f32.mxu0 %vm357_vm0, %v298_v39  ;;  %4027 = vmatpush3.msra.mxu0 %v1656_v27 }
  0x32   : > { %3879 = vmatmul.mubr.msk.f32.gmra.mxu1 %vm357_vm0, %v327_v44 }
  0x33   : > { %3881 = vmatprep.mubr.msk.f32.mxu1 %vm357_vm0, %v328_v45 }
  0x34   : > { %3837 = vmatmul.mubr.msk.f32.gmra.mxu0 %vm357_vm0, %v299_v42 }
  0x35   : > { %3839 = vmatprep.mubr.msk.f32.mxu0 %vm357_vm0, %v300_v43 }
  0x36   : > { %3882 = vmatmul.mubr.msk.f32.gmra.mxu1 %vm357_vm0, %v329_v48 }
  0x37   : > { %3884 = vmatprep.mubr.msk.f32.mxu1 %vm357_vm0, %v330_v49 }
  0x38   : > { %3840 = vmatmul.mubr.msk.f32.gmra.mxu0 %vm357_vm0, %v301_v46 }
  0x39   : > { %3842 = vmatprep.mubr.msk.f32.mxu0 %vm357_vm0, %v302_v47 }
  0x3a   : > { %3885 = vmatmul.mubr.msk.f32.gmra.mxu1 %vm357_vm0, %v331_v52 }
  0x3b   : > { %3887 = vmatprep.mubr.msk.f32.mxu1 %vm357_vm0, %v332_v53 }
  0x3c   : > { %3843 = vmatmul.mubr.msk.f32.gmra.mxu0 %vm357_vm0, %v303_v50 }
  0x3d   : > { %3845 = vmatprep.mubr.msk.f32.mxu0 %vm357_vm0, %v304_v51 }
  0x3e   : > { %3888 = vmatmul.mubr.msk.f32.gmra.mxu1 %vm357_vm0, %v333_v56 }
  0x3f   : > { %3890 = vmatprep.mubr.msk.f32.mxu1 %vm357_vm0, %v334_v57 }
  0x40   : > { %3846 = vmatmul.mubr.msk.f32.gmra.mxu0 %vm357_vm0, %v305_v54 }
  0x41   : > { %3848 = vmatprep.mubr.msk.f32.mxu0 %vm357_vm0, %v306_v55 }
  0x42   : > { %3891 = vmatmul.mubr.msk.f32.gmra.mxu1 %vm357_vm0, %v335_v60 }
  0x43   : > { %3893 = vmatprep.mubr.msk.f32.mxu1 %vm357_vm0, %v336_v61 }
  0x44   : > { %3849 = vmatmul.mubr.msk.f32.gmra.mxu0 %vm357_vm0, %v307_v58 }
  0x45   : > { %3851 = vmatprep.mubr.msk.f32.mxu0 %vm357_vm0, %v308_v59 }
  0x46   : > { %3894 = vmatmul.mubr.msk.f32.gmra.mxu1 %vm357_vm0, %v337_v0 }
  0x47   : > { %3896 = vmatprep.mubr.msk.f32.mxu1 %vm357_vm0, %v338_v1 }
  0x48   : > { %3852 = vmatmul.mubr.msk.f32.gmra.mxu0 %vm357_vm0, %v309_v62 }
  0x49   : > { %3854 = vmatprep.mubr.msk.f32.mxu0 %vm357_vm0, %v310_v63 }
  0x4a   : > { %3897 = vmatmul.mubr.msk.f32.gmra.mxu1 %vm357_vm0, %v339_v4 }
  0x4b   : > { %3899 = vmatprep.mubr.msk.f32.mxu1 %vm357_vm0, %v340_v5 }
  0x4c   : > { %3855 = vmatmul.mubr.msk.f32.gmra.mxu0 %vm357_vm0, %v311_v2 }
  0x4d   : > { %3857 = vmatprep.mubr.msk.f32.mxu0 %vm357_vm0, %v312_v3 }
  0x4e   : > { %3900 = vmatmul.mubr.msk.f32.gmra.mxu1 %vm357_vm0, %v341_v7 }
  0x4f   : > { %3902 = vmatprep.mubr.msk.f32.mxu1 %vm357_vm0, %v342_v8 }
  0x50   : > { %3858 = vmatmul.mubr.msk.f32.gmra.mxu0 %vm357_vm0, %v313_v6 }
  0x52   : > { %3903 = vmatmul.mubr.msk.f32.gmra.mxu1 %vm357_vm0, %v343_v9 }
  0x53   : > { %3905 = vmatprep.mubr.msk.f32.mxu1 %vm357_vm0, %v344_v10 }
  0x56   : > { %3906 = vmatmul.mubr.msk.f32.gmra.mxu1 %vm357_vm0, %v345_v11 }
  0xd4   : > { %v3814_v13 = vpop.f32.mrf.mxu0 }
  0xd5   : > { %v622_v14 = vadd.f32 %v3814_v13, %v4631_v12 }
  0xd6   : > { %v616_v15 = vpop.f32.mrf.mxu0 }
  0xd7   : > { %v617_v16 = vadd.f32 %v4631_v12, %v616_v15  ;;  %v936_v21 = vmax.f32 %v622_v14, 0.0  ;;  %v4652_v32 = vpop.f32.mrf.mxu1 }
  0xd8   : > { %v3817_v17 = vpop.f32.mrf.mxu0 }
  0xd9   : > { %v935_v20 = vmax.f32 %v617_v16, 0.0  ;;  %v632_v22 = vadd.f32 %v3817_v17, %v4631_v12  ;;  %v4657_v36 = vpop.f32.mrf.mxu1 }
  0xda   : > { %v626_v23 = vpop.f32.mrf.mxu0 }
  0xdb   : > { %v627_v25 = vadd.f32 %v4631_v12, %v626_v23  ;;  %3924 = vmatprep.mubr.msk.f32.mxu1 %vm1014_vm1, %v935_v20  ;;  %v938_v30 = vmax.f32 %v632_v22, 0.0 }
  0xdc   : > { %v3820_v26 = vpop.f32.mrf.mxu0  ;;  %3925 = vmatmul.mubr.msk.f32.vlgmr.msra.gmra.mxu1 %vm1014_vm1, %v936_v21  ;;  %v4660_v40 = vpop.f32.mrf.mxu1 }
  0xdd   : > { %v937_v28 = vmax.f32 %v627_v25, 0.0  ;;  %v642_v29 = vadd.f32 %v3820_v26, %v4631_v12 }
  0xde   : > { %v636_v31 = vpop.f32.mrf.mxu0  ;;  %v4665_v44 = vpop.f32.mrf.mxu1 }
  0xdf   : > { %v637_v33 = vadd.f32 %v4631_v12, %v636_v31  ;;  %3927 = vmatprep.mubr.msk.f32.mxu1 %vm1014_vm1, %v937_v28  ;;  %v940_v34 = vmax.f32 %v642_v29, 0.0 }
  0xe0   : > { %v3823_v35 = vpop.f32.mrf.mxu0  ;;  %3928 = vmatmul.mubr.msk.f32.gmra.mxu1 %vm1014_vm1, %v938_v30 }
  0xe1   : > { %v939_v37 = vmax.f32 %v637_v33, 0.0  ;;  %v652_v38 = vadd.f32 %v3823_v35, %v4631_v12  ;;  %v4668_v48 = vpop.f32.mrf.mxu1 }
  0xe2   : > { %v646_v39 = vpop.f32.mrf.mxu0 }
  0xe3   : > { %v647_v41 = vadd.f32 %v4631_v12, %v646_v39  ;;  %3930 = vmatprep.mubr.msk.f32.mxu1 %vm1014_vm1, %v939_v37  ;;  %v942_v42 = vmax.f32 %v652_v38, 0.0  ;;  %v4673_v52 = vpop.f32.mrf.mxu1 }
  0xe4   : > { %v3826_v43 = vpop.f32.mrf.mxu0  ;;  %3931 = vmatmul.mubr.msk.f32.gmra.mxu1 %vm1014_vm1, %v940_v34 }
  0xe5   : > { %v941_v45 = vmax.f32 %v647_v41, 0.0  ;;  %v662_v46 = vadd.f32 %v3826_v43, %v4631_v12 }
  0xe6   : > { %v656_v47 = vpop.f32.mrf.mxu0  ;;  %v4676_v56 = vpop.f32.mrf.mxu1 }
  0xe7   : > { %v657_v49 = vadd.f32 %v4631_v12, %v656_v47  ;;  %3933 = vmatprep.mubr.msk.f32.mxu1 %vm1014_vm1, %v941_v45  ;;  %v944_v50 = vmax.f32 %v662_v46, 0.0 }
  0xe8   : > { %v3829_v51 = vpop.f32.mrf.mxu0  ;;  %3934 = vmatmul.mubr.msk.f32.gmra.mxu1 %vm1014_vm1, %v942_v42  ;;  %v4681_v60 = vpop.f32.mrf.mxu1 }
  0xe9   : > { %v943_v53 = vmax.f32 %v657_v49, 0.0  ;;  %v672_v54 = vadd.f32 %v3829_v51, %v4631_v12 }
  0xea   : > { %v666_v55 = vpop.f32.mrf.mxu0  ;;  %v4684_v0 = vpop.f32.mrf.mxu1 }
  0xeb   : > { %v667_v57 = vadd.f32 %v4631_v12, %v666_v55  ;;  %3936 = vmatprep.mubr.msk.f32.mxu1 %vm1014_vm1, %v943_v53  ;;  %v946_v58 = vmax.f32 %v672_v54, 0.0 }
  0xec   : > { %v3832_v59 = vpop.f32.mrf.mxu0  ;;  %3937 = vmatmul.mubr.msk.f32.gmra.mxu1 %vm1014_vm1, %v944_v50  ;;  %v4690_v7 = vpop.f32.mrf.mxu1 }
  0xed   : > { %v945_v61 = vmax.f32 %v667_v57, 0.0  ;;  %v682_v62 = vadd.f32 %v3832_v59, %v4631_v12 }
  0xee   : > { %v676_v63 = vpop.f32.mrf.mxu0  ;;  %v4696_v15 = vpop.f32.mrf.mxu1 }
  0xef   : > { %v677_v1 = vadd.f32 %v4631_v12, %v676_v63  ;;  %3939 = vmatprep.mubr.msk.f32.mxu1 %vm1014_vm1, %v945_v61  ;;  %v948_v2 = vmax.f32 %v682_v62, 0.0 }
  0xf0   : > { %v3835_v3 = vpop.f32.mrf.mxu0  ;;  %3940 = vmatmul.mubr.msk.f32.gmra.mxu1 %vm1014_vm1, %v946_v58  ;;  %v4702_v22 = vpop.f32.mrf.mxu1 }
  0xf1   : > { %v947_v4 = vmax.f32 %v677_v1, 0.0  ;;  %v692_v5 = vadd.f32 %v3835_v3, %v4631_v12 }
  0xf2   : > { %v686_v6 = vpop.f32.mrf.mxu0  ;;  %v4708_v29 = vpop.f32.mrf.mxu1 }
  0xf3   : > { %v687_v8 = vadd.f32 %v4631_v12, %v686_v6  ;;  %3942 = vmatprep.mubr.msk.f32.mxu1 %vm1014_vm1, %v947_v4  ;;  %v950_v9 = vmax.f32 %v692_v5, 0.0 }
  0xf4   : > { %v3838_v10 = vpop.f32.mrf.mxu0  ;;  %3943 = vmatmul.mubr.msk.f32.gmra.mxu1 %vm1014_vm1, %v948_v2  ;;  %v4714_v38 = vpop.f32.mrf.mxu1 }
  0xf5   : > { %v949_v11 = vmax.f32 %v687_v8, 0.0  ;;  %v702_v13 = vadd.f32 %v3838_v10, %v4631_v12 }
  0xf6   : > { %v696_v14 = vpop.f32.mrf.mxu0  ;;  %v4720_v47 = vpop.f32.mrf.mxu1 }
  0xf7   : > { %v697_v16 = vadd.f32 %v4631_v12, %v696_v14  ;;  %3945 = vmatprep.mubr.msk.f32.mxu1 %vm1014_vm1, %v949_v11  ;;  %v952_v17 = vmax.f32 %v702_v13, 0.0 }
  0xf8   : > { %v3841_v18 = vpop.f32.mrf.mxu0  ;;  %3946 = vmatmul.mubr.msk.f32.gmra.mxu1 %vm1014_vm1, %v950_v9  ;;  %v4726_v57 = vpop.f32.mrf.mxu1  ;;  %v777_v9 = vadd.f32 %v4631_v12, %v4657_v36 }
  0xf9   : > { %v951_v19 = vmax.f32 %v697_v16, 0.0  ;;  %v712_v20 = vadd.f32 %v3841_v18, %v4631_v12  ;;  %v782_v16 = vadd.f32 %v4652_v32, %v4631_v12  ;;  %v797_v32 = vadd.f32 %v4631_v12, %v4673_v52 }
  0xfa   : > { %v706_v21 = vpop.f32.mrf.mxu0  ;;  %v4732_v2 = vpop.f32.mrf.mxu1  ;;  %v967_v18 = vmax.f32 %v777_v9, 0.0 }
  0xfb   : > { %v707_v23 = vadd.f32 %v4631_v12, %v706_v21  ;;  %3948 = vmatprep.mubr.msk.f32.mxu1 %vm1014_vm1, %v951_v19  ;;  %v954_v24 = vmax.f32 %v712_v20, 0.0  ;;  %v787_v19 = vadd.f32 %v4631_v12, %v4665_v44  ;;  %v968_v36 = vmax.f32 %v782_v16, 0.0 }
  0xfc   : > { %v3844_v25 = vpop.f32.mrf.mxu0  ;;  %3949 = vmatmul.mubr.msk.f32.gmra.mxu1 %vm1014_vm1, %v952_v17  ;;  %v856_v11 = vpop.f32.mrf.mxu1  ;;  %v792_v21 = vadd.f32 %v4660_v40, %v4631_v12  ;;  %v802_v44 = vadd.f32 %v4668_v48, %v4631_v12  ;;  %v807_v40 = vadd.f32 %v4631_v12, %v4681_v60  ;;  %v817_v48 = vadd.f32 %v4631_v12, %v4690_v7 }
  0xfd   : > { %v953_v26 = vmax.f32 %v707_v23, 0.0  ;;  %v722_v27 = vadd.f32 %v3844_v25, %v4631_v12  ;;  %v969_v23 = vmax.f32 %v787_v19, 0.0 }
  0xfe   : > { %v716_v28 = vpop.f32.mrf.mxu0  ;;  %v3889_v20 = vpop.f32.mrf.mxu1  ;;  %v970_v25 = vmax.f32 %v792_v21, 0.0  ;;  %v973_v52 = vmax.f32 %v807_v40, 0.0  ;;  %v975_v60 = vmax.f32 %v817_v48, 0.0 }
  0xff   : > { %v717_v30 = vadd.f32 %v4631_v12, %v716_v28  ;;  %3951 = vmatprep.mubr.msk.f32.mxu1 %vm1014_vm1, %v953_v26  ;;  %v956_v31 = vmax.f32 %v722_v27, 0.0  ;;  %v971_v26 = vmax.f32 %v797_v32, 0.0  ;;  %v972_v28 = vmax.f32 %v802_v44, 0.0 }
 0x100   : > { %v3847_v33 = vpop.f32.mrf.mxu0  ;;  %3952 = vmatmul.mubr.msk.f32.gmra.mxu1 %vm1014_vm1, %v954_v24  ;;  %v866_v24 = vpop.f32.mrf.mxu1 }
 0x101   : > { %v955_v34 = vmax.f32 %v717_v30, 0.0  ;;  %v732_v35 = vadd.f32 %v3847_v33, %v4631_v12  ;;  %v812_v30 = vadd.f32 %v4676_v56, %v4631_v12  ;;  %v827_v56 = vadd.f32 %v4631_v12, %v4702_v22 }
 0x102   : > { %v726_v37 = vpop.f32.mrf.mxu0  ;;  %v3892_v27 = vpop.f32.mrf.mxu1 }
 0x103   : > { %v727_v39 = vadd.f32 %v4631_v12, %v726_v37  ;;  %3954 = vmatprep.mubr.msk.f32.mxu1 %vm1014_vm1, %v955_v34  ;;  %v958_v41 = vmax.f32 %v732_v35, 0.0  ;;  %v974_v33 = vmax.f32 %v812_v30, 0.0  ;;  %v822_v34 = vadd.f32 %v4684_v0, %v4631_v12 }
 0x104   : > { %v3850_v42 = vpop.f32.mrf.mxu0  ;;  %3955 = vmatmul.mubr.msk.f32.gmra.mxu1 %vm1014_vm1, %v956_v31  ;;  %v876_v31 = vpop.f32.mrf.mxu1  ;;  %v977_v7 = vmax.f32 %v827_v56, 0.0  ;;  %v837_v0 = vadd.f32 %v4631_v12, %v4714_v38 }
 0x105   : > { %v957_v43 = vmax.f32 %v727_v39, 0.0  ;;  %v742_v45 = vadd.f32 %v3850_v42, %v4631_v12  ;;  %v976_v37 = vmax.f32 %v822_v34, 0.0  ;;  %v832_v39 = vadd.f32 %v4696_v15, %v4631_v12 }
 0x106   : > { %v736_v46 = vpop.f32.mrf.mxu0  ;;  %v3895_v35 = vpop.f32.mrf.mxu1  ;;  %v979_v22 = vmax.f32 %v837_v0, 0.0  ;;  %v847_v15 = vadd.f32 %v4631_v12, %v4726_v57 }
 0x107   : > { %v737_v49 = vadd.f32 %v4631_v12, %v736_v46  ;;  %3957 = vmatprep.mubr.msk.f32.mxu1 %vm1014_vm1, %v957_v43  ;;  %v960_v50 = vmax.f32 %v742_v45, 0.0  ;;  %v978_v42 = vmax.f32 %v832_v39, 0.0  ;;  %v842_v43 = vadd.f32 %v4708_v29, %v4631_v12 }
 0x108   : > { %v3853_v51 = vpop.f32.mrf.mxu0  ;;  %3958 = vmatmul.mubr.msk.f32.gmra.mxu1 %vm1014_vm1, %v958_v41  ;;  %v886_v41 = vpop.f32.mrf.mxu1  ;;  %v981_v38 = vmax.f32 %v847_v15, 0.0  ;;  %v857_v29 = vadd.f32 %v4631_v12, %v856_v11 }
 0x109   : > { %v959_v53 = vmax.f32 %v737_v49, 0.0  ;;  %v752_v54 = vadd.f32 %v3853_v51, %v4631_v12  ;;  %v980_v46 = vmax.f32 %v842_v43, 0.0  ;;  %v852_v49 = vadd.f32 %v4720_v47, %v4631_v12 }
 0x10a   : > { %v746_v55 = vpop.f32.mrf.mxu0  ;;  %v3898_v45 = vpop.f32.mrf.mxu1 }
 0x10b   : > { %v747_v58 = vadd.f32 %v4631_v12, %v746_v55  ;;  %3960 = vmatprep.mubr.msk.f32.mxu1 %vm1014_vm1, %v959_v53  ;;  %v962_v59 = vmax.f32 %v752_v54, 0.0  ;;  %v982_v51 = vmax.f32 %v852_v49, 0.0  ;;  %v862_v53 = vadd.f32 %v4732_v2, %v4631_v12 }
 0x10c   : > { %v3856_v61 = vpop.f32.mrf.mxu0  ;;  %3961 = vmatmul.mubr.msk.f32.gmra.mxu1 %vm1014_vm1, %v960_v50  ;;  %v896_v50 = vpop.f32.mrf.mxu1  ;;  %v983_v54 = vmax.f32 %v857_v29, 0.0  ;;  %v867_v55 = vadd.f32 %v4631_v12, %v866_v24 }
 0x10d   : > { %v961_v62 = vmax.f32 %v747_v58, 0.0  ;;  %v762_v63 = vadd.f32 %v3856_v61, %v4631_v12  ;;  %v984_v57 = vmax.f32 %v862_v53, 0.0  ;;  %v872_v58 = vadd.f32 %v3889_v20, %v4631_v12 }
 0x10e   : > { %v756_v1 = vpop.f32.mrf.mxu0  ;;  %v3901_v47 = vpop.f32.mrf.mxu1  ;;  %v877_v61 = vadd.f32 %v4631_v12, %v876_v31  ;;  %v897_v9 = vadd.f32 %v4631_v12, %v896_v50 }
 0x10f   : > { %v757_v3 = vadd.f32 %v4631_v12, %v756_v1  ;;  %3963 = vmatprep.mubr.msk.f32.mxu1 %vm1014_vm1, %v961_v62  ;;  %v964_v4 = vmax.f32 %v762_v63, 0.0  ;;  %v986_v63 = vmax.f32 %v872_v58, 0.0  ;;  %v882_v1 = vadd.f32 %v3892_v27, %v4631_v12 }
 0x110   : > { %v3859_v5 = vpop.f32.mrf.mxu0  ;;  %3964 = vmatmul.mubr.msk.f32.gmra.mxu1 %vm1014_vm1, %v962_v59  ;;  %v985_v59 = vmax.f32 %v867_v55, 0.0  ;;  %v906_v62 = vpop.f32.mrf.mxu1  ;;  %v987_v2 = vmax.f32 %v877_v61, 0.0  ;;  %v912_v19 = vadd.f32 %v3901_v47, %v4631_v12 }
 0x111   : > { %v963_v6 = vmax.f32 %v757_v3, 0.0  ;;  %v772_v8 = vadd.f32 %v3859_v5, %v4631_v12  ;;  %v887_v3 = vadd.f32 %v4631_v12, %v886_v41  ;;  %v988_v5 = vmax.f32 %v882_v1, 0.0 }
 0x112   : > { %v766_v10 = vpop.f32.mrf.mxu0  ;;  %v907_v16 = vadd.f32 %v4631_v12, %v906_v62 }
 0x113   : > { %v767_v13 = vadd.f32 %v4631_v12, %v766_v10  ;;  %3966 = vmatprep.mubr.msk.f32.mxu1 %vm1014_vm1, %v963_v6  ;;  %v966_v14 = vmax.f32 %v772_v8, 0.0  ;;  %v892_v6 = vadd.f32 %v3895_v35, %v4631_v12  ;;  %v989_v8 = vmax.f32 %v887_v3, 0.0 }
 0x114   : > { %3967 = vmatmul.mubr.msk.f32.gmra.mxu1 %vm1014_vm1, %v964_v4  ;;  %v3904_v4 = vpop.f32.mrf.mxu1  ;;  %v993_v20 = vmax.f32 %v907_v16, 0.0 }
 0x115   : > { %v965_v17 = vmax.f32 %v767_v13, 0.0  ;;  %v990_v11 = vmax.f32 %v892_v6, 0.0  ;;  %v902_v13 = vadd.f32 %v3898_v45, %v4631_v12  ;;  %v922_v32 = vadd.f32 %v3904_v4, %v4631_v12 }
 0x116   : > { %v916_v10 = vpop.f32.mrf.mxu1 }
 0x117   : > { %3969 = vmatprep.mubr.msk.f32.mxu1 %vm1014_vm1, %v965_v17  ;;  %v996_v44 = vmax.f32 %v922_v32, 0.0 }
 0x118   : > { %3970 = vmatmul.mubr.msk.f32.gmra.mxu1 %vm1014_vm1, %v966_v14  ;;  %v991_v14 = vmax.f32 %v897_v9, 0.0  ;;  %v3907_v17 = vpop.f32.mrf.mxu1 }
 0x119   : > { %3972 = vmatprep.mubr.msk.f32.mxu1 %vm1014_vm1, %v967_v18  ;;  %v992_v18 = vmax.f32 %v902_v13, 0.0 }
 0x11a   : > { %v926_v21 = vpop.f32.mrf.mxu1 }
 0x11c   : > { %3973 = vmatmul.mubr.msk.f32.gmra.mxu1 %vm1014_vm1, %v968_v36  ;;  %v917_v36 = vadd.f32 %v4631_v12, %v916_v10 }
 0x11d   : > { %3975 = vmatprep.mubr.msk.f32.mxu1 %vm1014_vm1, %v969_v23  ;;  %v994_v23 = vmax.f32 %v912_v19, 0.0 }
 0x11e   : > { %v995_v24 = vmax.f32 %v917_v36, 0.0 }
 0x120   : > { %3976 = vmatmul.mubr.msk.f32.gmra.mxu1 %vm1014_vm1, %v970_v25  ;;  %v927_v25 = vadd.f32 %v4631_v12, %v926_v21 }
 0x121   : > { %3978 = vmatprep.mubr.msk.f32.mxu1 %vm1014_vm1, %v971_v26  ;;  %v932_v26 = vadd.f32 %v3907_v17, %v4631_v12 }
 0x122   : > { %v997_v40 = vmax.f32 %v927_v25, 0.0 }
 0x123   : > { %v998_v27 = vmax.f32 %v932_v26, 0.0 }
 0x124   : > { %3979 = vmatmul.mubr.msk.f32.gmra.mxu1 %vm1014_vm1, %v972_v28  ;;  %v4827_v28 = vld [vmem:[%s6000_s4] ss:$0 sm:$0xff] }
 0x125   : > { %3981 = vmatprep.mubr.msk.f32.mxu1 %vm1014_vm1, %v973_v52 }
 0x128   : > { %3982 = vmatmul.mubr.msk.f32.gmra.mxu1 %vm1014_vm1, %v974_v33 }
 0x129   : > { %3984 = vmatprep.mubr.msk.f32.mxu1 %vm1014_vm1, %v975_v60 }
 0x12c   : > { %3985 = vmatmul.mubr.msk.f32.gmra.mxu1 %vm1014_vm1, %v976_v37 }
 0x12d   : > { %3987 = vmatprep.mubr.msk.f32.mxu1 %vm1014_vm1, %v977_v7 }
 0x130   : > { %3988 = vmatmul.mubr.msk.f32.gmra.mxu1 %vm1014_vm1, %v978_v42 }
 0x131   : > { %3990 = vmatprep.mubr.msk.f32.mxu1 %vm1014_vm1, %v979_v22 }
 0x134   : > { %3991 = vmatmul.mubr.msk.f32.gmra.mxu1 %vm1014_vm1, %v980_v46 }
 0x135   : > { %3993 = vmatprep.mubr.msk.f32.mxu1 %vm1014_vm1, %v981_v38 }
 0x138   : > { %3994 = vmatmul.mubr.msk.f32.gmra.mxu1 %vm1014_vm1, %v982_v51 }
 0x139   : > { %3996 = vmatprep.mubr.msk.f32.mxu1 %vm1014_vm1, %v983_v54 }
 0x13c   : > { %3997 = vmatmul.mubr.msk.f32.gmra.mxu1 %vm1014_vm1, %v984_v57 }
 0x13d   : > { %3999 = vmatprep.mubr.msk.f32.mxu1 %vm1014_vm1, %v985_v59 }
 0x140   : > { %4000 = vmatmul.mubr.msk.f32.gmra.mxu1 %vm1014_vm1, %v986_v63 }
 0x141   : > { %4002 = vmatprep.mubr.msk.f32.mxu1 %vm1014_vm1, %v987_v2 }
 0x144   : > { %4003 = vmatmul.mubr.msk.f32.gmra.mxu1 %vm1014_vm1, %v988_v5 }
 0x145   : > { %4005 = vmatprep.mubr.msk.f32.mxu1 %vm1014_vm1, %v989_v8 }
 0x148   : > { %4006 = vmatmul.mubr.msk.f32.gmra.mxu1 %vm1014_vm1, %v990_v11 }
 0x149   : > { %4008 = vmatprep.mubr.msk.f32.mxu1 %vm1014_vm1, %v991_v14 }
 0x14c   : > { %4009 = vmatmul.mubr.msk.f32.gmra.mxu1 %vm1014_vm1, %v992_v18 }
 0x14d   : > { %4011 = vmatprep.mubr.msk.f32.mxu1 %vm1014_vm1, %v993_v20 }
 0x150   : > { %4012 = vmatmul.mubr.msk.f32.gmra.mxu1 %vm1014_vm1, %v994_v23 }
 0x151   : > { %4014 = vmatprep.mubr.msk.f32.mxu1 %vm1014_vm1, %v995_v24 }
 0x154   : > { %4015 = vmatmul.mubr.msk.f32.gmra.mxu1 %vm1014_vm1, %v996_v44 }
 0x155   : > { %4017 = vmatprep.mubr.msk.f32.mxu1 %vm1014_vm1, %v997_v40 }
 0x158   : > { %4018 = vmatmul.mubr.msk.f32.gmra.mxu1 %vm1014_vm1, %v998_v27 }
 0x19c   : > { %v3926_v30 = vpop.f32.mrf.mxu1 }
 0x19d   : > { %v1279_v12 = vadd.f32 %v3926_v30, %v4827_v28 }
 0x19e   : > { %v1273_v52 = vpop.f32.mrf.mxu1 }
 0x19f   : > { %v1274_v48 = vadd.f32 %v4827_v28, %v1273_v52  ;;  %v1593_v34 = vmax.f32 %v1279_v12, 0.0 }
 0x1a0   : > { %v3929_v31 = vpop.f32.mrf.mxu1 }
 0x1a1   : > { %v1592_v33 = vmax.f32 %v1274_v48, 0.0  ;;  %v1289_v60 = vadd.f32 %v3929_v31, %v4827_v28 }
 0x1a2   : > { %v1283_v56 = vpop.f32.mrf.mxu1 }
 0x1a3   : > { %v1284_v35 = vadd.f32 %v4827_v28, %v1283_v56  ;;  %4028 = vmatprep.mubr.msk.f32.mxu0 %vm357_vm0, %v1592_v33  ;;  %v1595_v7 = vmax.f32 %v1289_v60, 0.0 }
 0x1a4   : > { %v3932_v37 = vpop.f32.mrf.mxu1  ;;  %4029 = vmatmul.mubr.msk.f32.vlgmr.msra.gmra.mxu0 %vm357_vm0, %v1593_v34 }
 0x1a5   : > { %v1594_v39 = vmax.f32 %v1284_v35, 0.0  ;;  %v1299_v0 = vadd.f32 %v3932_v37, %v4827_v28 }
 0x1a6   : > { %v1293_v41 = vpop.f32.mrf.mxu1 }
 0x1a7   : > { %v1294_v42 = vadd.f32 %v4827_v28, %v1293_v41  ;;  %4031 = vmatprep.mubr.msk.f32.mxu0 %vm357_vm0, %v1594_v39  ;;  %v1597_v15 = vmax.f32 %v1299_v0, 0.0 }
 0x1a8   : > { %v3935_v43 = vpop.f32.mrf.mxu1  ;;  %4032 = vmatmul.mubr.msk.f32.gmra.mxu0 %vm357_vm0, %v1595_v7 }
 0x1a9   : > { %v1596_v22 = vmax.f32 %v1294_v42, 0.0  ;;  %v1309_v45 = vadd.f32 %v3935_v43, %v4827_v28 }
 0x1aa   : > { %v1303_v46 = vpop.f32.mrf.mxu1 }
 0x1ab   : > { %v1304_v49 = vadd.f32 %v4827_v28, %v1303_v46  ;;  %4034 = vmatprep.mubr.msk.f32.mxu0 %vm357_vm0, %v1596_v22  ;;  %v1599_v50 = vmax.f32 %v1309_v45, 0.0 }
 0x1ac   : > { %v3938_v38 = vpop.f32.mrf.mxu1  ;;  %4035 = vmatmul.mubr.msk.f32.gmra.mxu0 %vm357_vm0, %v1597_v15 }
 0x1ad   : > { %v1598_v29 = vmax.f32 %v1304_v49, 0.0  ;;  %v1319_v51 = vadd.f32 %v3938_v38, %v4827_v28 }
 0x1ae   : > { %v1313_v53 = vpop.f32.mrf.mxu1 }
 0x1af   : > { %v1314_v54 = vadd.f32 %v4827_v28, %v1313_v53  ;;  %4037 = vmatprep.mubr.msk.f32.mxu0 %vm357_vm0, %v1598_v29  ;;  %v1601_v57 = vmax.f32 %v1319_v51, 0.0 }
 0x1b0   : > { %v3941_v55 = vpop.f32.mrf.mxu1  ;;  %4038 = vmatmul.mubr.msk.f32.gmra.mxu0 %vm357_vm0, %v1599_v50 }
 0x1b1   : > { %v1600_v47 = vmax.f32 %v1314_v54, 0.0  ;;  %v1329_v58 = vadd.f32 %v3941_v55, %v4827_v28 }
 0x1b2   : > { %v1323_v59 = vpop.f32.mrf.mxu1 }
 0x1b3   : > { %v1324_v61 = vadd.f32 %v4827_v28, %v1323_v59  ;;  %4040 = vmatprep.mubr.msk.f32.mxu0 %vm357_vm0, %v1600_v47  ;;  %v1603_v1 = vmax.f32 %v1329_v58, 0.0 }
 0x1b4   : > { %v3944_v62 = vpop.f32.mrf.mxu1  ;;  %4041 = vmatmul.mubr.msk.f32.gmra.mxu0 %vm357_vm0, %v1601_v57 }
 0x1b5   : > { %v1602_v63 = vmax.f32 %v1324_v61, 0.0  ;;  %v1339_v2 = vadd.f32 %v3944_v62, %v4827_v28 }
 0x1b6   : > { %v1333_v3 = vpop.f32.mrf.mxu1 }
 0x1b7   : > { %v1334_v4 = vadd.f32 %v4827_v28, %v1333_v3  ;;  %4043 = vmatprep.mubr.msk.f32.mxu0 %vm357_vm0, %v1602_v63  ;;  %v1605_v8 = vmax.f32 %v1339_v2, 0.0 }
 0x1b8   : > { %v3947_v5 = vpop.f32.mrf.mxu1  ;;  %4044 = vmatmul.mubr.msk.f32.gmra.mxu0 %vm357_vm0, %v1603_v1 }
 0x1b9   : > { %v1604_v6 = vmax.f32 %v1334_v4, 0.0  ;;  %v1349_v9 = vadd.f32 %v3947_v5, %v4827_v28 }
 0x1ba   : > { %v1343_v10 = vpop.f32.mrf.mxu1 }
 0x1bb   : > { %v1344_v11 = vadd.f32 %v4827_v28, %v1343_v10  ;;  %4046 = vmatprep.mubr.msk.f32.mxu0 %vm357_vm0, %v1604_v6  ;;  %v1607_v16 = vmax.f32 %v1349_v9, 0.0 }
 0x1bc   : > { %v3950_v13 = vpop.f32.mrf.mxu1  ;;  %4047 = vmatmul.mubr.msk.f32.gmra.mxu0 %vm357_vm0, %v1605_v8 }
 0x1bd   : > { %v1606_v14 = vmax.f32 %v1344_v11, 0.0  ;;  %v1359_v17 = vadd.f32 %v3950_v13, %v4827_v28 }
 0x1be   : > { %v1353_v18 = vpop.f32.mrf.mxu1 }
 0x1bf   : > { %v1354_v19 = vadd.f32 %v4827_v28, %v1353_v18  ;;  %4049 = vmatprep.mubr.msk.f32.mxu0 %vm357_vm0, %v1606_v14  ;;  %v1609_v21 = vmax.f32 %v1359_v17, 0.0 }
 0x1c0   : > { %v3953_v20 = vpop.f32.mrf.mxu1  ;;  %4050 = vmatmul.mubr.msk.f32.gmra.mxu0 %vm357_vm0, %v1607_v16 }
 0x1c1   : > { %v1608_v36 = vmax.f32 %v1354_v19, 0.0  ;;  %v1369_v23 = vadd.f32 %v3953_v20, %v4827_v28 }
 0x1c2   : > { %v1363_v32 = vpop.f32.mrf.mxu1 }
 0x1c3   : > { %v1364_v24 = vadd.f32 %v4827_v28, %v1363_v32  ;;  %4052 = vmatprep.mubr.msk.f32.mxu0 %vm357_vm0, %v1608_v36  ;;  %v1611_v26 = vmax.f32 %v1369_v23, 0.0 }
 0x1c4   : > { %v3956_v25 = vpop.f32.mrf.mxu1  ;;  %4053 = vmatmul.mubr.msk.f32.gmra.mxu0 %vm357_vm0, %v1609_v21 }
 0x1c5   : > { %v1610_v44 = vmax.f32 %v1364_v24, 0.0  ;;  %v1379_v40 = vadd.f32 %v3956_v25, %v4827_v28 }
 0x1c6   : > { %v1373_v27 = vpop.f32.mrf.mxu1 }
 0x1c7   : > { %v1374_v30 = vadd.f32 %v4827_v28, %v1373_v27  ;;  %4055 = vmatprep.mubr.msk.f32.mxu0 %vm357_vm0, %v1610_v44  ;;  %v1613_v48 = vmax.f32 %v1379_v40, 0.0 }
 0x1c8   : > { %v3959_v12 = vpop.f32.mrf.mxu1  ;;  %4056 = vmatmul.mubr.msk.f32.gmra.mxu0 %vm357_vm0, %v1611_v26 }
 0x1c9   : > { %v1612_v52 = vmax.f32 %v1374_v30, 0.0  ;;  %v1389_v31 = vadd.f32 %v3959_v12, %v4827_v28 }
 0x1ca   : > { %v1383_v33 = vpop.f32.mrf.mxu1 }
 0x1cb   : > { %v1384_v34 = vadd.f32 %v4827_v28, %v1383_v33  ;;  %4058 = vmatprep.mubr.msk.f32.mxu0 %vm357_vm0, %v1612_v52  ;;  %v1615_v35 = vmax.f32 %v1389_v31, 0.0 }
 0x1cc   : > { %v3962_v60 = vpop.f32.mrf.mxu1  ;;  %4059 = vmatmul.mubr.msk.f32.gmra.mxu0 %vm357_vm0, %v1613_v48 }
 0x1cd   : > { %v1614_v56 = vmax.f32 %v1384_v34, 0.0  ;;  %v1399_v37 = vadd.f32 %v3962_v60, %v4827_v28 }
 0x1ce   : > { %v1393_v39 = vpop.f32.mrf.mxu1 }
 0x1cf   : > { %v1394_v7 = vadd.f32 %v4827_v28, %v1393_v39  ;;  %4061 = vmatprep.mubr.msk.f32.mxu0 %vm357_vm0, %v1614_v56  ;;  %v1617_v42 = vmax.f32 %v1399_v37, 0.0 }
 0x1d0   : > { %v3965_v0 = vpop.f32.mrf.mxu1  ;;  %4062 = vmatmul.mubr.msk.f32.gmra.mxu0 %vm357_vm0, %v1615_v35 }
 0x1d1   : > { %v1616_v41 = vmax.f32 %v1394_v7, 0.0  ;;  %v1409_v43 = vadd.f32 %v3965_v0, %v4827_v28 }
 0x1d2   : > { %v1403_v22 = vpop.f32.mrf.mxu1 }
 0x1d3   : > { %v1404_v15 = vadd.f32 %v4827_v28, %v1403_v22  ;;  %4064 = vmatprep.mubr.msk.f32.mxu0 %vm357_vm0, %v1616_v41  ;;  %v1619_v49 = vmax.f32 %v1409_v43, 0.0 }
 0x1d4   : > { %v3968_v45 = vpop.f32.mrf.mxu1  ;;  %4065 = vmatmul.mubr.msk.f32.gmra.mxu0 %vm357_vm0, %v1617_v42 }
 0x1d5   : > { %v1618_v46 = vmax.f32 %v1404_v15, 0.0  ;;  %v1419_v38 = vadd.f32 %v3968_v45, %v4827_v28 }
 0x1d6   : > { %v1413_v29 = vpop.f32.mrf.mxu1 }
 0x1d7   : > { %v1414_v50 = vadd.f32 %v4827_v28, %v1413_v29  ;;  %4067 = vmatprep.mubr.msk.f32.mxu0 %vm357_vm0, %v1618_v46  ;;  %v1621_v54 = vmax.f32 %v1419_v38, 0.0 }
 0x1d8   : > { %v3971_v51 = vpop.f32.mrf.mxu1  ;;  %4068 = vmatmul.mubr.msk.f32.gmra.mxu0 %vm357_vm0, %v1619_v49 }
 0x1d9   : > { %v1620_v53 = vmax.f32 %v1414_v50, 0.0  ;;  %v1429_v55 = vadd.f32 %v3971_v51, %v4827_v28 }
 0x1da   : > { %v1423_v47 = vpop.f32.mrf.mxu1 }
 0x1db   : > { %v1424_v57 = vadd.f32 %v4827_v28, %v1423_v47  ;;  %4070 = vmatprep.mubr.msk.f32.mxu0 %vm357_vm0, %v1620_v53  ;;  %v1623_v61 = vmax.f32 %v1429_v55, 0.0 }
 0x1dc   : > { %v3974_v58 = vpop.f32.mrf.mxu1  ;;  %4071 = vmatmul.mubr.msk.f32.gmra.mxu0 %vm357_vm0, %v1621_v54 }
 0x1dd   : > { %v1622_v59 = vmax.f32 %v1424_v57, 0.0  ;;  %v1439_v62 = vadd.f32 %v3974_v58, %v4827_v28 }
 0x1de   : > { %v1433_v63 = vpop.f32.mrf.mxu1 }
 0x1df   : > { %v1434_v1 = vadd.f32 %v4827_v28, %v1433_v63  ;;  %4073 = vmatprep.mubr.msk.f32.mxu0 %vm357_vm0, %v1622_v59  ;;  %v1625_v4 = vmax.f32 %v1439_v62, 0.0 }
 0x1e0   : > { %v3977_v2 = vpop.f32.mrf.mxu1  ;;  %4074 = vmatmul.mubr.msk.f32.gmra.mxu0 %vm357_vm0, %v1623_v61 }
 0x1e1   : > { %v1624_v3 = vmax.f32 %v1434_v1, 0.0  ;;  %v1449_v5 = vadd.f32 %v3977_v2, %v4827_v28 }
 0x1e2   : > { %v1443_v6 = vpop.f32.mrf.mxu1 }
 0x1e3   : > { %v1444_v8 = vadd.f32 %v4827_v28, %v1443_v6  ;;  %4076 = vmatprep.mubr.msk.f32.mxu0 %vm357_vm0, %v1624_v3  ;;  %v1627_v11 = vmax.f32 %v1449_v5, 0.0 }
 0x1e4   : > { %v3980_v9 = vpop.f32.mrf.mxu1  ;;  %4077 = vmatmul.mubr.msk.f32.gmra.mxu0 %vm357_vm0, %v1625_v4 }
 0x1e5   : > { %v1626_v10 = vmax.f32 %v1444_v8, 0.0  ;;  %v1459_v13 = vadd.f32 %v3980_v9, %v4827_v28 }
 0x1e6   : > { %v1453_v14 = vpop.f32.mrf.mxu1 }
 0x1e7   : > { %v1454_v16 = vadd.f32 %v4827_v28, %v1453_v14  ;;  %4079 = vmatprep.mubr.msk.f32.mxu0 %vm357_vm0, %v1626_v10  ;;  %v1629_v19 = vmax.f32 %v1459_v13, 0.0 }
 0x1e8   : > { %v3983_v17 = vpop.f32.mrf.mxu1  ;;  %4080 = vmatmul.mubr.msk.f32.gmra.mxu0 %vm357_vm0, %v1627_v11 }
 0x1e9   : > { %v1628_v18 = vmax.f32 %v1454_v16, 0.0  ;;  %v1469_v20 = vadd.f32 %v3983_v17, %v4827_v28 }
 0x1ea   : > { %v1463_v36 = vpop.f32.mrf.mxu1 }
 0x1eb   : > { %v1464_v21 = vadd.f32 %v4827_v28, %v1463_v36  ;;  %4082 = vmatprep.mubr.msk.f32.mxu0 %vm357_vm0, %v1628_v18  ;;  %v1631_v24 = vmax.f32 %v1469_v20, 0.0 }
 0x1ec   : > { %v3986_v23 = vpop.f32.mrf.mxu1  ;;  %4083 = vmatmul.mubr.msk.f32.gmra.mxu0 %vm357_vm0, %v1629_v19 }
 0x1ed   : > { %v1630_v32 = vmax.f32 %v1464_v21, 0.0  ;;  %v1479_v25 = vadd.f32 %v3986_v23, %v4827_v28 }
 0x1ee   : > { %v1473_v44 = vpop.f32.mrf.mxu1 }
 0x1ef   : > { %v1474_v26 = vadd.f32 %v4827_v28, %v1473_v44  ;;  %4085 = vmatprep.mubr.msk.f32.mxu0 %vm357_vm0, %v1630_v32  ;;  %v1633_v30 = vmax.f32 %v1479_v25, 0.0 }
 0x1f0   : > { %v3989_v40 = vpop.f32.mrf.mxu1  ;;  %4086 = vmatmul.mubr.msk.f32.gmra.mxu0 %vm357_vm0, %v1631_v24 }
 0x1f1   : > { %v1632_v27 = vmax.f32 %v1474_v26, 0.0  ;;  %v1489_v12 = vadd.f32 %v3989_v40, %v4827_v28 }
 0x1f2   : > { %v1483_v52 = vpop.f32.mrf.mxu1 }
 0x1f3   : > { %v1484_v48 = vadd.f32 %v4827_v28, %v1483_v52  ;;  %4088 = vmatprep.mubr.msk.f32.mxu0 %vm357_vm0, %v1632_v27  ;;  %v1635_v34 = vmax.f32 %v1489_v12, 0.0 }
 0x1f4   : > { %v3992_v31 = vpop.f32.mrf.mxu1  ;;  %4089 = vmatmul.mubr.msk.f32.gmra.mxu0 %vm357_vm0, %v1633_v30 }
 0x1f5   : > { %v1634_v33 = vmax.f32 %v1484_v48, 0.0  ;;  %v1499_v60 = vadd.f32 %v3992_v31, %v4827_v28  ;;  %v4960_v48 = vld [vmem:[%s6002_s6] ss:$0 sm:$0xff] }
 0x1f6   : > { %v1493_v56 = vpop.f32.mrf.mxu1 }
 0x1f7   : > { %v1494_v35 = vadd.f32 %v4827_v28, %v1493_v56  ;;  %4091 = vmatprep.mubr.msk.f32.mxu0 %vm357_vm0, %v1634_v33  ;;  %v1637_v7 = vmax.f32 %v1499_v60, 0.0 }
 0x1f8   : > { %v3995_v37 = vpop.f32.mrf.mxu1  ;;  %4092 = vmatmul.mubr.msk.f32.gmra.mxu0 %vm357_vm0, %v1635_v34 }
 0x1f9   : > { %v1636_v39 = vmax.f32 %v1494_v35, 0.0  ;;  %v1509_v0 = vadd.f32 %v3995_v37, %v4827_v28 }
 0x1fa   : > { %v1503_v41 = vpop.f32.mrf.mxu1 }
 0x1fb   : > { %v1504_v42 = vadd.f32 %v4827_v28, %v1503_v41  ;;  %4094 = vmatprep.mubr.msk.f32.mxu0 %vm357_vm0, %v1636_v39  ;;  %v1639_v15 = vmax.f32 %v1509_v0, 0.0 }
 0x1fc   : > { %v3998_v43 = vpop.f32.mrf.mxu1  ;;  %4095 = vmatmul.mubr.msk.f32.gmra.mxu0 %vm357_vm0, %v1637_v7 }
 0x1fd   : > { %v1638_v22 = vmax.f32 %v1504_v42, 0.0  ;;  %v1519_v45 = vadd.f32 %v3998_v43, %v4827_v28 }
 0x1fe   : > { %v1513_v46 = vpop.f32.mrf.mxu1 }
 0x1ff   : > { %v1514_v49 = vadd.f32 %v4827_v28, %v1513_v46  ;;  %4097 = vmatprep.mubr.msk.f32.mxu0 %vm357_vm0, %v1638_v22  ;;  %v1641_v50 = vmax.f32 %v1519_v45, 0.0 }
 0x200   : > { %v4001_v38 = vpop.f32.mrf.mxu1  ;;  %4098 = vmatmul.mubr.msk.f32.gmra.mxu0 %vm357_vm0, %v1639_v15 }
 0x201   : > { %v1640_v29 = vmax.f32 %v1514_v49, 0.0  ;;  %v1529_v51 = vadd.f32 %v4001_v38, %v4827_v28 }
 0x202   : > { %v1523_v53 = vpop.f32.mrf.mxu1 }
 0x203   : > { %v1524_v54 = vadd.f32 %v4827_v28, %v1523_v53  ;;  %4100 = vmatprep.mubr.msk.f32.mxu0 %vm357_vm0, %v1640_v29  ;;  %v1643_v57 = vmax.f32 %v1529_v51, 0.0 }
 0x204   : > { %v4004_v55 = vpop.f32.mrf.mxu1  ;;  %4101 = vmatmul.mubr.msk.f32.gmra.mxu0 %vm357_vm0, %v1641_v50 }
 0x205   : > { %v1642_v47 = vmax.f32 %v1524_v54, 0.0  ;;  %v1539_v58 = vadd.f32 %v4004_v55, %v4827_v28 }
 0x206   : > { %v1533_v59 = vpop.f32.mrf.mxu1 }
 0x207   : > { %v1534_v61 = vadd.f32 %v4827_v28, %v1533_v59  ;;  %4103 = vmatprep.mubr.msk.f32.mxu0 %vm357_vm0, %v1642_v47  ;;  %v1645_v1 = vmax.f32 %v1539_v58, 0.0 }
 0x208   : > { %v4007_v62 = vpop.f32.mrf.mxu1  ;;  %4104 = vmatmul.mubr.msk.f32.gmra.mxu0 %vm357_vm0, %v1643_v57 }
 0x209   : > { %v1644_v63 = vmax.f32 %v1534_v61, 0.0  ;;  %v1549_v2 = vadd.f32 %v4007_v62, %v4827_v28 }
 0x20a   : > { %v1543_v3 = vpop.f32.mrf.mxu1 }
 0x20b   : > { %v1544_v4 = vadd.f32 %v4827_v28, %v1543_v3  ;;  %4106 = vmatprep.mubr.msk.f32.mxu0 %vm357_vm0, %v1644_v63  ;;  %v1647_v8 = vmax.f32 %v1549_v2, 0.0 }
 0x20c   : > { %v4010_v5 = vpop.f32.mrf.mxu1  ;;  %4107 = vmatmul.mubr.msk.f32.gmra.mxu0 %vm357_vm0, %v1645_v1 }
 0x20d   : > { %v1646_v6 = vmax.f32 %v1544_v4, 0.0  ;;  %v1559_v9 = vadd.f32 %v4010_v5, %v4827_v28 }
 0x20e   : > { %v1553_v10 = vpop.f32.mrf.mxu1 }
 0x20f   : > { %v1554_v11 = vadd.f32 %v4827_v28, %v1553_v10  ;;  %4109 = vmatprep.mubr.msk.f32.mxu0 %vm357_vm0, %v1646_v6  ;;  %v1649_v16 = vmax.f32 %v1559_v9, 0.0 }
 0x210   : > { %v4013_v13 = vpop.f32.mrf.mxu1  ;;  %4110 = vmatmul.mubr.msk.f32.gmra.mxu0 %vm357_vm0, %v1647_v8 }
 0x211   : > { %v1648_v14 = vmax.f32 %v1554_v11, 0.0  ;;  %v1569_v17 = vadd.f32 %v4013_v13, %v4827_v28 }
 0x212   : > { %v1563_v18 = vpop.f32.mrf.mxu1 }
 0x213   : > { %v1564_v19 = vadd.f32 %v4827_v28, %v1563_v18  ;;  %4112 = vmatprep.mubr.msk.f32.mxu0 %vm357_vm0, %v1648_v14  ;;  %v1651_v21 = vmax.f32 %v1569_v17, 0.0 }
 0x214   : > { %v4016_v20 = vpop.f32.mrf.mxu1  ;;  %4113 = vmatmul.mubr.msk.f32.gmra.mxu0 %vm357_vm0, %v1649_v16 }
 0x215   : > { %v1650_v36 = vmax.f32 %v1564_v19, 0.0  ;;  %v1579_v23 = vadd.f32 %v4016_v20, %v4827_v28 }
 0x216   : > { %v1573_v32 = vpop.f32.mrf.mxu1 }
 0x217   : > { %v1574_v24 = vadd.f32 %v4827_v28, %v1573_v32  ;;  %4115 = vmatprep.mubr.msk.f32.mxu0 %vm357_vm0, %v1650_v36  ;;  %v1653_v26 = vmax.f32 %v1579_v23, 0.0 }
 0x218   : > { %v4019_v25 = vpop.f32.mrf.mxu1  ;;  %4116 = vmatmul.mubr.msk.f32.gmra.mxu0 %vm357_vm0, %v1651_v21 }
 0x219   : > { %v1652_v44 = vmax.f32 %v1574_v24, 0.0  ;;  %v1589_v40 = vadd.f32 %v4019_v25, %v4827_v28 }
 0x21a   : > { %v1583_v27 = vpop.f32.mrf.mxu1 }
 0x21b   : > { %v1584_v30 = vadd.f32 %v4827_v28, %v1583_v27  ;;  %4118 = vmatprep.mubr.msk.f32.mxu0 %vm357_vm0, %v1652_v44  ;;  %v1655_v52 = vmax.f32 %v1589_v40, 0.0 }
 0x21c   : > { %4119 = vmatmul.mubr.msk.f32.gmra.mxu0 %vm357_vm0, %v1653_v26 }
 0x21d   : > { %v1654_v12 = vmax.f32 %v1584_v30, 0.0 }
 0x21f   : > { %4121 = vmatprep.mubr.msk.f32.mxu0 %vm357_vm0, %v1654_v12 }
 0x220   : > { %4122 = vmatmul.mubr.msk.f32.gmra.mxu0 %vm357_vm0, %v1655_v52 }
 0x264   : > { %v4030_v31 = vpop.f32.mrf.mxu0 }
 0x265   : > { %v4963_v33 = vadd.f32 %v4030_v31, %v4960_v48 }
 0x266   : > { %v1925_v28 = vpop.f32.mrf.mxu0 }
 0x267   : > { %6093 = vst [vmem:[#allocation2_spill] sm:$0xff] %v4963_v33  ;;  %v4966_v34 = vadd.f32 %v4960_v48, %v1925_v28  ;;  %v2248_v60 = vsel %vm2244_vm2, %v4963_v33, -inf }
 0x268   : > { %2249 = vmax.xlane.f32.xlu0 %v2248_v60  ;;  %v4033_v56 = vpop.f32.mrf.mxu0 }
 0x269   : > { %6094 = vst [vmem:[#allocation3_spill] sm:$0xff] %v4966_v34  ;;  %v4971_v35 = vadd.f32 %v4033_v56, %v4960_v48  ;;  %v2245_v0 = vsel %vm2244_vm2, %v4966_v34, -inf }
 0x26a   : > { %v1935_v37 = vpop.f32.mrf.mxu0 }
 0x26b   : > { %6095 = vst [vmem:[#allocation4_spill] sm:$0xff] %v4971_v35  ;;  %v4974_v39 = vadd.f32 %v4960_v48, %v1935_v37  ;;  %v2254_v7 = vsel %vm2244_vm2, %v4971_v35, -inf }
 0x26c   : > { %2255 = vmax.xlane.f32.xlu1 %v2254_v7  ;;  %v4036_v41 = vpop.f32.mrf.mxu0  ;;  %2246 = vmax.xlane.f32.xlu0 %v2245_v0 }
 0x26d   : > { %6096 = vst [vmem:[#allocation5_spill] sm:$0xff] %v4974_v39  ;;  %v4981_v43 = vadd.f32 %v4036_v41, %v4960_v48  ;;  %v2251_v15 = vsel %vm2244_vm2, %v4974_v39, -inf }
 0x26e   : > { %v1945_v42 = vpop.f32.mrf.mxu0 }
 0x26f   : > { %6097 = vst [vmem:[#allocation6_spill] sm:$0xff] %v4981_v43  ;;  %v4984_v22 = vadd.f32 %v4960_v48, %v1945_v42  ;;  %v2260_v50 = vsel %vm2244_vm2, %v4981_v43, -inf }
 0x270   : > { %v4039_v45 = vpop.f32.mrf.mxu0  ;;  %2252 = vmax.xlane.f32.xlu1 %v2251_v15 }
 0x271   : > { %6098 = vst [vmem:[#allocation7_spill] sm:$0xff] %v4984_v22  ;;  %v2257_v46 = vsel %vm2244_vm2, %v4984_v22, -inf  ;;  %v4991_v38 = vadd.f32 %v4039_v45, %v4960_v48 }
 0x272   : > { %v1955_v49 = vpop.f32.mrf.mxu0  ;;  %2258 = vmax.xlane.f32.xlu0 %v2257_v46 }
 0x273   : > { %6099 = vst [vmem:[#allocation8_spill] sm:$0xff] %v4991_v38  ;;  %v4994_v29 = vadd.f32 %v4960_v48, %v1955_v49  ;;  %v2266_v57 = vsel %vm2244_vm2, %v4991_v38, -inf }
 0x274   : > { %v4042_v51 = vpop.f32.mrf.mxu0  ;;  %2261 = vmax.xlane.f32.xlu1 %v2260_v50 }
 0x275   : > { %6100 = vst [vmem:[#allocation9_spill] sm:$0xff] %v4994_v29  ;;  %v2263_v53 = vsel %vm2244_vm2, %v4994_v29, -inf  ;;  %v5001_v55 = vadd.f32 %v4042_v51, %v4960_v48 }
 0x276   : > { %v1965_v54 = vpop.f32.mrf.mxu0  ;;  %2264 = vmax.xlane.f32.xlu0 %v2263_v53 }
 0x277   : > { %6101 = vst [vmem:[#allocation10_spill] sm:$0xff] %v5001_v55  ;;  %v5004_v47 = vadd.f32 %v4960_v48, %v1965_v54  ;;  %v2272_v1 = vsel %vm2244_vm2, %v5001_v55, -inf }
 0x278   : > { %v4045_v58 = vpop.f32.mrf.mxu0  ;;  %2267 = vmax.xlane.f32.xlu1 %v2266_v57 }
 0x279   : > { %6102 = vst [vmem:[#allocation11_spill] sm:$0xff] %v5004_v47  ;;  %v2269_v59 = vsel %vm2244_vm2, %v5004_v47, -inf  ;;  %v5011_v62 = vadd.f32 %v4045_v58, %v4960_v48 }
 0x27a   : > { %v1975_v61 = vpop.f32.mrf.mxu0  ;;  %2270 = vmax.xlane.f32.xlu0 %v2269_v59 }
 0x27b   : > { %6103 = vst [vmem:[#allocation12_spill] sm:$0xff] %v5011_v62  ;;  %v5014_v63 = vadd.f32 %v4960_v48, %v1975_v61  ;;  %v2278_v8 = vsel %vm2244_vm2, %v5011_v62, -inf }
 0x27c   : > { %v4048_v2 = vpop.f32.mrf.mxu0  ;;  %2273 = vmax.xlane.f32.xlu1 %v2272_v1 }
 0x27d   : > { %6104 = vst [vmem:[#allocation13_spill] sm:$0xff] %v5014_v63  ;;  %v2275_v3 = vsel %vm2244_vm2, %v5014_v63, -inf  ;;  %v5021_v5 = vadd.f32 %v4048_v2, %v4960_v48 }
 0x27e   : > { %v1985_v4 = vpop.f32.mrf.mxu0  ;;  %2276 = vmax.xlane.f32.xlu0 %v2275_v3 }
 0x27f   : > { %6105 = vst [vmem:[#allocation14_spill] sm:$0xff] %v5021_v5  ;;  %v5024_v6 = vadd.f32 %v4960_v48, %v1985_v4  ;;  %v2284_v16 = vsel %vm2244_vm2, %v5021_v5, -inf }
 0x280   : > { %v4051_v9 = vpop.f32.mrf.mxu0  ;;  %2279 = vmax.xlane.f32.xlu1 %v2278_v8 }
 0x281   : > { %6106 = vst [vmem:[#allocation15_spill] sm:$0xff] %v5024_v6  ;;  %v2281_v10 = vsel %vm2244_vm2, %v5024_v6, -inf  ;;  %v5031_v13 = vadd.f32 %v4051_v9, %v4960_v48 }
 0x282   : > { %v1995_v11 = vpop.f32.mrf.mxu0  ;;  %2282 = vmax.xlane.f32.xlu0 %v2281_v10 }
 0x283   : > { %6107 = vst [vmem:[#allocation16_spill] sm:$0xff] %v5031_v13  ;;  %v5034_v14 = vadd.f32 %v4960_v48, %v1995_v11  ;;  %v2290_v21 = vsel %vm2244_vm2, %v5031_v13, -inf }
 0x284   : > { %v4054_v17 = vpop.f32.mrf.mxu0  ;;  %2285 = vmax.xlane.f32.xlu1 %v2284_v16 }
 0x285   : > { %6108 = vst [vmem:[#allocation17_spill] sm:$0xff] %v5034_v14  ;;  %v2287_v18 = vsel %vm2244_vm2, %v5034_v14, -inf  ;;  %v5041_v20 = vadd.f32 %v4054_v17, %v4960_v48 }
 0x286   : > { %v2005_v19 = vpop.f32.mrf.mxu0  ;;  %2288 = vmax.xlane.f32.xlu0 %v2287_v18 }
 0x287   : > { %6109 = vst [vmem:[#allocation18_spill] sm:$0xff] %v5041_v20  ;;  %v5044_v36 = vadd.f32 %v4960_v48, %v2005_v19  ;;  %v2296_v26 = vsel %vm2244_vm2, %v5041_v20, -inf }
 0x288   : > { %v4057_v23 = vpop.f32.mrf.mxu0  ;;  %2291 = vmax.xlane.f32.xlu1 %v2290_v21 }
 0x289   : > { %6110 = vst [vmem:[#allocation19_spill] sm:$0xff] %v5044_v36  ;;  %v2293_v32 = vsel %vm2244_vm2, %v5044_v36, -inf  ;;  %v5051_v25 = vadd.f32 %v4057_v23, %v4960_v48 }
 0x28a   : > { %v2015_v24 = vpop.f32.mrf.mxu0  ;;  %2294 = vmax.xlane.f32.xlu0 %v2293_v32 }
 0x28b   : > { %6111 = vst [vmem:[#allocation20_spill] sm:$0xff] %v5051_v25  ;;  %v5054_v44 = vadd.f32 %v4960_v48, %v2015_v24  ;;  %v2302_v31 = vsel %vm2244_vm2, %v5051_v25, -inf }
 0x28c   : > { %v4060_v40 = vpop.f32.mrf.mxu0  ;;  %2297 = vmax.xlane.f32.xlu1 %v2296_v26 }
 0x28d   : > { %6112 = vst [vmem:[#allocation21_spill] sm:$0xff] %v5054_v44  ;;  %v2299_v27 = vsel %vm2244_vm2, %v5054_v44, -inf  ;;  %v5061_v12 = vadd.f32 %v4060_v40, %v4960_v48 }
 0x28e   : > { %v2025_v30 = vpop.f32.mrf.mxu0  ;;  %2300 = vmax.xlane.f32.xlu0 %v2299_v27 }
 0x28f   : > { %6113 = vst [vmem:[#allocation22_spill] sm:$0xff] %v5061_v12  ;;  %v5064_v52 = vadd.f32 %v4960_v48, %v2025_v30  ;;  %v2308_v0 = vsel %vm2244_vm2, %v5061_v12, -inf }
 0x290   : > { %v4063_v28 = vpop.f32.mrf.mxu0  ;;  %2303 = vmax.xlane.f32.xlu1 %v2302_v31 }
 0x291   : > { %6114 = vst [vmem:[#allocation23_spill] sm:$0xff] %v5064_v52  ;;  %v2305_v60 = vsel %vm2244_vm2, %v5064_v52, -inf  ;;  %v5071_v37 = vadd.f32 %v4063_v28, %v4960_v48 }
 0x292   : > { %v2035_v56 = vpop.f32.mrf.mxu0  ;;  %2306 = vmax.xlane.f32.xlu0 %v2305_v60 }
 0x293   : > { %6115 = vst [vmem:[#allocation24_spill] sm:$0xff] %v5071_v37  ;;  %v5074_v7 = vadd.f32 %v4960_v48, %v2035_v56  ;;  %v2314_v49 = vsel %vm2244_vm2, %v5071_v37, -inf }
 0x294   : > { %v4066_v41 = vpop.f32.mrf.mxu0  ;;  %2309 = vmax.xlane.f32.xlu1 %v2308_v0 }
 0x295   : > { %6116 = vst [vmem:[#allocation25_spill] sm:$0xff] %v5074_v7  ;;  %v2311_v42 = vsel %vm2244_vm2, %v5074_v7, -inf  ;;  %v5081_v45 = vadd.f32 %v4066_v41, %v4960_v48 }
 0x296   : > { %v2045_v15 = vpop.f32.mrf.mxu0  ;;  %2312 = vmax.xlane.f32.xlu0 %v2311_v42 }
 0x297   : > { %6117 = vst [vmem:[#allocation26_spill] sm:$0xff] %v5081_v45  ;;  %v5084_v46 = vadd.f32 %v4960_v48, %v2045_v15  ;;  %v2320_v58 = vsel %vm2244_vm2, %v5081_v45, -inf }
 0x298   : > { %v4069_v50 = vpop.f32.mrf.mxu0  ;;  %2315 = vmax.xlane.f32.xlu1 %v2314_v49 }
 0x299   : > { %6118 = vst [vmem:[#allocation27_spill] sm:$0xff] %v5084_v46  ;;  %v2317_v51 = vsel %vm2244_vm2, %v5084_v46, -inf  ;;  %v5091_v54 = vadd.f32 %v4069_v50, %v4960_v48 }
 0x29a   : > { %v2055_v53 = vpop.f32.mrf.mxu0  ;;  %2318 = vmax.xlane.f32.xlu0 %v2317_v51 }
 0x29b   : > { %6119 = vst [vmem:[#allocation28_spill] sm:$0xff] %v5091_v54  ;;  %v5094_v57 = vadd.f32 %v4960_v48, %v2055_v53  ;;  %v2326_v4 = vsel %vm2244_vm2, %v5091_v54, -inf }
 0x29c   : > { %v4072_v59 = vpop.f32.mrf.mxu0  ;;  %2321 = vmax.xlane.f32.xlu1 %v2320_v58 }
 0x29d   : > { %6120 = vst [vmem:[#allocation29_spill] sm:$0xff] %v5094_v57  ;;  %v2323_v61 = vsel %vm2244_vm2, %v5094_v57, -inf  ;;  %v5101_v2 = vadd.f32 %v4072_v59, %v4960_v48 }
 0x29e   : > { %v2065_v1 = vpop.f32.mrf.mxu0  ;;  %2324 = vmax.xlane.f32.xlu0 %v2323_v61 }
 0x29f   : > { %6121 = vst [vmem:[#allocation30_spill] sm:$0xff] %v5101_v2  ;;  %v5104_v3 = vadd.f32 %v4960_v48, %v2065_v1  ;;  %v2332_v17 = vsel %vm2244_vm2, %v5101_v2, -inf }
 0x2a0   : > { %v4075_v8 = vpop.f32.mrf.mxu0  ;;  %2327 = vmax.xlane.f32.xlu1 %v2326_v4 }
 0x2a1   : > { %6122 = vst [vmem:[#allocation31_spill] sm:$0xff] %v5104_v3  ;;  %v2329_v9 = vsel %vm2244_vm2, %v5104_v3, -inf  ;;  %v5111_v11 = vadd.f32 %v4075_v8, %v4960_v48 }
 0x2a2   : > { %v2075_v10 = vpop.f32.mrf.mxu0  ;;  %2330 = vmax.xlane.f32.xlu0 %v2329_v9 }
 0x2a3   : > { %6123 = vst [vmem:[#allocation32_spill] sm:$0xff] %v5111_v11  ;;  %v5114_v16 = vadd.f32 %v4960_v48, %v2075_v10  ;;  %v2338_v24 = vsel %vm2244_vm2, %v5111_v11, -inf }
 0x2a4   : > { %v4078_v18 = vpop.f32.mrf.mxu0  ;;  %2333 = vmax.xlane.f32.xlu1 %v2332_v17 }
 0x2a5   : > { %6124 = vst [vmem:[#allocation33_spill] sm:$0xff] %v5114_v16  ;;  %v2335_v19 = vsel %vm2244_vm2, %v5114_v16, -inf  ;;  %v5121_v23 = vadd.f32 %v4078_v18, %v4960_v48 }
 0x2a6   : > { %v2085_v21 = vpop.f32.mrf.mxu0  ;;  %2336 = vmax.xlane.f32.xlu0 %v2335_v19 }
 0x2a7   : > { %6125 = vst [vmem:[#allocation34_spill] sm:$0xff] %v5121_v23  ;;  %v5124_v32 = vadd.f32 %v4960_v48, %v2085_v21  ;;  %v2344_v28 = vsel %vm2244_vm2, %v5121_v23, -inf }
 0x2a8   : > { %v4081_v26 = vpop.f32.mrf.mxu0  ;;  %2339 = vmax.xlane.f32.xlu1 %v2338_v24 }
 0x2a9   : > { %6126 = vst [vmem:[#allocation35_spill] sm:$0xff] %v5124_v32  ;;  %v2341_v40 = vsel %vm2244_vm2, %v5124_v32, -inf  ;;  %v5131_v30 = vadd.f32 %v4081_v26, %v4960_v48 }
 0x2aa   : > { %v2095_v27 = vpop.f32.mrf.mxu0  ;;  %2342 = vmax.xlane.f32.xlu0 %v2341_v40 }
 0x2ab   : > { %6127 = vst [vmem:[#allocation36_spill] sm:$0xff] %v5131_v30  ;;  %v5134_v31 = vadd.f32 %v4960_v48, %v2095_v27  ;;  %v2350_v15 = vsel %vm2244_vm2, %v5131_v30, -inf }
 0x2ac   : > { %v4084_v60 = vpop.f32.mrf.mxu0  ;;  %2345 = vmax.xlane.f32.xlu1 %v2344_v28 }
 0x2ad   : > { %6128 = vst [vmem:[#allocation37_spill] sm:$0xff] %v5134_v31  ;;  %v2347_v56 = vsel %vm2244_vm2, %v5134_v31, -inf  ;;  %v5141_v41 = vadd.f32 %v4084_v60, %v4960_v48 }
 0x2ae   : > { %v2105_v0 = vpop.f32.mrf.mxu0  ;;  %2348 = vmax.xlane.f32.xlu0 %v2347_v56 }
 0x2af   : > { %6129 = vst [vmem:[#allocation38_spill] sm:$0xff] %v5141_v41  ;;  %v5144_v42 = vadd.f32 %v4960_v48, %v2105_v0  ;;  %v2356_v59 = vsel %vm2244_vm2, %v5141_v41, -inf }
 0x2b0   : > { %v4087_v49 = vpop.f32.mrf.mxu0  ;;  %2351 = vmax.xlane.f32.xlu1 %v2350_v15 }
 0x2b1   : > { %6130 = vst [vmem:[#allocation39_spill] sm:$0xff] %v5144_v42  ;;  %v2353_v50 = vsel %vm2244_vm2, %v5144_v42, -inf  ;;  %v5151_v53 = vadd.f32 %v4087_v49, %v4960_v48 }
 0x2b2   : > { %v2115_v51 = vpop.f32.mrf.mxu0  ;;  %2354 = vmax.xlane.f32.xlu0 %v2353_v50 }
 0x2b3   : > { %6131 = vst [vmem:[#allocation40_spill] sm:$0xff] %v5151_v53  ;;  %v5154_v58 = vadd.f32 %v4960_v48, %v2115_v51  ;;  %v2362_v10 = vsel %vm2244_vm2, %v5151_v53, -inf }
 0x2b4   : > { %v4090_v61 = vpop.f32.mrf.mxu0  ;;  %2357 = vmax.xlane.f32.xlu1 %v2356_v59 }
 0x2b5   : > { %6132 = vst [vmem:[#allocation41_spill] sm:$0xff] %v5154_v58  ;;  %v2359_v1 = vsel %vm2244_vm2, %v5154_v58, -inf  ;;  %v5161_v8 = vadd.f32 %v4090_v61, %v4960_v48 }
 0x2b6   : > { %v2125_v4 = vpop.f32.mrf.mxu0  ;;  %2360 = vmax.xlane.f32.xlu0 %v2359_v1 }
 0x2b7   : > { %6133 = vst [vmem:[#allocation42_spill] sm:$0xff] %v5161_v8  ;;  %v5164_v9 = vadd.f32 %v4960_v48, %v2125_v4  ;;  %v2368_v26 = vsel %vm2244_vm2, %v5161_v8, -inf }
 0x2b8   : > { %v4093_v17 = vpop.f32.mrf.mxu0  ;;  %2363 = vmax.xlane.f32.xlu1 %v2362_v10 }
 0x2b9   : > { %6134 = vst [vmem:[#allocation43_spill] sm:$0xff] %v5164_v9  ;;  %v2365_v18 = vsel %vm2244_vm2, %v5164_v9, -inf  ;;  %v5171_v21 = vadd.f32 %v4093_v17, %v4960_v48 }
 0x2ba   : > { %v2135_v19 = vpop.f32.mrf.mxu0  ;;  %2366 = vmax.xlane.f32.xlu0 %v2365_v18 }
 0x2bb   : > { %6135 = vst [vmem:[#allocation44_spill] sm:$0xff] %v5171_v21  ;;  %v5174_v24 = vadd.f32 %v4960_v48, %v2135_v19  ;;  %v2374_v0 = vsel %vm2244_vm2, %v5171_v21, -inf }
 0x2bc   : > { %v4096_v40 = vpop.f32.mrf.mxu0  ;;  %2369 = vmax.xlane.f32.xlu1 %v2368_v26 }
 0x2bd   : > { %6136 = vst [vmem:[#allocation45_spill] sm:$0xff] %v5174_v24  ;;  %v2371_v27 = vsel %vm2244_vm2, %v5174_v24, -inf  ;;  %v5181_v60 = vadd.f32 %v4096_v40, %v4960_v48 }
 0x2be   : > { %v2145_v28 = vpop.f32.mrf.mxu0  ;;  %2372 = vmax.xlane.f32.xlu0 %v2371_v27 }
 0x2bf   : > { %6137 = vst [vmem:[#allocation46_spill] sm:$0xff] %v5181_v60  ;;  %v5184_v56 = vadd.f32 %v4960_v48, %v2145_v28  ;;  %v2380_v61 = vsel %vm2244_vm2, %v5181_v60, -inf }
 0x2c0   : > { %v4099_v15 = vpop.f32.mrf.mxu0  ;;  %2375 = vmax.xlane.f32.xlu1 %v2374_v0 }
 0x2c1   : > { %6138 = vst [vmem:[#allocation47_spill] sm:$0xff] %v5184_v56  ;;  %v2377_v49 = vsel %vm2244_vm2, %v5184_v56, -inf  ;;  %v5191_v51 = vadd.f32 %v4099_v15, %v4960_v48 }
 0x2c2   : > { %v2155_v50 = vpop.f32.mrf.mxu0  ;;  %2378 = vmax.xlane.f32.xlu0 %v2377_v49 }
 0x2c3   : > { %6139 = vst [vmem:[#allocation48_spill] sm:$0xff] %v5191_v51  ;;  %v5194_v59 = vadd.f32 %v4960_v48, %v2155_v50  ;;  %v2386_v19 = vsel %vm2244_vm2, %v5191_v51, -inf }
 0x2c4   : > { %v4102_v1 = vpop.f32.mrf.mxu0  ;;  %2381 = vmax.xlane.f32.xlu1 %v2380_v61 }
 0x2c5   : > { %6140 = vst [vmem:[#allocation49_spill] sm:$0xff] %v5194_v59  ;;  %v2383_v4 = vsel %vm2244_vm2, %v5194_v59, -inf  ;;  %v5201_v17 = vadd.f32 %v4102_v1, %v4960_v48 }
 0x2c6   : > { %v2165_v10 = vpop.f32.mrf.mxu0  ;;  %2384 = vmax.xlane.f32.xlu0 %v2383_v4 }
 0x2c7   : > { %6141 = vst [vmem:[#allocation50_spill] sm:$0xff] %v5201_v17  ;;  %v5204_v18 = vadd.f32 %v4960_v48, %v2165_v10  ;;  %v2392_v15 = vsel %vm2244_vm2, %v5201_v17, -inf }
 0x2c8   : > { %v4105_v26 = vpop.f32.mrf.mxu0  ;;  %2387 = vmax.xlane.f32.xlu1 %v2386_v19 }
 0x2c9   : > { %6142 = vst [vmem:[#allocation51_spill] sm:$0xff] %v5204_v18  ;;  %v2389_v40 = vsel %vm2244_vm2, %v5204_v18, -inf  ;;  %v5211_v28 = vadd.f32 %v4105_v26, %v4960_v48 }
 0x2ca   : > { %v2175_v27 = vpop.f32.mrf.mxu0  ;;  %2390 = vmax.xlane.f32.xlu0 %v2389_v40 }
 0x2cb   : > { %6143 = vst [vmem:[#allocation52_spill] sm:$0xff] %v5211_v28  ;;  %v5214_v0 = vadd.f32 %v4960_v48, %v2175_v27  ;;  %v2398_v10 = vsel %vm2244_vm2, %v5211_v28, -inf }
 0x2cc   : > { %v4108_v49 = vpop.f32.mrf.mxu0  ;;  %2393 = vmax.xlane.f32.xlu1 %v2392_v15 }
 0x2cd   : > { %6144 = vst [vmem:[#allocation53_spill] sm:$0xff] %v5214_v0  ;;  %v2395_v50 = vsel %vm2244_vm2, %v5214_v0, -inf  ;;  %v5221_v1 = vadd.f32 %v4108_v49, %v4960_v48 }
 0x2ce   : > { %v2185_v61 = vpop.f32.mrf.mxu0  ;;  %2396 = vmax.xlane.f32.xlu0 %v2395_v50 }
 0x2cf   : > { %6145 = vst [vmem:[#allocation54_spill] sm:$0xff] %v5221_v1  ;;  %v5224_v4 = vadd.f32 %v4960_v48, %v2185_v61  ;;  %v2404_v49 = vsel %vm2244_vm2, %v5221_v1, -inf }
 0x2d0   : > { %v4111_v19 = vpop.f32.mrf.mxu0  ;;  %2399 = vmax.xlane.f32.xlu1 %v2398_v10 }
 0x2d1   : > { %6146 = vst [vmem:[#allocation55_spill] sm:$0xff] %v5224_v4  ;;  %v2401_v26 = vsel %vm2244_vm2, %v5224_v4, -inf  ;;  %v5231_v27 = vadd.f32 %v4111_v19, %v4960_v48 }
 0x2d2   : > { %v2195_v40 = vpop.f32.mrf.mxu0  ;;  %2402 = vmax.xlane.f32.xlu0 %v2401_v26 }
 0x2d3   : > { %6147 = vst [vmem:[#allocation56_spill] sm:$0xff] %v5231_v27  ;;  %v5234_v15 = vadd.f32 %v4960_v48, %v2195_v40  ;;  %v2410_v19 = vsel %vm2244_vm2, %v5231_v27, -inf }
 0x2d4   : > { %v4114_v50 = vpop.f32.mrf.mxu0  ;;  %2405 = vmax.xlane.f32.xlu1 %v2404_v49 }
 0x2d5   : > { %6148 = vst [vmem:[#allocation57_spill] sm:$0xff] %v5234_v15  ;;  %v2407_v61 = vsel %vm2244_vm2, %v5234_v15, -inf  ;;  %v5241_v4 = vadd.f32 %v4114_v50, %v4960_v48 }
 0x2d6   : > { %v2205_v10 = vpop.f32.mrf.mxu0  ;;  %2408 = vmax.xlane.f32.xlu0 %v2407_v61 }
 0x2d7   : > { %6149 = vst [vmem:[#allocation58_spill] sm:$0xff] %v5241_v4  ;;  %v5244_v26 = vadd.f32 %v4960_v48, %v2205_v10  ;;  %v2416_v50 = vsel %vm2244_vm2, %v5241_v4, -inf }
 0x2d8   : > { %v4117_v40 = vpop.f32.mrf.mxu0  ;;  %2411 = vmax.xlane.f32.xlu1 %v2410_v19 }
 0x2d9   : > { %6150 = vst [vmem:[#allocation59_spill] sm:$0xff] %v5244_v26  ;;  %v2413_v1 = vsel %vm2244_vm2, %v5244_v26, -inf  ;;  %v5251_v15 = vadd.f32 %v4117_v40, %v4960_v48 }
 0x2da   : > { %v2215_v49 = vpop.f32.mrf.mxu0  ;;  %2414 = vmax.xlane.f32.xlu0 %v2413_v1 }
 0x2db   : > { %6151 = vst [vmem:[#allocation60_spill] sm:$0xff] %v5251_v15  ;;  %v5254_v61 = vadd.f32 %v4960_v48, %v2215_v49  ;;  %v2422_v40 = vsel %vm2244_vm2, %v5251_v15, -inf }
 0x2dc   : > { %v4120_v10 = vpop.f32.mrf.mxu0  ;;  %2417 = vmax.xlane.f32.xlu1 %v2416_v50 }
 0x2dd   : > { %6152 = vst [vmem:[#allocation61_spill] sm:$0xff] %v5254_v61  ;;  %v2419_v27 = vsel %vm2244_vm2, %v5254_v61, -inf  ;;  %v5261_v26 = vadd.f32 %v4120_v10, %v4960_v48 }
 0x2de   : > { %v2225_v19 = vpop.f32.mrf.mxu0  ;;  %2420 = vmax.xlane.f32.xlu0 %v2419_v27 }
 0x2df   : > { %6153 = vst [vmem:[#allocation62_spill] sm:$0xff] %v5261_v26  ;;  %v5264_v1 = vadd.f32 %v4960_v48, %v2225_v19  ;;  %v2428_v10 = vsel %vm2244_vm2, %v5261_v26, -inf }
 0x2e0   : > { %v4123_v49 = vpop.f32.mrf.mxu0  ;;  %2423 = vmax.xlane.f32.xlu1 %v2422_v40 }
 0x2e1   : > { %6154 = vst [vmem:[#allocation63_spill] sm:$0xff] %v5264_v1  ;;  %v2425_v4 = vsel %vm2244_vm2, %v5264_v1, -inf  ;;  %v5271_v61 = vadd.f32 %v4123_v49, %v4960_v48 }
 0x2e2   : > { %v2235_v50 = vpop.f32.mrf.mxu0  ;;  %2426 = vmax.xlane.f32.xlu0 %v2425_v4 }
 0x2e3   : > { %6155 = vst [vmem:[#allocation64_spill] sm:$0xff] %v5271_v61  ;;  %v5274_v27 = vadd.f32 %v4960_v48, %v2235_v50  ;;  %v2434_v40 = vsel %vm2244_vm2, %v5271_v61, -inf }
 0x2e4   : > { %2429 = vmax.xlane.f32.xlu1 %v2428_v10 }
 0x2e5   : > { %6156 = vst [vmem:[#allocation65_spill] sm:$0xff] %v5274_v27  ;;  %v2431_v19 = vsel %vm2244_vm2, %v5274_v27, -inf }
 0x2e6   : > { %2432 = vmax.xlane.f32.xlu0 %v2431_v19 }
 0x2e8   : > { %2435 = vmax.xlane.f32.xlu1 %v2434_v40 }
 0x2f1   : > { %v2250_v1 = vpop.xlane.xlu0 %2249 }
 0x2f2   : > { %v2438_v4 = vsub.f32 %v4963_v33, %v2250_v1 }
 0x2f4   : > { %v2503_v49 = vmul.f32 1.442695, %v2438_v4 }
 0x2f5   : > { %v2256_v15 = vpop.xlane.xlu1 %2255  ;;  %v2247_v28 = vpop.xlane.xlu0 %2246 }
 0x2f6   : > { %4141 = vpow2.f32 %v2503_v49  ;;  %v2440_v48 = vsub.f32 %v4971_v35, %v2256_v15  ;;  %v2437_v50 = vsub.f32 %v4966_v34, %v2247_v28 }
 0x2f8   : > { %v2507_v10 = vmul.f32 1.442695, %v2440_v48  ;;  %v2501_v26 = vmul.f32 1.442695, %v2437_v50 }
 0x2f9   : > { %v2253_v0 = vpop.xlane.xlu1 %2252 }
 0x2fa   : > { %4143 = vpow2.f32 %v2507_v10  ;;  %v2439_v19 = vsub.f32 %v4974_v39, %v2253_v0 }
 0x2fb   : > { %4145 = vpow2.f32 %v2501_v26  ;;  %v2259_v61 = vpop.xlane.xlu0 %2258 }
 0x2fc   : > { %v2505_v40 = vmul.f32 1.442695, %v2439_v19  ;;  %v2441_v27 = vsub.f32 %v4984_v22, %v2259_v61 }
 0x2fd   : > { %v2262_v1 = vpop.xlane.xlu1 %2261 }
 0x2fe   : > { %4147 = vpow2.f32 %v2505_v40  ;;  %v2509_v4 = vmul.f32 1.442695, %v2441_v27  ;;  %v2442_v49 = vsub.f32 %v4981_v43, %v2262_v1 }
 0x2ff   : > { %v2265_v33 = vpop.xlane.xlu0 %2264 }
 0x300   : > { %v2511_v15 = vmul.f32 1.442695, %v2442_v49  ;;  %v2443_v28 = vsub.f32 %v4994_v29, %v2265_v33  ;;  %4149 = vpow2.f32 %v2509_v4 }
 0x301   : > { %v2268_v48 = vpop.xlane.xlu1 %2267 }
 0x302   : > { %4151 = vpow2.f32 %v2511_v15  ;;  %v2513_v50 = vmul.f32 1.442695, %v2443_v28  ;;  %v2444_v0 = vsub.f32 %v4991_v38, %v2268_v48 }
 0x303   : > { %v5290_v26 = vpop.eup %4141  ;;  %v2271_v10 = vpop.xlane.xlu0 %2270 }
 0x304   : > { %v2515_v19 = vmul.f32 1.442695, %v2444_v0  ;;  %v2445_v61 = vsub.f32 %v5004_v47, %v2271_v10  ;;  %v2632_v27 = vsel %vm2244_vm2, %v5290_v26, 0.0  ;;  %4153 = vpow2.f32 %v2513_v50 }
 0x305   : > { %2633 = vadd.xlane.f32.xlu1 %v2632_v27  ;;  %v2274_v40 = vpop.xlane.xlu1 %2273 }
 0x306   : > { %4155 = vpow2.f32 %v2515_v19  ;;  %v2517_v33 = vmul.f32 1.442695, %v2445_v61  ;;  %v2446_v1 = vsub.f32 %v5001_v55, %v2274_v40 }
 0x307   : > { %v5296_v4 = vpop.eup %4143  ;;  %v2277_v49 = vpop.xlane.xlu0 %2276 }
 0x308   : > { %v5298_v15 = vpop.eup %4145  ;;  %v2519_v28 = vmul.f32 1.442695, %v2446_v1  ;;  %v2447_v48 = vsub.f32 %v5014_v63, %v2277_v49  ;;  %v2638_v0 = vsel %vm2244_vm2, %v5296_v4, 0.0  ;;  %4157 = vpow2.f32 %v2517_v33 }
 0x309   : > { %2639 = vadd.xlane.f32.xlu1 %v2638_v0  ;;  %v2280_v50 = vpop.xlane.xlu1 %2279  ;;  %v2629_v10 = vsel %vm2244_vm2, %v5298_v15, 0.0 }
 0x30a   : > { %4159 = vpow2.f32 %v2519_v28  ;;  %v2521_v19 = vmul.f32 1.442695, %v2447_v48  ;;  %v2448_v61 = vsub.f32 %v5011_v62, %v2280_v50  ;;  %2630 = vadd.xlane.f32.xlu0 %v2629_v10 }
 0x30b   : > { %v5306_v27 = vpop.eup %4147  ;;  %v2283_v40 = vpop.xlane.xlu0 %2282 }
 0x30c   : > { %v2523_v1 = vmul.f32 1.442695, %v2448_v61  ;;  %v2449_v49 = vsub.f32 %v5024_v6, %v2283_v40  ;;  %v2635_v63 = vsel %vm2244_vm2, %v5306_v27, 0.0  ;;  %4161 = vpow2.f32 %v2521_v19 }
 0x30d   : > { %v2286_v33 = vpop.xlane.xlu1 %2285  ;;  %v5311_v0 = vpop.eup %4149 }
 0x30e   : > { %4163 = vpow2.f32 %v2523_v1  ;;  %v2525_v55 = vmul.f32 1.442695, %v2449_v49  ;;  %v2450_v28 = vsub.f32 %v5021_v5, %v2286_v33  ;;  %2636 = vadd.xlane.f32.xlu0 %v2635_v63  ;;  %v2641_v6 = vsel %vm2244_vm2, %v5311_v0, 0.0 }
 0x30f   : > { %v5314_v48 = vpop.eup %4151  ;;  %v2289_v50 = vpop.xlane.xlu0 %2288 }
 0x310   : > { %v2527_v10 = vmul.f32 1.442695, %v2450_v28  ;;  %v2451_v61 = vsub.f32 %v5034_v14, %v2289_v50  ;;  %v2644_v40 = vsel %vm2244_vm2, %v5314_v48, 0.0  ;;  %4165 = vpow2.f32 %v2525_v55 }
 0x311   : > { %2645 = vadd.xlane.f32.xlu1 %v2644_v40  ;;  %v2292_v19 = vpop.xlane.xlu1 %2291  ;;  %v5321_v1 = vpop.eup %4153 }
 0x312   : > { %4167 = vpow2.f32 %v2527_v10  ;;  %v2529_v49 = vmul.f32 1.442695, %v2451_v61  ;;  %v2452_v63 = vsub.f32 %v5031_v13, %v2292_v19  ;;  %2642 = vadd.xlane.f32.xlu0 %v2641_v6  ;;  %v2647_v5 = vsel %vm2244_vm2, %v5321_v1, 0.0 }
 0x313   : > { %v5324_v33 = vpop.eup %4155  ;;  %v2295_v28 = vpop.xlane.xlu0 %2294 }
 0x314   : > { %v2531_v50 = vmul.f32 1.442695, %v2452_v63  ;;  %v2453_v14 = vsub.f32 %v5044_v36, %v2295_v28  ;;  %v2650_v55 = vsel %vm2244_vm2, %v5324_v33, 0.0  ;;  %4169 = vpow2.f32 %v2529_v49 }
 0x315   : > { %2651 = vadd.xlane.f32.xlu1 %v2650_v55  ;;  %v2298_v40 = vpop.xlane.xlu1 %2297  ;;  %v5331_v10 = vpop.eup %4157 }
 0x316   : > { %4171 = vpow2.f32 %v2531_v50  ;;  %v2533_v61 = vmul.f32 1.442695, %v2453_v14  ;;  %v2454_v6 = vsub.f32 %v5041_v20, %v2298_v40  ;;  %2648 = vadd.xlane.f32.xlu0 %v2647_v5  ;;  %v2653_v13 = vsel %vm2244_vm2, %v5331_v10, 0.0 }
 0x317   : > { %v5334_v19 = vpop.eup %4159  ;;  %v2301_v63 = vpop.xlane.xlu0 %2300 }
 0x318   : > { %v2535_v28 = vmul.f32 1.442695, %v2454_v6  ;;  %v2455_v36 = vsub.f32 %v5054_v44, %v2301_v63  ;;  %v2656_v49 = vsel %vm2244_vm2, %v5334_v19, 0.0  ;;  %4173 = vpow2.f32 %v2533_v61 }
 0x319   : > { %2657 = vadd.xlane.f32.xlu1 %v2656_v49  ;;  %v2304_v55 = vpop.xlane.xlu1 %2303  ;;  %v5341_v50 = vpop.eup %4161 }
 0x31a   : > { %4175 = vpow2.f32 %v2535_v28  ;;  %v2537_v14 = vmul.f32 1.442695, %v2455_v36  ;;  %v2456_v5 = vsub.f32 %v5051_v25, %v2304_v55  ;;  %2654 = vadd.xlane.f32.xlu0 %v2653_v13  ;;  %v2659_v20 = vsel %vm2244_vm2, %v5341_v50, 0.0 }
 0x31b   : > { %v5344_v40 = vpop.eup %4163  ;;  %v2307_v6 = vpop.xlane.xlu0 %2306 }
 0x31c   : > { %v2539_v63 = vmul.f32 1.442695, %v2456_v5  ;;  %v2457_v44 = vsub.f32 %v5064_v52, %v2307_v6  ;;  %v2662_v61 = vsel %vm2244_vm2, %v5344_v40, 0.0  ;;  %4177 = vpow2.f32 %v2537_v14 }
 0x31d   : > { %2663 = vadd.xlane.f32.xlu1 %v2662_v61  ;;  %v2310_v49 = vpop.xlane.xlu1 %2309  ;;  %v5351_v28 = vpop.eup %4165 }
 0x31e   : > { %4179 = vpow2.f32 %v2539_v63  ;;  %v2541_v36 = vmul.f32 1.442695, %v2457_v44  ;;  %v2458_v13 = vsub.f32 %v5061_v12, %v2310_v49  ;;  %2660 = vadd.xlane.f32.xlu0 %v2659_v20  ;;  %v2665_v25 = vsel %vm2244_vm2, %v5351_v28, 0.0 }
 0x31f   : > { %v5354_v55 = vpop.eup %4167  ;;  %v2313_v5 = vpop.xlane.xlu0 %2312 }
 0x320   : > { %v2543_v6 = vmul.f32 1.442695, %v2458_v13  ;;  %v2459_v52 = vsub.f32 %v5074_v7, %v2313_v5  ;;  %v2668_v14 = vsel %vm2244_vm2, %v5354_v55, 0.0  ;;  %4181 = vpow2.f32 %v2541_v36 }
 0x321   : > { %2669 = vadd.xlane.f32.xlu1 %v2668_v14  ;;  %v2316_v61 = vpop.xlane.xlu1 %2315  ;;  %v5361_v63 = vpop.eup %4169 }
 0x322   : > { %4183 = vpow2.f32 %v2543_v6  ;;  %v2545_v44 = vmul.f32 1.442695, %v2459_v52  ;;  %v2460_v20 = vsub.f32 %v5071_v37, %v2316_v61  ;;  %2666 = vadd.xlane.f32.xlu0 %v2665_v25  ;;  %v2671_v12 = vsel %vm2244_vm2, %v5361_v63, 0.0 }
 0x323   : > { %v5364_v49 = vpop.eup %4171  ;;  %v2319_v13 = vpop.xlane.xlu0 %2318 }
 0x324   : > { %v2547_v5 = vmul.f32 1.442695, %v2460_v20  ;;  %v2461_v7 = vsub.f32 %v5084_v46, %v2319_v13  ;;  %v2674_v36 = vsel %vm2244_vm2, %v5364_v49, 0.0  ;;  %4185 = vpow2.f32 %v2545_v44 }
 0x325   : > { %2675 = vadd.xlane.f32.xlu1 %v2674_v36  ;;  %v2322_v14 = vpop.xlane.xlu1 %2321  ;;  %v5371_v6 = vpop.eup %4173 }
 0x326   : > { %4187 = vpow2.f32 %v2547_v5  ;;  %v2549_v52 = vmul.f32 1.442695, %v2461_v7  ;;  %v2462_v25 = vsub.f32 %v5081_v45, %v2322_v14  ;;  %2672 = vadd.xlane.f32.xlu0 %v2671_v12  ;;  %v2677_v37 = vsel %vm2244_vm2, %v5371_v6, 0.0 }
 0x327   : > { %v5374_v61 = vpop.eup %4175  ;;  %v2325_v20 = vpop.xlane.xlu0 %2324 }
 0x328   : > { %v2551_v13 = vmul.f32 1.442695, %v2462_v25  ;;  %v2463_v46 = vsub.f32 %v5094_v57, %v2325_v20  ;;  %v2680_v44 = vsel %vm2244_vm2, %v5374_v61, 0.0  ;;  %4189 = vpow2.f32 %v2549_v52 }
 0x329   : > { %2681 = vadd.xlane.f32.xlu1 %v2680_v44  ;;  %v2328_v36 = vpop.xlane.xlu1 %2327  ;;  %v5381_v5 = vpop.eup %4177 }
 0x32a   : > { %4191 = vpow2.f32 %v2551_v13  ;;  %v2553_v7 = vmul.f32 1.442695, %v2463_v46  ;;  %v2464_v12 = vsub.f32 %v5091_v54, %v2328_v36  ;;  %2678 = vadd.xlane.f32.xlu0 %v2677_v37  ;;  %v2683_v45 = vsel %vm2244_vm2, %v5381_v5, 0.0 }
 0x32b   : > { %v5384_v14 = vpop.eup %4179  ;;  %v2331_v25 = vpop.xlane.xlu0 %2330 }
 0x32c   : > { %v2555_v20 = vmul.f32 1.442695, %v2464_v12  ;;  %v2465_v57 = vsub.f32 %v5104_v3, %v2331_v25  ;;  %v2686_v52 = vsel %vm2244_vm2, %v5384_v14, 0.0  ;;  %4193 = vpow2.f32 %v2553_v7 }
 0x32d   : > { %2687 = vadd.xlane.f32.xlu1 %v2686_v52  ;;  %v2334_v44 = vpop.xlane.xlu1 %2333  ;;  %v5391_v13 = vpop.eup %4181 }
 0x32e   : > { %4195 = vpow2.f32 %v2555_v20  ;;  %v2557_v46 = vmul.f32 1.442695, %v2465_v57  ;;  %v2466_v37 = vsub.f32 %v5101_v2, %v2334_v44  ;;  %2684 = vadd.xlane.f32.xlu0 %v2683_v45  ;;  %v2689_v54 = vsel %vm2244_vm2, %v5391_v13, 0.0 }
 0x32f   : > { %v5394_v36 = vpop.eup %4183  ;;  %v2337_v12 = vpop.xlane.xlu0 %2336 }
 0x330   : > { %v2559_v25 = vmul.f32 1.442695, %v2466_v37  ;;  %v2467_v3 = vsub.f32 %v5114_v16, %v2337_v12  ;;  %v2692_v7 = vsel %vm2244_vm2, %v5394_v36, 0.0  ;;  %4197 = vpow2.f32 %v2557_v46 }
 0x331   : > { %2693 = vadd.xlane.f32.xlu1 %v2692_v7  ;;  %v2340_v52 = vpop.xlane.xlu1 %2339  ;;  %v5401_v20 = vpop.eup %4185 }
 0x332   : > { %4199 = vpow2.f32 %v2559_v25  ;;  %v2561_v57 = vmul.f32 1.442695, %v2467_v3  ;;  %v2468_v45 = vsub.f32 %v5111_v11, %v2340_v52  ;;  %2690 = vadd.xlane.f32.xlu0 %v2689_v54  ;;  %v2695_v2 = vsel %vm2244_vm2, %v5401_v20, 0.0 }
 0x333   : > { %v5404_v44 = vpop.eup %4187  ;;  %v2343_v37 = vpop.xlane.xlu0 %2342 }
 0x334   : > { %v2563_v12 = vmul.f32 1.442695, %v2468_v45  ;;  %v2469_v16 = vsub.f32 %v5124_v32, %v2343_v37  ;;  %v2698_v46 = vsel %vm2244_vm2, %v5404_v44, 0.0  ;;  %4201 = vpow2.f32 %v2561_v57 }
 0x335   : > { %2699 = vadd.xlane.f32.xlu1 %v2698_v46  ;;  %v2346_v7 = vpop.xlane.xlu1 %2345  ;;  %v5411_v25 = vpop.eup %4189 }
 0x336   : > { %4203 = vpow2.f32 %v2563_v12  ;;  %v2565_v3 = vmul.f32 1.442695, %v2469_v16  ;;  %v2470_v54 = vsub.f32 %v5121_v23, %v2346_v7  ;;  %2696 = vadd.xlane.f32.xlu0 %v2695_v2  ;;  %v2701_v11 = vsel %vm2244_vm2, %v5411_v25, 0.0 }
 0x337   : > { %v5414_v52 = vpop.eup %4191  ;;  %v2349_v45 = vpop.xlane.xlu0 %2348 }
 0x338   : > { %v2567_v37 = vmul.f32 1.442695, %v2470_v54  ;;  %v2471_v32 = vsub.f32 %v5134_v31, %v2349_v45  ;;  %v2704_v57 = vsel %vm2244_vm2, %v5414_v52, 0.0  ;;  %4205 = vpow2.f32 %v2565_v3 }
 0x339   : > { %2705 = vadd.xlane.f32.xlu1 %v2704_v57  ;;  %v2352_v46 = vpop.xlane.xlu1 %2351  ;;  %v5421_v12 = vpop.eup %4193 }
 0x33a   : > { %4207 = vpow2.f32 %v2567_v37  ;;  %v2569_v16 = vmul.f32 1.442695, %v2471_v32  ;;  %v2472_v2 = vsub.f32 %v5131_v30, %v2352_v46  ;;  %2702 = vadd.xlane.f32.xlu0 %v2701_v11  ;;  %v2707_v23 = vsel %vm2244_vm2, %v5421_v12, 0.0 }
 0x33b   : > { %v5424_v7 = vpop.eup %4195  ;;  %v2355_v54 = vpop.xlane.xlu0 %2354 }
 0x33c   : > { %v2571_v45 = vmul.f32 1.442695, %v2472_v2  ;;  %v2473_v31 = vsub.f32 %v5144_v42, %v2355_v54  ;;  %v2710_v3 = vsel %vm2244_vm2, %v5424_v7, 0.0  ;;  %4209 = vpow2.f32 %v2569_v16 }
 0x33d   : > { %2711 = vadd.xlane.f32.xlu1 %v2710_v3  ;;  %v2358_v57 = vpop.xlane.xlu1 %2357  ;;  %v5431_v37 = vpop.eup %4197 }
 0x33e   : > { %4211 = vpow2.f32 %v2571_v45  ;;  %v2573_v32 = vmul.f32 1.442695, %v2473_v31  ;;  %v2474_v11 = vsub.f32 %v5141_v41, %v2358_v57  ;;  %2708 = vadd.xlane.f32.xlu0 %v2707_v23  ;;  %v2713_v30 = vsel %vm2244_vm2, %v5431_v37, 0.0 }
 0x33f   : > { %v5434_v46 = vpop.eup %4199  ;;  %v2361_v2 = vpop.xlane.xlu0 %2360 }
 0x340   : > { %v2575_v54 = vmul.f32 1.442695, %v2474_v11  ;;  %v2475_v42 = vsub.f32 %v5154_v58, %v2361_v2  ;;  %v2716_v16 = vsel %vm2244_vm2, %v5434_v46, 0.0  ;;  %4213 = vpow2.f32 %v2573_v32 }
 0x341   : > { %2717 = vadd.xlane.f32.xlu1 %v2716_v16  ;;  %v2364_v3 = vpop.xlane.xlu1 %2363  ;;  %v5441_v45 = vpop.eup %4201 }
 0x342   : > { %4215 = vpow2.f32 %v2575_v54  ;;  %v2577_v31 = vmul.f32 1.442695, %v2475_v42  ;;  %v2476_v23 = vsub.f32 %v5151_v53, %v2364_v3  ;;  %2714 = vadd.xlane.f32.xlu0 %v2713_v30  ;;  %v2719_v41 = vsel %vm2244_vm2, %v5441_v45, 0.0 }
 0x343   : > { %v5444_v57 = vpop.eup %4203  ;;  %v2367_v11 = vpop.xlane.xlu0 %2366 }
 0x344   : > { %v2579_v2 = vmul.f32 1.442695, %v2476_v23  ;;  %v2477_v58 = vsub.f32 %v5164_v9, %v2367_v11  ;;  %v2722_v32 = vsel %vm2244_vm2, %v5444_v57, 0.0  ;;  %4217 = vpow2.f32 %v2577_v31 }
 0x345   : > { %2723 = vadd.xlane.f32.xlu1 %v2722_v32  ;;  %v2370_v16 = vpop.xlane.xlu1 %2369  ;;  %v5451_v54 = vpop.eup %4205 }
 0x346   : > { %4219 = vpow2.f32 %v2579_v2  ;;  %v2581_v42 = vmul.f32 1.442695, %v2477_v58  ;;  %v2478_v30 = vsub.f32 %v5161_v8, %v2370_v16  ;;  %2720 = vadd.xlane.f32.xlu0 %v2719_v41  ;;  %v2725_v53 = vsel %vm2244_vm2, %v5451_v54, 0.0 }
 0x347   : > { %v5454_v3 = vpop.eup %4207  ;;  %v2373_v23 = vpop.xlane.xlu0 %2372 }
 0x348   : > { %v2583_v11 = vmul.f32 1.442695, %v2478_v30  ;;  %v2479_v9 = vsub.f32 %v5174_v24, %v2373_v23  ;;  %v2728_v31 = vsel %vm2244_vm2, %v5454_v3, 0.0  ;;  %4221 = vpow2.f32 %v2581_v42 }
 0x349   : > { %2729 = vadd.xlane.f32.xlu1 %v2728_v31  ;;  %v2376_v32 = vpop.xlane.xlu1 %2375  ;;  %v5461_v2 = vpop.eup %4209 }
 0x34a   : > { %4223 = vpow2.f32 %v2583_v11  ;;  %v2585_v58 = vmul.f32 1.442695, %v2479_v9  ;;  %v2480_v41 = vsub.f32 %v5171_v21, %v2376_v32  ;;  %2726 = vadd.xlane.f32.xlu0 %v2725_v53  ;;  %v2731_v8 = vsel %vm2244_vm2, %v5461_v2, 0.0 }
 0x34b   : > { %v5464_v16 = vpop.eup %4211  ;;  %v2379_v30 = vpop.xlane.xlu0 %2378 }
 0x34c   : > { %v2587_v23 = vmul.f32 1.442695, %v2480_v41  ;;  %v2481_v24 = vsub.f32 %v5184_v56, %v2379_v30  ;;  %v2734_v42 = vsel %vm2244_vm2, %v5464_v16, 0.0  ;;  %4225 = vpow2.f32 %v2585_v58 }
 0x34d   : > { %2735 = vadd.xlane.f32.xlu1 %v2734_v42  ;;  %v2382_v31 = vpop.xlane.xlu1 %2381  ;;  %v5471_v11 = vpop.eup %4213 }
 0x34e   : > { %4227 = vpow2.f32 %v2587_v23  ;;  %v2589_v9 = vmul.f32 1.442695, %v2481_v24  ;;  %v2482_v53 = vsub.f32 %v5181_v60, %v2382_v31  ;;  %2732 = vadd.xlane.f32.xlu0 %v2731_v8  ;;  %v2737_v21 = vsel %vm2244_vm2, %v5471_v11, 0.0 }
 0x34f   : > { %v5474_v32 = vpop.eup %4215  ;;  %v2385_v41 = vpop.xlane.xlu0 %2384 }
 0x350   : > { %v2591_v30 = vmul.f32 1.442695, %v2482_v53  ;;  %v2483_v56 = vsub.f32 %v5194_v59, %v2385_v41  ;;  %v2740_v58 = vsel %vm2244_vm2, %v5474_v32, 0.0  ;;  %4229 = vpow2.f32 %v2589_v9 }
 0x351   : > { %2741 = vadd.xlane.f32.xlu1 %v2740_v58  ;;  %v2388_v42 = vpop.xlane.xlu1 %2387  ;;  %v5481_v23 = vpop.eup %4217 }
 0x352   : > { %4231 = vpow2.f32 %v2591_v30  ;;  %v2593_v24 = vmul.f32 1.442695, %v2483_v56  ;;  %v2484_v8 = vsub.f32 %v5191_v51, %v2388_v42  ;;  %2738 = vadd.xlane.f32.xlu0 %v2737_v21  ;;  %v2743_v60 = vsel %vm2244_vm2, %v5481_v23, 0.0 }
 0x353   : > { %v5484_v31 = vpop.eup %4219  ;;  %v2391_v53 = vpop.xlane.xlu0 %2390 }
 0x354   : > { %v2595_v41 = vmul.f32 1.442695, %v2484_v8  ;;  %v2485_v59 = vsub.f32 %v5204_v18, %v2391_v53  ;;  %v2746_v9 = vsel %vm2244_vm2, %v5484_v31, 0.0  ;;  %4233 = vpow2.f32 %v2593_v24  ;;  %v6157_v18 = vld [vmem:[#allocation53_spill] sm:$0xff] }
 0x355   : > { %2747 = vadd.xlane.f32.xlu1 %v2746_v9  ;;  %v2394_v58 = vpop.xlane.xlu1 %2393  ;;  %v5491_v30 = vpop.eup %4221 }
 0x356   : > { %4235 = vpow2.f32 %v2595_v41  ;;  %v2597_v56 = vmul.f32 1.442695, %v2485_v59  ;;  %v2486_v21 = vsub.f32 %v5201_v17, %v2394_v58  ;;  %2744 = vadd.xlane.f32.xlu0 %v2743_v60  ;;  %v2749_v62 = vsel %vm2244_vm2, %v5491_v30, 0.0  ;;  %v6158_v60 = vld [vmem:[#allocation52_spill] sm:$0xff] }
 0x357   : > { %v5494_v42 = vpop.eup %4223  ;;  %v2397_v8 = vpop.xlane.xlu0 %2396 }
 0x358   : > { %v2599_v53 = vmul.f32 1.442695, %v2486_v21  ;;  %v2487_v51 = vsub.f32 %v6157_v18, %v2397_v8  ;;  %v2752_v24 = vsel %vm2244_vm2, %v5494_v42, 0.0  ;;  %4237 = vpow2.f32 %v2597_v56  ;;  %v6159_v18 = vld [vmem:[#allocation55_spill] sm:$0xff] }
 0x359   : > { %2753 = vadd.xlane.f32.xlu1 %v2752_v24  ;;  %v2400_v9 = vpop.xlane.xlu1 %2399  ;;  %v5501_v41 = vpop.eup %4225 }
 0x35a   : > { %4239 = vpow2.f32 %v2599_v53  ;;  %v2601_v59 = vmul.f32 1.442695, %v2487_v51  ;;  %v2488_v58 = vsub.f32 %v6158_v60, %v2400_v9  ;;  %2750 = vadd.xlane.f32.xlu0 %v2749_v62  ;;  %v2755_v38 = vsel %vm2244_vm2, %v5501_v41, 0.0  ;;  %v6160_v62 = vld [vmem:[#allocation54_spill] sm:$0xff] }
 0x35b   : > { %v5504_v17 = vpop.eup %4227  ;;  %v2403_v21 = vpop.xlane.xlu0 %2402 }
 0x35c   : > { %v2603_v8 = vmul.f32 1.442695, %v2488_v58  ;;  %v2489_v47 = vsub.f32 %v6159_v18, %v2403_v21  ;;  %v2758_v56 = vsel %vm2244_vm2, %v5504_v17, 0.0  ;;  %4241 = vpow2.f32 %v2601_v59  ;;  %v6161_v18 = vld [vmem:[#allocation57_spill] sm:$0xff] }
 0x35d   : > { %2759 = vadd.xlane.f32.xlu1 %v2758_v56  ;;  %v2406_v24 = vpop.xlane.xlu1 %2405  ;;  %v5511_v53 = vpop.eup %4229 }
 0x35e   : > { %4243 = vpow2.f32 %v2603_v8  ;;  %v2605_v51 = vmul.f32 1.442695, %v2489_v47  ;;  %v2490_v9 = vsub.f32 %v6160_v62, %v2406_v24  ;;  %2756 = vadd.xlane.f32.xlu0 %v2755_v38  ;;  %v2761_v43 = vsel %vm2244_vm2, %v5511_v53, 0.0  ;;  %v6163_v38 = vld [vmem:[#allocation56_spill] sm:$0xff] }
 0x35f   : > { %v5514_v60 = vpop.eup %4231  ;;  %v2409_v58 = vpop.xlane.xlu0 %2408 }
 0x360   : > { %v2607_v21 = vmul.f32 1.442695, %v2490_v9  ;;  %v2491_v29 = vsub.f32 %v6161_v18, %v2409_v58  ;;  %v2764_v59 = vsel %vm2244_vm2, %v5514_v60, 0.0  ;;  %4245 = vpow2.f32 %v2605_v51  ;;  %v6164_v18 = vld [vmem:[#allocation59_spill] sm:$0xff] }
 0x361   : > { %2765 = vadd.xlane.f32.xlu1 %v2764_v59  ;;  %v2412_v56 = vpop.xlane.xlu1 %2411  ;;  %v5521_v8 = vpop.eup %4233 }
 0x362   : > { %6162 = vst [vmem:[#allocation66_spill] sm:$0xff] %v5521_v8  ;;  %4247 = vpow2.f32 %v2607_v21  ;;  %v2609_v47 = vmul.f32 1.442695, %v2491_v29  ;;  %v2492_v24 = vsub.f32 %v6163_v38, %v2412_v56  ;;  %2762 = vadd.xlane.f32.xlu0 %v2761_v43  ;;  %v2767_v39 = vsel %vm2244_vm2, %v5521_v8, 0.0  ;;  %v6166_v43 = vld [vmem:[#allocation58_spill] sm:$0xff] }
 0x363   : > { %v5524_v62 = vpop.eup %4235  ;;  %v2415_v9 = vpop.xlane.xlu0 %2414 }
 0x364   : > { %v2611_v58 = vmul.f32 1.442695, %v2492_v24  ;;  %v2493_v22 = vsub.f32 %v6164_v18, %v2415_v9  ;;  %v2770_v51 = vsel %vm2244_vm2, %v5524_v62, 0.0  ;;  %4249 = vpow2.f32 %v2609_v47  ;;  %v6168_v18 = vld [vmem:[#allocation61_spill] sm:$0xff] }
 0x365   : > { %2771 = vadd.xlane.f32.xlu1 %v2770_v51  ;;  %v2418_v59 = vpop.xlane.xlu1 %2417  ;;  %v5531_v21 = vpop.eup %4237 }
 0x366   : > { %6165 = vst [vmem:[#allocation67_spill] sm:$0xff] %v5531_v21  ;;  %4251 = vpow2.f32 %v2611_v58  ;;  %v2613_v29 = vmul.f32 1.442695, %v2493_v22  ;;  %v2494_v56 = vsub.f32 %v6166_v43, %v2418_v59  ;;  %2768 = vadd.xlane.f32.xlu0 %v2767_v39  ;;  %v2773_v34 = vsel %vm2244_vm2, %v5531_v21, 0.0  ;;  %v6170_v39 = vld [vmem:[#allocation60_spill] sm:$0xff] }
 0x367   : > { %v5534_v38 = vpop.eup %4239  ;;  %v2421_v24 = vpop.xlane.xlu0 %2420 }
 0x368   : > { %6167 = vst [vmem:[#allocation68_spill] sm:$0xff] %v5534_v38  ;;  %v2615_v9 = vmul.f32 1.442695, %v2494_v56  ;;  %v2495_v35 = vsub.f32 %v6168_v18, %v2421_v24  ;;  %v2776_v47 = vsel %vm2244_vm2, %v5534_v38, 0.0  ;;  %4253 = vpow2.f32 %v2613_v29  ;;  %v6171_v18 = vld [vmem:[#allocation63_spill] sm:$0xff] }
 0x369   : > { %2777 = vadd.xlane.f32.xlu1 %v2776_v47  ;;  %v2424_v51 = vpop.xlane.xlu1 %2423  ;;  %v5541_v58 = vpop.eup %4241 }
 0x36a   : > { %6169 = vst [vmem:[#allocation69_spill] sm:$0xff] %v5541_v58  ;;  %4255 = vpow2.f32 %v2615_v9  ;;  %v2617_v22 = vmul.f32 1.442695, %v2495_v35  ;;  %v2496_v59 = vsub.f32 %v6170_v39, %v2424_v51  ;;  %2774 = vadd.xlane.f32.xlu0 %v2773_v34  ;;  %v2779_v21 = vsel %vm2244_vm2, %v5541_v58, 0.0  ;;  %v6172_v34 = vld [vmem:[#allocation62_spill] sm:$0xff] }
 0x36b   : > { %v5544_v43 = vpop.eup %4243  ;;  %v2427_v56 = vpop.xlane.xlu0 %2426 }
 0x36c   : > { %v2619_v24 = vmul.f32 1.442695, %v2496_v59  ;;  %v2497_v8 = vsub.f32 %v6171_v18, %v2427_v56  ;;  %v2782_v29 = vsel %vm2244_vm2, %v5544_v43, 0.0  ;;  %4257 = vpow2.f32 %v2617_v22  ;;  %v6173_v18 = vld [vmem:[#allocation65_spill] sm:$0xff] }
 0x36d   : > { %2783 = vadd.xlane.f32.xlu1 %v2782_v29  ;;  %v2430_v47 = vpop.xlane.xlu1 %2429  ;;  %v5551_v9 = vpop.eup %4245 }
 0x36e   : > { %4259 = vpow2.f32 %v2619_v24  ;;  %v2621_v35 = vmul.f32 1.442695, %v2497_v8  ;;  %v2498_v51 = vsub.f32 %v6172_v34, %v2430_v47  ;;  %2780 = vadd.xlane.f32.xlu0 %v2779_v21  ;;  %v2785_v58 = vsel %vm2244_vm2, %v5551_v9, 0.0  ;;  %v6174_v21 = vld [vmem:[#allocation64_spill] sm:$0xff] }
 0x36f   : > { %v5554_v39 = vpop.eup %4247  ;;  %v2433_v59 = vpop.xlane.xlu0 %2432 }
 0x370   : > { %v2623_v56 = vmul.f32 1.442695, %v2498_v51  ;;  %v2499_v38 = vsub.f32 %v6173_v18, %v2433_v59  ;;  %v2788_v22 = vsel %vm2244_vm2, %v5554_v39, 0.0  ;;  %4261 = vpow2.f32 %v2621_v35 }
 0x371   : > { %2789 = vadd.xlane.f32.xlu1 %v2788_v22  ;;  %v2436_v29 = vpop.xlane.xlu1 %2435  ;;  %v5561_v24 = vpop.eup %4249 }
 0x372   : > { %4263 = vpow2.f32 %v2623_v56  ;;  %v2625_v8 = vmul.f32 1.442695, %v2499_v38  ;;  %v2500_v47 = vsub.f32 %v6174_v21, %v2436_v29  ;;  %2786 = vadd.xlane.f32.xlu0 %v2785_v58  ;;  %v2791_v35 = vsel %vm2244_vm2, %v5561_v24, 0.0 }
 0x373   : > { %v5564_v34 = vpop.eup %4251 }
 0x374   : > { %v2627_v51 = vmul.f32 1.442695, %v2500_v47  ;;  %v2794_v59 = vsel %vm2244_vm2, %v5564_v34, 0.0  ;;  %4265 = vpow2.f32 %v2625_v8 }
 0x375   : > { %2795 = vadd.xlane.f32.xlu1 %v2794_v59  ;;  %v5570_v22 = vpop.eup %4253 }
 0x376   : > { %6175 = vst [vmem:[#allocation70_spill] sm:$0xff] %v5570_v22  ;;  %4267 = vpow2.f32 %v2627_v51  ;;  %2792 = vadd.xlane.f32.xlu0 %v2791_v35  ;;  %v2797_v58 = vsel %vm2244_vm2, %v5570_v22, 0.0 }
 0x377   : > { %v5572_v56 = vpop.eup %4255 }
 0x378   : > { %6176 = vst [vmem:[#allocation71_spill] sm:$0xff] %v5572_v56  ;;  %v2800_v38 = vsel %vm2244_vm2, %v5572_v56, 0.0 }
 0x379   : > { %2801 = vadd.xlane.f32.xlu1 %v2800_v38  ;;  %v5578_v29 = vpop.eup %4257 }
 0x37a   : > { %6177 = vst [vmem:[#allocation72_spill] sm:$0xff] %v5578_v29  ;;  %2798 = vadd.xlane.f32.xlu0 %v2797_v58  ;;  %v2803_v51 = vsel %vm2244_vm2, %v5578_v29, 0.0 }
 0x37b   : > { %v5580_v8 = vpop.eup %4259 }
 0x37c   : > { %6178 = vst [vmem:[#allocation73_spill] sm:$0xff] %v5580_v8  ;;  %v2806_v47 = vsel %vm2244_vm2, %v5580_v8, 0.0 }
 0x37d   : > { %2807 = vadd.xlane.f32.xlu1 %v2806_v47  ;;  %v5586_v59 = vpop.eup %4261 }
 0x37e   : > { %6179 = vst [vmem:[#allocation74_spill] sm:$0xff] %v5586_v59  ;;  %2804 = vadd.xlane.f32.xlu0 %v2803_v51  ;;  %v2809_v58 = vsel %vm2244_vm2, %v5586_v59, 0.0 }
 0x37f   : > { %v5588_v35 = vpop.eup %4263 }
 0x380   : > { %6180 = vst [vmem:[#allocation75_spill] sm:$0xff] %v5588_v35  ;;  %v2812_v38 = vsel %vm2244_vm2, %v5588_v35, 0.0 }
 0x381   : > { %2813 = vadd.xlane.f32.xlu1 %v2812_v38  ;;  %v5594_v21 = vpop.eup %4265 }
 0x382   : > { %2810 = vadd.xlane.f32.xlu0 %v2809_v58  ;;  %v2815_v51 = vsel %vm2244_vm2, %v5594_v21, 0.0 }
 0x383   : > { %v5596_v18 = vpop.eup %4267 }
 0x384   : > { %6181 = vst [vmem:[#allocation76_spill] sm:$0xff] %v5596_v18  ;;  %v2818_v47 = vsel %vm2244_vm2, %v5596_v18, 0.0 }
 0x385   : > { %2819 = vadd.xlane.f32.xlu1 %v2818_v47 }
 0x386   : > { %2816 = vadd.xlane.f32.xlu0 %v2815_v51 }
 0x38e   : > { %v2634_v29 = vpop.xlane.xlu1 %2633 }
 0x38f   : > { %4269 = vrcp.f32 %v2634_v29 }
 0x392   : > { %v2640_v35 = vpop.xlane.xlu1 %2639 }
 0x393   : > { %4271 = vrcp.f32 %v2640_v35  ;;  %v2631_v38 = vpop.xlane.xlu0 %2630 }
 0x394   : > { %4273 = vrcp.f32 %v2631_v38 }
 0x397   : > { %v2637_v59 = vpop.xlane.xlu0 %2636 }
 0x398   : > { %4275 = vrcp.f32 %v2637_v59 }
 0x39a   : > { %v2646_v8 = vpop.xlane.xlu1 %2645 }
 0x39b   : > { %4277 = vrcp.f32 %v2646_v8  ;;  %v2643_v58 = vpop.xlane.xlu0 %2642 }
 0x39c   : > { %v4270_v22 = vpop.eup %4269  ;;  %4279 = vrcp.f32 %v2643_v58 }
 0x39d   : > { %v2886_v18 = vmul.f32 %v4270_v22, %v5290_v26 }
 0x39e   : > { %v2652_v47 = vpop.xlane.xlu1 %2651 }
 0x39f   : > { %4281 = vrcp.f32 %v2652_v47  ;;  %v2649_v56 = vpop.xlane.xlu0 %2648  ;;  %3015 = vrot.lane.b32.xlu1 %v2886_v18, %s4405_s27 }
 0x3a0   : > { %v4272_v29 = vpop.eup %4271  ;;  %4283 = vrcp.f32 %v2649_v56 }
 0x3a1   : > { %v4274_v35 = vpop.eup %4273  ;;  %v2888_v51 = vmul.f32 %v4272_v29, %v5296_v4 }
 0x3a2   : > { %v2658_v38 = vpop.xlane.xlu1 %2657  ;;  %v2885_v59 = vmul.f32 %v4274_v35, %v5298_v15 }
 0x3a3   : > { %4285 = vrcp.f32 %v2658_v38  ;;  %v2655_v8 = vpop.xlane.xlu0 %2654  ;;  %3019 = vrot.lane.b32.xlu1 %v2888_v51, %s4405_s27 }
 0x3a4   : > { %4287 = vrcp.f32 %v2655_v8  ;;  %3013 = vrot.lane.b32.xlu0 %v2885_v59, %s4405_s27 }
 0x3a5   : > { %v4276_v26 = vpop.eup %4275 }
 0x3a6   : > { %v2664_v22 = vpop.xlane.xlu1 %2663  ;;  %v2887_v58 = vmul.f32 %v4276_v26, %v5306_v27 }
 0x3a7   : > { %4289 = vrcp.f32 %v2664_v22  ;;  %v2661_v18 = vpop.xlane.xlu0 %2660 }
 0x3a8   : > { %v4278_v56 = vpop.eup %4277  ;;  %4291 = vrcp.f32 %v2661_v18  ;;  %3017 = vrot.lane.b32.xlu1 %v2887_v58, %s4405_s27 }
 0x3a9   : > { %v4280_v4 = vpop.eup %4279  ;;  %v2890_v15 = vmul.f32 %v4278_v56, %v5314_v48 }
 0x3aa   : > { %v2670_v47 = vpop.xlane.xlu1 %2669  ;;  %v2889_v29 = vmul.f32 %v4280_v4, %v5311_v0 }
 0x3ab   : > { %4293 = vrcp.f32 %v2670_v47  ;;  %v2667_v35 = vpop.xlane.xlu0 %2666 }
 0x3ac   : > { %v4282_v51 = vpop.eup %4281  ;;  %4295 = vrcp.f32 %v2667_v35  ;;  %3023 = vrot.lane.b32.xlu1 %v2890_v15, %s4405_s27  ;;  %3021 = vrot.lane.b32.xlu0 %v2889_v29, %s4405_s27 }
 0x3ad   : > { %v4284_v27 = vpop.eup %4283  ;;  %v2892_v38 = vmul.f32 %v4282_v51, %v5324_v33 }
 0x3ae   : > { %v2676_v59 = vpop.xlane.xlu1 %2675  ;;  %v2891_v8 = vmul.f32 %v4284_v27, %v5321_v1 }
 0x3af   : > { %4297 = vrcp.f32 %v2676_v59  ;;  %v2673_v26 = vpop.xlane.xlu0 %2672 }
 0x3b0   : > { %v4286_v48 = vpop.eup %4285  ;;  %4299 = vrcp.f32 %v2673_v26  ;;  %3027 = vrot.lane.b32.xlu1 %v2892_v38, %s4405_s27  ;;  %3025 = vrot.lane.b32.xlu0 %v2891_v8, %s4405_s27 }
 0x3b1   : > { %v4288_v0 = vpop.eup %4287  ;;  %v2894_v22 = vmul.f32 %v4286_v48, %v5334_v19 }
 0x3b2   : > { %v2682_v58 = vpop.xlane.xlu1 %2681  ;;  %v2893_v18 = vmul.f32 %v4288_v0, %v5331_v10 }
 0x3b3   : > { %4301 = vrcp.f32 %v2682_v58  ;;  %v2679_v56 = vpop.xlane.xlu0 %2678 }
 0x3b4   : > { %v4290_v33 = vpop.eup %4289  ;;  %4303 = vrcp.f32 %v2679_v56  ;;  %3031 = vrot.lane.b32.xlu1 %v2894_v22, %s4405_s27  ;;  %3029 = vrot.lane.b32.xlu0 %v2893_v18, %s4405_s27 }
 0x3b5   : > { %v4292_v1 = vpop.eup %4291  ;;  %v2896_v4 = vmul.f32 %v4290_v33, %v5344_v40 }
 0x3b6   : > { %v2688_v15 = vpop.xlane.xlu1 %2687  ;;  %v2895_v47 = vmul.f32 %v4292_v1, %v5341_v50 }
 0x3b7   : > { %4305 = vrcp.f32 %v2688_v15  ;;  %v2685_v29 = vpop.xlane.xlu0 %2684 }
 0x3b8   : > { %v4294_v19 = vpop.eup %4293  ;;  %4307 = vrcp.f32 %v2685_v29  ;;  %3035 = vrot.lane.b32.xlu1 %v2896_v4, %s4405_s27  ;;  %3033 = vrot.lane.b32.xlu0 %v2895_v47, %s4405_s27 }
 0x3b9   : > { %v4296_v10 = vpop.eup %4295  ;;  %v2898_v35 = vmul.f32 %v4294_v19, %v5354_v55 }
 0x3ba   : > { %v2694_v51 = vpop.xlane.xlu1 %2693  ;;  %v2897_v27 = vmul.f32 %v4296_v10, %v5351_v28 }
 0x3bb   : > { %4309 = vrcp.f32 %v2694_v51  ;;  %v2691_v38 = vpop.xlane.xlu0 %2690 }
 0x3bc   : > { %v4298_v40 = vpop.eup %4297  ;;  %4311 = vrcp.f32 %v2691_v38  ;;  %3039 = vrot.lane.b32.xlu1 %v2898_v35, %s4405_s27  ;;  %3037 = vrot.lane.b32.xlu0 %v2897_v27, %s4405_s27 }
 0x3bd   : > { %v4300_v50 = vpop.eup %4299  ;;  %v2900_v59 = vmul.f32 %v4298_v40, %v5364_v49 }
 0x3be   : > { %v2700_v8 = vpop.xlane.xlu1 %2699  ;;  %v2899_v26 = vmul.f32 %v4300_v50, %v5361_v63 }
 0x3bf   : > { %4313 = vrcp.f32 %v2700_v8  ;;  %v2697_v48 = vpop.xlane.xlu0 %2696 }
 0x3c0   : > { %v4302_v55 = vpop.eup %4301  ;;  %4315 = vrcp.f32 %v2697_v48  ;;  %3043 = vrot.lane.b32.xlu1 %v2900_v59, %s4405_s27  ;;  %3041 = vrot.lane.b32.xlu0 %v2899_v26, %s4405_s27 }
 0x3c1   : > { %v4304_v28 = vpop.eup %4303  ;;  %v2902_v0 = vmul.f32 %v4302_v55, %v5374_v61 }
 0x3c2   : > { %v2706_v22 = vpop.xlane.xlu1 %2705  ;;  %v2901_v58 = vmul.f32 %v4304_v28, %v5371_v6 }
 0x3c3   : > { %4317 = vrcp.f32 %v2706_v22  ;;  %v2703_v18 = vpop.xlane.xlu0 %2702 }
 0x3c4   : > { %v4306_v49 = vpop.eup %4305  ;;  %4319 = vrcp.f32 %v2703_v18  ;;  %3047 = vrot.lane.b32.xlu1 %v2902_v0, %s4405_s27  ;;  %3045 = vrot.lane.b32.xlu0 %v2901_v58, %s4405_s27 }
 0x3c5   : > { %v4308_v63 = vpop.eup %4307  ;;  %v2904_v56 = vmul.f32 %v4306_v49, %v5384_v14 }
 0x3c6   : > { %v2712_v33 = vpop.xlane.xlu1 %2711  ;;  %v2903_v1 = vmul.f32 %v4308_v63, %v5381_v5 }
 0x3c7   : > { %4321 = vrcp.f32 %v2712_v33  ;;  %v2709_v4 = vpop.xlane.xlu0 %2708 }
 0x3c8   : > { %v4310_v61 = vpop.eup %4309  ;;  %4323 = vrcp.f32 %v2709_v4  ;;  %3051 = vrot.lane.b32.xlu1 %v2904_v56, %s4405_s27  ;;  %3049 = vrot.lane.b32.xlu0 %v2903_v1, %s4405_s27 }
 0x3c9   : > { %v4312_v6 = vpop.eup %4311  ;;  %v2906_v15 = vmul.f32 %v4310_v61, %v5394_v36 }
 0x3ca   : > { %v2718_v47 = vpop.xlane.xlu1 %2717  ;;  %v2905_v29 = vmul.f32 %v4312_v6, %v5391_v13 }
 0x3cb   : > { %4325 = vrcp.f32 %v2718_v47  ;;  %v2715_v19 = vpop.xlane.xlu0 %2714 }
 0x3cc   : > { %v4314_v14 = vpop.eup %4313  ;;  %4327 = vrcp.f32 %v2715_v19  ;;  %3055 = vrot.lane.b32.xlu1 %v2906_v15, %s4405_s27  ;;  %3053 = vrot.lane.b32.xlu0 %v2905_v29, %s4405_s27 }
 0x3cd   : > { %v4316_v5 = vpop.eup %4315  ;;  %v2908_v10 = vmul.f32 %v4314_v14, %v5404_v44 }
 0x3ce   : > { %v2724_v35 = vpop.xlane.xlu1 %2723  ;;  %v2907_v51 = vmul.f32 %v4316_v5, %v5401_v20 }
 0x3cf   : > { %4329 = vrcp.f32 %v2724_v35  ;;  %v2721_v27 = vpop.xlane.xlu0 %2720 }
 0x3d0   : > { %v4318_v36 = vpop.eup %4317  ;;  %4331 = vrcp.f32 %v2721_v27  ;;  %3059 = vrot.lane.b32.xlu1 %v2908_v10, %s4405_s27  ;;  %3057 = vrot.lane.b32.xlu0 %v2907_v51, %s4405_s27 }
 0x3d1   : > { %v4320_v13 = vpop.eup %4319  ;;  %v2910_v38 = vmul.f32 %v4318_v36, %v5414_v52 }
 0x3d2   : > { %v2730_v40 = vpop.xlane.xlu1 %2729  ;;  %v2909_v50 = vmul.f32 %v4320_v13, %v5411_v25 }
 0x3d3   : > { %4333 = vrcp.f32 %v2730_v40  ;;  %v2727_v59 = vpop.xlane.xlu0 %2726 }
 0x3d4   : > { %v4322_v44 = vpop.eup %4321  ;;  %4335 = vrcp.f32 %v2727_v59  ;;  %3063 = vrot.lane.b32.xlu1 %v2910_v38, %s4405_s27  ;;  %3061 = vrot.lane.b32.xlu0 %v2909_v50, %s4405_s27 }
 0x3d5   : > { %v4324_v20 = vpop.eup %4323  ;;  %v2912_v8 = vmul.f32 %v4322_v44, %v5424_v7 }
 0x3d6   : > { %v2736_v26 = vpop.xlane.xlu1 %2735  ;;  %v2911_v48 = vmul.f32 %v4324_v20, %v5421_v12 }
 0x3d7   : > { %4337 = vrcp.f32 %v2736_v26  ;;  %v2733_v55 = vpop.xlane.xlu0 %2732 }
 0x3d8   : > { %v4326_v52 = vpop.eup %4325  ;;  %4339 = vrcp.f32 %v2733_v55  ;;  %3067 = vrot.lane.b32.xlu1 %v2912_v8, %s4405_s27  ;;  %3065 = vrot.lane.b32.xlu0 %v2911_v48, %s4405_s27 }
 0x3d9   : > { %v4328_v25 = vpop.eup %4327  ;;  %v2914_v28 = vmul.f32 %v4326_v52, %v5434_v46 }
 0x3da   : > { %v2742_v0 = vpop.xlane.xlu1 %2741  ;;  %v2913_v22 = vmul.f32 %v4328_v25, %v5431_v37 }
 0x3db   : > { %4341 = vrcp.f32 %v2742_v0  ;;  %v2739_v58 = vpop.xlane.xlu0 %2738  ;;  %v6182_v0 = vld [vmem:[#allocation66_spill] sm:$0xff] }
 0x3dc   : > { %v4330_v7 = vpop.eup %4329  ;;  %4343 = vrcp.f32 %v2739_v58  ;;  %3071 = vrot.lane.b32.xlu1 %v2914_v28, %s4405_s27  ;;  %3069 = vrot.lane.b32.xlu0 %v2913_v22, %s4405_s27 }
 0x3dd   : > { %v4332_v12 = vpop.eup %4331  ;;  %v2916_v18 = vmul.f32 %v4330_v7, %v5444_v57  ;;  %v6183_v7 = vld [vmem:[#allocation68_spill] sm:$0xff] }
 0x3de   : > { %v2748_v49 = vpop.xlane.xlu1 %2747  ;;  %v2915_v63 = vmul.f32 %v4332_v12, %v5441_v45 }
 0x3df   : > { %4345 = vrcp.f32 %v2748_v49  ;;  %v2745_v56 = vpop.xlane.xlu0 %2744  ;;  %v6184_v49 = vld [vmem:[#allocation67_spill] sm:$0xff] }
 0x3e0   : > { %v4334_v46 = vpop.eup %4333  ;;  %4347 = vrcp.f32 %v2745_v56  ;;  %3075 = vrot.lane.b32.xlu1 %v2916_v18, %s4405_s27  ;;  %3073 = vrot.lane.b32.xlu0 %v2915_v63, %s4405_s27 }
 0x3e1   : > { %v4336_v37 = vpop.eup %4335  ;;  %v2918_v33 = vmul.f32 %v4334_v46, %v5454_v3 }
 0x3e2   : > { %v2754_v1 = vpop.xlane.xlu1 %2753  ;;  %v2917_v4 = vmul.f32 %v4336_v37, %v5451_v54 }
 0x3e3   : > { %4349 = vrcp.f32 %v2754_v1  ;;  %v2751_v61 = vpop.xlane.xlu0 %2750  ;;  %v6185_v1 = vld [vmem:[#allocation69_spill] sm:$0xff] }
 0x3e4   : > { %v4338_v57 = vpop.eup %4337  ;;  %4351 = vrcp.f32 %v2751_v61  ;;  %3079 = vrot.lane.b32.xlu1 %v2918_v33, %s4405_s27  ;;  %3077 = vrot.lane.b32.xlu0 %v2917_v4, %s4405_s27 }
 0x3e5   : > { %v4340_v45 = vpop.eup %4339  ;;  %v2920_v6 = vmul.f32 %v4338_v57, %v5464_v16 }
 0x3e6   : > { %v2760_v15 = vpop.xlane.xlu1 %2759  ;;  %v2919_v47 = vmul.f32 %v4340_v45, %v5461_v2 }
 0x3e7   : > { %4353 = vrcp.f32 %v2760_v15  ;;  %v2757_v29 = vpop.xlane.xlu0 %2756 }
 0x3e8   : > { %v4342_v3 = vpop.eup %4341  ;;  %4355 = vrcp.f32 %v2757_v29  ;;  %3083 = vrot.lane.b32.xlu1 %v2920_v6, %s4405_s27  ;;  %3081 = vrot.lane.b32.xlu0 %v2919_v47, %s4405_s27 }
 0x3e9   : > { %v4344_v54 = vpop.eup %4343  ;;  %v2922_v19 = vmul.f32 %v4342_v3, %v5474_v32 }
 0x3ea   : > { %v2766_v14 = vpop.xlane.xlu1 %2765  ;;  %v2921_v5 = vmul.f32 %v4344_v54, %v5471_v11 }
 0x3eb   : > { %4357 = vrcp.f32 %v2766_v14  ;;  %v2763_v10 = vpop.xlane.xlu0 %2762 }
 0x3ec   : > { %v4346_v16 = vpop.eup %4345  ;;  %4359 = vrcp.f32 %v2763_v10  ;;  %3087 = vrot.lane.b32.xlu1 %v2922_v19, %s4405_s27  ;;  %3085 = vrot.lane.b32.xlu0 %v2921_v5, %s4405_s27 }
 0x3ed   : > { %v4348_v2 = vpop.eup %4347  ;;  %v2924_v35 = vmul.f32 %v4346_v16, %v5484_v31  ;;  %v6187_v16 = vld [vmem:[#allocation70_spill] sm:$0xff] }
 0x3ee   : > { %v2772_v51 = vpop.xlane.xlu1 %2771  ;;  %v2923_v27 = vmul.f32 %v4348_v2, %v5481_v23 }
 0x3ef   : > { %4361 = vrcp.f32 %v2772_v51  ;;  %v2769_v36 = vpop.xlane.xlu0 %2768 }
 0x3f0   : > { %v4350_v32 = vpop.eup %4349  ;;  %4363 = vrcp.f32 %v2769_v36  ;;  %3091 = vrot.lane.b32.xlu1 %v2924_v35, %s4405_s27  ;;  %3089 = vrot.lane.b32.xlu0 %v2923_v27, %s4405_s27  ;;  %v6188_v35 = vld [vmem:[#allocation2_spill] sm:$0xff] }
 0x3f1   : > { %v4352_v11 = vpop.eup %4351  ;;  %v2926_v13 = vmul.f32 %v4350_v32, %v5494_v42  ;;  %v6189_v32 = vld [vmem:[#allocation73_spill] sm:$0xff] }
 0x3f2   : > { %v2778_v38 = vpop.xlane.xlu1 %2777  ;;  %v2925_v40 = vmul.f32 %v4352_v11, %v5491_v30 }
 0x3f3   : > { %4365 = vrcp.f32 %v2778_v38  ;;  %v2775_v50 = vpop.xlane.xlu0 %2774 }
 0x3f4   : > { %v4354_v31 = vpop.eup %4353  ;;  %4367 = vrcp.f32 %v2775_v50  ;;  %3095 = vrot.lane.b32.xlu1 %v2926_v13, %s4405_s27  ;;  %3093 = vrot.lane.b32.xlu0 %v2925_v40, %s4405_s27  ;;  %v6190_v40 = vld [vmem:[#allocation72_spill] sm:$0xff] }
 0x3f5   : > { %v4356_v23 = vpop.eup %4355  ;;  %v2928_v59 = vmul.f32 %v4354_v31, %v5504_v17  ;;  %v6191_v31 = vld [vmem:[#allocation3_spill] sm:$0xff] }
 0x3f6   : > { %v2784_v44 = vpop.xlane.xlu1 %2783  ;;  %v2927_v20 = vmul.f32 %v4356_v23, %v5501_v41 }
 0x3f7   : > { %4369 = vrcp.f32 %v2784_v44  ;;  %v2781_v8 = vpop.xlane.xlu0 %2780 }
 0x3f8   : > { %v4358_v42 = vpop.eup %4357  ;;  %4371 = vrcp.f32 %v2781_v8  ;;  %3099 = vrot.lane.b32.xlu1 %v2928_v59, %s4405_s27  ;;  %3097 = vrot.lane.b32.xlu0 %v2927_v20, %s4405_s27  ;;  %v6192_v59 = vld [vmem:[#allocation4_spill] sm:$0xff] }
 0x3f9   : > { %v4360_v30 = vpop.eup %4359  ;;  %v2930_v26 = vmul.f32 %v4358_v42, %v5514_v60  ;;  %v6193_v42 = vld [vmem:[#allocation75_spill] sm:$0xff] }
 0x3fa   : > { %v2790_v48 = vpop.xlane.xlu1 %2789  ;;  %v2929_v55 = vmul.f32 %v4360_v30, %v5511_v53 }
 0x3fb   : > { %4373 = vrcp.f32 %v2790_v48  ;;  %v2787_v52 = vpop.xlane.xlu0 %2786  ;;  %v6194_v48 = vld [vmem:[#allocation74_spill] sm:$0xff] }
 0x3fc   : > { %v4362_v17 = vpop.eup %4361  ;;  %4375 = vrcp.f32 %v2787_v52  ;;  %3103 = vrot.lane.b32.xlu1 %v2930_v26, %s4405_s27  ;;  %3101 = vrot.lane.b32.xlu0 %v2929_v55, %s4405_s27  ;;  %v6195_v52 = vld [vmem:[#allocation5_spill] sm:$0xff] }
 0x3fd   : > { %v4364_v41 = vpop.eup %4363  ;;  %v2932_v25 = vmul.f32 %v4362_v17, %v5524_v62 }
 0x3fe   : > { %v2796_v28 = vpop.xlane.xlu1 %2795  ;;  %v2931_v22 = vmul.f32 %v4364_v41, %v6182_v0 }
 0x3ff   : > { %4377 = vrcp.f32 %v2796_v28  ;;  %v2793_v58 = vpop.xlane.xlu0 %2792  ;;  %v6196_v28 = vld [vmem:[#allocation76_spill] sm:$0xff] }
 0x400   : > { %v4366_v60 = vpop.eup %4365  ;;  %4379 = vrcp.f32 %v2793_v58  ;;  %3107 = vrot.lane.b32.xlu1 %v2932_v25, %s4405_s27  ;;  %3105 = vrot.lane.b32.xlu0 %v2931_v22, %s4405_s27 }
 0x401   : > { %v4368_v53 = vpop.eup %4367  ;;  %v2934_v12 = vmul.f32 %v4366_v60, %v6183_v7 }
 0x402   : > { %v2802_v18 = vpop.xlane.xlu1 %2801  ;;  %v2933_v63 = vmul.f32 %v4368_v53, %v6184_v49  ;;  %v6197_v53 = vld [vmem:[#allocation7_spill] sm:$0xff] }
 0x403   : > { %4381 = vrcp.f32 %v2802_v18  ;;  %v2799_v56 = vpop.xlane.xlu0 %2798 }
 0x404   : > { %v4370_v62 = vpop.eup %4369  ;;  %4383 = vrcp.f32 %v2799_v56  ;;  %3111 = vrot.lane.b32.xlu1 %v2934_v12, %s4405_s27  ;;  %3109 = vrot.lane.b32.xlu0 %v2933_v63, %s4405_s27  ;;  %v6198_v12 = vld [vmem:[#allocation6_spill] sm:$0xff] }
 0x405   : > { %v4372_v46 = vpop.eup %4371  ;;  %v2936_v37 = vmul.f32 %v4370_v62, %v5544_v43  ;;  %v6200_v62 = vld [vmem:[#allocation8_spill] sm:$0xff] }
 0x406   : > { %v2808_v33 = vpop.xlane.xlu1 %2807  ;;  %v2935_v4 = vmul.f32 %v4372_v46, %v6185_v1  ;;  %v6201_v1 = vld [vmem:[#allocation11_spill] sm:$0xff] }
 0x407   : > { %4385 = vrcp.f32 %v2808_v33  ;;  %v2805_v61 = vpop.xlane.xlu0 %2804 }
 0x408   : > { %v4374_v57 = vpop.eup %4373  ;;  %4387 = vrcp.f32 %v2805_v61  ;;  %3115 = vrot.lane.b32.xlu1 %v2936_v37, %s4405_s27  ;;  %3113 = vrot.lane.b32.xlu0 %v2935_v4, %s4405_s27  ;;  %v6202_v61 = vld [vmem:[#allocation10_spill] sm:$0xff] }
 0x409   : > { %v4376_v45 = vpop.eup %4375  ;;  %v2938_v6 = vmul.f32 %v4374_v57, %v5554_v39 }
 0x40a   : > { %v2814_v15 = vpop.xlane.xlu1 %2813  ;;  %v2937_v47 = vmul.f32 %v4376_v45, %v5551_v9 }
 0x40b   : > { %4389 = vrcp.f32 %v2814_v15  ;;  %v2811_v29 = vpop.xlane.xlu0 %2810  ;;  %v6203_v15 = vld [vmem:[#allocation13_spill] sm:$0xff] }
 0x40c   : > { %v4378_v43 = vpop.eup %4377  ;;  %4391 = vrcp.f32 %v2811_v29  ;;  %3119 = vrot.lane.b32.xlu1 %v2938_v6, %s4405_s27  ;;  %3117 = vrot.lane.b32.xlu0 %v2937_v47, %s4405_s27  ;;  %v6204_v29 = vld [vmem:[#allocation12_spill] sm:$0xff] }
 0x40d   : > { %v4380_v3 = vpop.eup %4379  ;;  %v2940_v54 = vmul.f32 %v4378_v43, %v5564_v34  ;;  %v6186_v34 = vld [vmem:[#allocation71_spill] sm:$0xff] }
 0x40e   : > { %v2820_v19 = vpop.xlane.xlu1 %2819  ;;  %v2939_v14 = vmul.f32 %v4380_v3, %v5561_v24 }
 0x40f   : > { %4393 = vrcp.f32 %v2820_v19  ;;  %v2817_v39 = vpop.xlane.xlu0 %2816  ;;  %v6205_v19 = vld [vmem:[#allocation15_spill] sm:$0xff] }
 0x410   : > { %v4382_v5 = vpop.eup %4381  ;;  %4395 = vrcp.f32 %v2817_v39  ;;  %3123 = vrot.lane.b32.xlu1 %v2940_v54, %s4405_s27  ;;  %3121 = vrot.lane.b32.xlu0 %v2939_v14, %s4405_s27  ;;  %v6206_v39 = vld [vmem:[#allocation14_spill] sm:$0xff] }
 0x411   : > { %v4384_v9 = vpop.eup %4383  ;;  %v2942_v10 = vmul.f32 %v4382_v5, %v6186_v34 }
 0x412   : > { %v3016_v24 = vpop.permute.xlu1 %3015  ;;  %v2941_v2 = vmul.f32 %v4384_v9, %v6187_v16  ;;  %v6208_v16 = vld [vmem:[#allocation16_spill] sm:$0xff] }
 0x413   : > { %v3206_v51 = vsel %vm2244_vm2, %v6188_v35, %v3016_v24 }
 0x414   : > { %v4386_v27 = vpop.eup %4385  ;;  %3271 = vst.msk [vmem:[%s5719_s8 + $0x8] sm:$0xff] %vm3269_vm3, %v3206_v51  ;;  %3127 = vrot.lane.b32.xlu1 %v2942_v10, %s4405_s27  ;;  %3125 = vrot.lane.b32.xlu0 %v2941_v2, %s4405_s27  ;;  %v6207_v10 = vld [vmem:[#allocation17_spill] sm:$0xff] }
 0x415   : > { %v4388_v36 = vpop.eup %4387  ;;  %v2944_v11 = vmul.f32 %v4386_v27, %v6189_v32  ;;  %v6209_v27 = vld [vmem:[#allocation19_spill] sm:$0xff]  ;;  %v6210_v32 = vld [vmem:[#allocation18_spill] sm:$0xff] }
 0x416   : > { %v3014_v13 = vpop.permute.xlu0 %3013  ;;  %v3020_v38 = vpop.permute.xlu1 %3019  ;;  %v2943_v50 = vmul.f32 %v4388_v36, %v6190_v40  ;;  %v6211_v40 = vld [vmem:[#allocation21_spill] sm:$0xff] }
 0x417   : > { %v3205_v23 = vsel %vm2244_vm2, %v6191_v31, %v3014_v13  ;;  %v3208_v44 = vsel %vm2244_vm2, %v6192_v59, %v3020_v38  ;;  %v6212_v31 = vld [vmem:[#allocation20_spill] sm:$0xff] }
 0x418   : > { %v4390_v20 = vpop.eup %4389  ;;  %3270 = vst.msk [vmem:[%s5719_s8] sm:$0xff] %vm3269_vm3, %v3205_v23  ;;  %3273 = vst.msk [vmem:[%s5719_s8 + $0x18] sm:$0xff] %vm3269_vm3, %v3208_v44  ;;  %3131 = vrot.lane.b32.xlu1 %v2944_v11, %s4405_s27  ;;  %3129 = vrot.lane.b32.xlu0 %v2943_v50, %s4405_s27 }
 0x419   : > { %v4392_v8 = vpop.eup %4391  ;;  %v2946_v30 = vmul.f32 %v4390_v20, %v6193_v42  ;;  %v6213_v20 = vld [vmem:[#allocation23_spill] sm:$0xff]  ;;  %v6214_v42 = vld [vmem:[#allocation22_spill] sm:$0xff] }
 0x41a   : > { %v3018_v26 = vpop.permute.xlu1 %3017  ;;  %v2945_v55 = vmul.f32 %v4392_v8, %v6194_v48 }
 0x41b   : > { %v3207_v17 = vsel %vm2244_vm2, %v6195_v52, %v3018_v26 }
 0x41c   : > { %v4394_v41 = vpop.eup %4393  ;;  %3272 = vst.msk [vmem:[%s5719_s8 + $0x10] sm:$0xff] %vm3269_vm3, %v3207_v17  ;;  %3135 = vrot.lane.b32.xlu1 %v2946_v30, %s4405_s27  ;;  %3133 = vrot.lane.b32.xlu0 %v2945_v55, %s4405_s27  ;;  %v6215_v55 = vld [vmem:[#allocation25_spill] sm:$0xff]  ;;  %v6216_v17 = vld [vmem:[#allocation24_spill] sm:$0xff] }
 0x41d   : > { %v4396_v25 = vpop.eup %4395  ;;  %v2948_v0 = vmul.f32 %v4394_v41, %v6196_v28 }
 0x41e   : > { %v3022_v22 = vpop.permute.xlu0 %3021  ;;  %v3024_v58 = vpop.permute.xlu1 %3023  ;;  %v2947_v60 = vmul.f32 %v4396_v25, %v5594_v21  ;;  %v6199_v21 = vld [vmem:[#allocation9_spill] sm:$0xff] }
 0x41f   : > { %v3209_v7 = vsel %vm2244_vm2, %v6197_v53, %v3022_v22  ;;  %v3210_v18 = vsel %vm2244_vm2, %v6198_v12, %v3024_v58  ;;  %v6218_v58 = vld [vmem:[#allocation26_spill] sm:$0xff]  ;;  %v6219_v12 = vld [vmem:[#allocation29_spill] sm:$0xff] }
 0x420   : > { %3274 = vst.msk [vmem:[%s5719_s8 + $0x20] sm:$0xff] %vm3269_vm3, %v3209_v7  ;;  %3275 = vst.msk [vmem:[%s5719_s8 + $0x28] sm:$0xff] %vm3269_vm3, %v3210_v18  ;;  %3139 = vrot.lane.b32.xlu1 %v2948_v0, %s4405_s27  ;;  %3137 = vrot.lane.b32.xlu0 %v2947_v60, %s4405_s27  ;;  %v6217_v0 = vld [vmem:[#allocation27_spill] sm:$0xff] }
 0x422   : > { %v3026_v49 = vpop.permute.xlu0 %3025  ;;  %v3028_v63 = vpop.permute.xlu1 %3027 }
 0x423   : > { %v3211_v56 = vsel %vm2244_vm2, %v6199_v21, %v3026_v49  ;;  %v3212_v46 = vsel %vm2244_vm2, %v6200_v62, %v3028_v63  ;;  %v6220_v49 = vld [vmem:[#allocation28_spill] sm:$0xff]  ;;  %v6221_v62 = vld [vmem:[#allocation31_spill] sm:$0xff] }
 0x424   : > { %3276 = vst.msk [vmem:[%s5719_s8 + $0x30] sm:$0xff] %vm3269_vm3, %v3211_v56  ;;  %3277 = vst.msk [vmem:[%s5719_s8 + $0x38] sm:$0xff] %vm3269_vm3, %v3212_v46 }
 0x426   : > { %v3030_v37 = vpop.permute.xlu0 %3029  ;;  %v3032_v33 = vpop.permute.xlu1 %3031 }
 0x427   : > { %v3213_v4 = vsel %vm2244_vm2, %v6201_v1, %v3030_v37  ;;  %v3214_v57 = vsel %vm2244_vm2, %v6202_v61, %v3032_v33  ;;  %v6222_v37 = vld [vmem:[#allocation30_spill] sm:$0xff]  ;;  %v6223_v61 = vld [vmem:[#allocation33_spill] sm:$0xff] }
 0x428   : > { %3278 = vst.msk [vmem:[%s5719_s8 + $0x40] sm:$0xff] %vm3269_vm3, %v3213_v4  ;;  %3279 = vst.msk [vmem:[%s5719_s8 + $0x48] sm:$0xff] %vm3269_vm3, %v3214_v57 }
 0x42a   : > { %v3034_v45 = vpop.permute.xlu0 %3033  ;;  %v3036_v6 = vpop.permute.xlu1 %3035 }
 0x42b   : > { %v3215_v47 = vsel %vm2244_vm2, %v6203_v15, %v3034_v45  ;;  %v3216_v43 = vsel %vm2244_vm2, %v6204_v29, %v3036_v6  ;;  %v6224_v45 = vld [vmem:[#allocation32_spill] sm:$0xff]  ;;  %v6225_v29 = vld [vmem:[#allocation35_spill] sm:$0xff] }
 0x42c   : > { %3280 = vst.msk [vmem:[%s5719_s8 + $0x50] sm:$0xff] %vm3269_vm3, %v3215_v47  ;;  %3281 = vst.msk [vmem:[%s5719_s8 + $0x58] sm:$0xff] %vm3269_vm3, %v3216_v43 }
 0x42e   : > { %v3038_v3 = vpop.permute.xlu0 %3037  ;;  %v3040_v54 = vpop.permute.xlu1 %3039 }
 0x42f   : > { %v3217_v14 = vsel %vm2244_vm2, %v6205_v19, %v3038_v3  ;;  %v3218_v5 = vsel %vm2244_vm2, %v6206_v39, %v3040_v54  ;;  %v6226_v3 = vld [vmem:[#allocation34_spill] sm:$0xff]  ;;  %v6227_v39 = vld [vmem:[#allocation37_spill] sm:$0xff] }
 0x430   : > { %3282 = vst.msk [vmem:[%s5719_s8 + $0x60] sm:$0xff] %vm3269_vm3, %v3217_v14  ;;  %3283 = vst.msk [vmem:[%s5719_s8 + $0x68] sm:$0xff] %vm3269_vm3, %v3218_v5 }
 0x432   : > { %v3042_v9 = vpop.permute.xlu0 %3041  ;;  %v3044_v34 = vpop.permute.xlu1 %3043 }
 0x433   : > { %v3219_v24 = vsel %vm2244_vm2, %v6207_v10, %v3042_v9  ;;  %v3220_v2 = vsel %vm2244_vm2, %v6208_v16, %v3044_v34  ;;  %v6228_v9 = vld [vmem:[#allocation36_spill] sm:$0xff]  ;;  %v6229_v16 = vld [vmem:[#allocation39_spill] sm:$0xff] }
 0x434   : > { %3284 = vst.msk [vmem:[%s5719_s8 + $0x70] sm:$0xff] %vm3269_vm3, %v3219_v24  ;;  %3285 = vst.msk [vmem:[%s5719_s8 + $0x78] sm:$0xff] %vm3269_vm3, %v3220_v2 }
 0x436   : > { %v3046_v35 = vpop.permute.xlu0 %3045  ;;  %v3048_v51 = vpop.permute.xlu1 %3047 }
 0x437   : > { %v3221_v36 = vsel %vm2244_vm2, %v6209_v27, %v3046_v35  ;;  %v3222_v11 = vsel %vm2244_vm2, %v6210_v32, %v3048_v51  ;;  %v6230_v35 = vld [vmem:[#allocation38_spill] sm:$0xff]  ;;  %v6231_v32 = vld [vmem:[#allocation41_spill] sm:$0xff] }
 0x438   : > { %3286 = vst.msk [vmem:[%s5719_s8 + $0x80] sm:$0xff] %vm3269_vm3, %v3221_v36  ;;  %3287 = vst.msk [vmem:[%s5719_s8 + $0x88] sm:$0xff] %vm3269_vm3, %v3222_v11 }
 0x43a   : > { %v3050_v13 = vpop.permute.xlu0 %3049  ;;  %v3052_v38 = vpop.permute.xlu1 %3051 }
 0x43b   : > { %v3223_v50 = vsel %vm2244_vm2, %v6211_v40, %v3050_v13  ;;  %v3224_v23 = vsel %vm2244_vm2, %v6212_v31, %v3052_v38  ;;  %v6232_v13 = vld [vmem:[#allocation40_spill] sm:$0xff]  ;;  %v6233_v31 = vld [vmem:[#allocation43_spill] sm:$0xff] }
 0x43c   : > { %3288 = vst.msk [vmem:[%s5719_s8 + $0x90] sm:$0xff] %vm3269_vm3, %v3223_v50  ;;  %3289 = vst.msk [vmem:[%s5719_s8 + $0x98] sm:$0xff] %vm3269_vm3, %v3224_v23 }
 0x43e   : > { %v3054_v59 = vpop.permute.xlu0 %3053  ;;  %v3056_v44 = vpop.permute.xlu1 %3055 }
 0x43f   : > { %v3225_v8 = vsel %vm2244_vm2, %v6213_v20, %v3054_v59  ;;  %v3226_v30 = vsel %vm2244_vm2, %v6214_v42, %v3056_v44  ;;  %v6234_v59 = vld [vmem:[#allocation42_spill] sm:$0xff]  ;;  %v6235_v42 = vld [vmem:[#allocation45_spill] sm:$0xff] }
 0x440   : > { %3290 = vst.msk [vmem:[%s5719_s8 + $0xa0] sm:$0xff] %vm3269_vm3, %v3225_v8  ;;  %3291 = vst.msk [vmem:[%s5719_s8 + $0xa8] sm:$0xff] %vm3269_vm3, %v3226_v30 }
 0x442   : > { %v3058_v26 = vpop.permute.xlu0 %3057  ;;  %v3060_v48 = vpop.permute.xlu1 %3059 }
 0x443   : > { %v3227_v52 = vsel %vm2244_vm2, %v6215_v55, %v3058_v26  ;;  %v3228_v41 = vsel %vm2244_vm2, %v6216_v17, %v3060_v48  ;;  %v6236_v26 = vld [vmem:[#allocation44_spill] sm:$0xff]  ;;  %v6237_v17 = vld [vmem:[#allocation47_spill] sm:$0xff] }
 0x444   : > { %3292 = vst.msk [vmem:[%s5719_s8 + $0xb0] sm:$0xff] %vm3269_vm3, %v3227_v52  ;;  %3293 = vst.msk [vmem:[%s5719_s8 + $0xb8] sm:$0xff] %vm3269_vm3, %v3228_v41 }
 0x446   : > { %v3062_v25 = vpop.permute.xlu0 %3061  ;;  %v3064_v28 = vpop.permute.xlu1 %3063 }
 0x447   : > { %v3229_v22 = vsel %vm2244_vm2, %v6217_v0, %v3062_v25  ;;  %v3230_v60 = vsel %vm2244_vm2, %v6218_v58, %v3064_v28  ;;  %v6238_v25 = vld [vmem:[#allocation46_spill] sm:$0xff]  ;;  %v6239_v58 = vld [vmem:[#allocation49_spill] sm:$0xff] }
 0x448   : > { %3294 = vst.msk [vmem:[%s5719_s8 + $0xc0] sm:$0xff] %vm3269_vm3, %v3229_v22  ;;  %3295 = vst.msk [vmem:[%s5719_s8 + $0xc8] sm:$0xff] %vm3269_vm3, %v3230_v60 }
 0x44a   : > { %v3066_v53 = vpop.permute.xlu0 %3065  ;;  %v3068_v7 = vpop.permute.xlu1 %3067 }
 0x44b   : > { %v3231_v18 = vsel %vm2244_vm2, %v6219_v12, %v3066_v53  ;;  %v3232_v63 = vsel %vm2244_vm2, %v6220_v49, %v3068_v7  ;;  %v6240_v53 = vld [vmem:[#allocation48_spill] sm:$0xff]  ;;  %v6241_v49 = vld [vmem:[#allocation51_spill] sm:$0xff] }
 0x44c   : > { %3296 = vst.msk [vmem:[%s5719_s8 + $0xd0] sm:$0xff] %vm3269_vm3, %v3231_v18  ;;  %3297 = vst.msk [vmem:[%s5719_s8 + $0xd8] sm:$0xff] %vm3269_vm3, %v3232_v63 }
 0x44e   : > { %v3070_v21 = vpop.permute.xlu0 %3069  ;;  %v3072_v56 = vpop.permute.xlu1 %3071 }
 0x44f   : > { %v3233_v46 = vsel %vm2244_vm2, %v6221_v62, %v3070_v21  ;;  %v3234_v33 = vsel %vm2244_vm2, %v6222_v37, %v3072_v56  ;;  %v6242_v21 = vld [vmem:[#allocation50_spill] sm:$0xff]  ;;  %v6243_v37 = vld [vmem:[#allocation53_spill] sm:$0xff] }
 0x450   : > { %3298 = vst.msk [vmem:[%s5719_s8 + $0xe0] sm:$0xff] %vm3269_vm3, %v3233_v46  ;;  %3299 = vst.msk [vmem:[%s5719_s8 + $0xe8] sm:$0xff] %vm3269_vm3, %v3234_v33 }
 0x452   : > { %v3074_v1 = vpop.permute.xlu0 %3073  ;;  %v3076_v4 = vpop.permute.xlu1 %3075 }
 0x453   : > { %v3235_v57 = vsel %vm2244_vm2, %v6223_v61, %v3074_v1  ;;  %v3236_v6 = vsel %vm2244_vm2, %v6224_v45, %v3076_v4  ;;  %v6244_v1 = vld [vmem:[#allocation52_spill] sm:$0xff]  ;;  %v6245_v45 = vld [vmem:[#allocation55_spill] sm:$0xff] }
 0x454   : > { %3300 = vst.msk [vmem:[%s5719_s8 + $0xf0] sm:$0xff] %vm3269_vm3, %v3235_v57  ;;  %3301 = vst.msk [vmem:[%s5719_s8 + $0xf8] sm:$0xff] %vm3269_vm3, %v3236_v6 }
 0x456   : > { %v3078_v15 = vpop.permute.xlu0 %3077  ;;  %v3080_v47 = vpop.permute.xlu1 %3079 }
 0x457   : > { %v3237_v43 = vsel %vm2244_vm2, %v6225_v29, %v3078_v15  ;;  %v3238_v54 = vsel %vm2244_vm2, %v6226_v3, %v3080_v47  ;;  %v6246_v15 = vld [vmem:[#allocation54_spill] sm:$0xff]  ;;  %v6247_v3 = vld [vmem:[#allocation57_spill] sm:$0xff] }
 0x458   : > { %3302 = vst.msk [vmem:[%s5719_s8 + $0x100] sm:$0xff] %vm3269_vm3, %v3237_v43  ;;  %3303 = vst.msk [vmem:[%s5719_s8 + $0x108] sm:$0xff] %vm3269_vm3, %v3238_v54 }
 0x45a   : > { %v3082_v19 = vpop.permute.xlu0 %3081  ;;  %v3084_v14 = vpop.permute.xlu1 %3083 }
 0x45b   : > { %v3239_v5 = vsel %vm2244_vm2, %v6227_v39, %v3082_v19  ;;  %v3240_v34 = vsel %vm2244_vm2, %v6228_v9, %v3084_v14  ;;  %v6248_v19 = vld [vmem:[#allocation56_spill] sm:$0xff]  ;;  %v6249_v9 = vld [vmem:[#allocation59_spill] sm:$0xff] }
 0x45c   : > { %3304 = vst.msk [vmem:[%s5719_s8 + $0x110] sm:$0xff] %vm3269_vm3, %v3239_v5  ;;  %3305 = vst.msk [vmem:[%s5719_s8 + $0x118] sm:$0xff] %vm3269_vm3, %v3240_v34 }
 0x45e   : > { %v3086_v10 = vpop.permute.xlu0 %3085  ;;  %v3088_v24 = vpop.permute.xlu1 %3087 }
 0x45f   : > { %v3241_v2 = vsel %vm2244_vm2, %v6229_v16, %v3086_v10  ;;  %v3242_v51 = vsel %vm2244_vm2, %v6230_v35, %v3088_v24  ;;  %v6250_v10 = vld [vmem:[#allocation58_spill] sm:$0xff]  ;;  %v6251_v35 = vld [vmem:[#allocation61_spill] sm:$0xff] }
 0x460   : > { %3306 = vst.msk [vmem:[%s5719_s8 + $0x120] sm:$0xff] %vm3269_vm3, %v3241_v2  ;;  %3307 = vst.msk [vmem:[%s5719_s8 + $0x128] sm:$0xff] %vm3269_vm3, %v3242_v51 }
 0x462   : > { %v3090_v27 = vpop.permute.xlu0 %3089  ;;  %v3092_v36 = vpop.permute.xlu1 %3091 }
 0x463   : > { %v3243_v11 = vsel %vm2244_vm2, %v6231_v32, %v3090_v27  ;;  %v3244_v38 = vsel %vm2244_vm2, %v6232_v13, %v3092_v36  ;;  %v6252_v27 = vld [vmem:[#allocation60_spill] sm:$0xff]  ;;  %v6253_v13 = vld [vmem:[#allocation63_spill] sm:$0xff] }
 0x464   : > { %3308 = vst.msk [vmem:[%s5719_s8 + $0x130] sm:$0xff] %vm3269_vm3, %v3243_v11  ;;  %3309 = vst.msk [vmem:[%s5719_s8 + $0x138] sm:$0xff] %vm3269_vm3, %v3244_v38 }
 0x466   : > { %v3094_v40 = vpop.permute.xlu0 %3093  ;;  %v3096_v50 = vpop.permute.xlu1 %3095 }
 0x467   : > { %v3245_v23 = vsel %vm2244_vm2, %v6233_v31, %v3094_v40  ;;  %v3246_v44 = vsel %vm2244_vm2, %v6234_v59, %v3096_v50  ;;  %v6254_v40 = vld [vmem:[#allocation62_spill] sm:$0xff]  ;;  %v6255_v59 = vld [vmem:[#allocation65_spill] sm:$0xff] }
 0x468   : > { %3310 = vst.msk [vmem:[%s5719_s8 + $0x140] sm:$0xff] %vm3269_vm3, %v3245_v23  ;;  %3311 = vst.msk [vmem:[%s5719_s8 + $0x148] sm:$0xff] %vm3269_vm3, %v3246_v44 }
 0x46a   : > { %v3098_v20 = vpop.permute.xlu0 %3097  ;;  %v3100_v8 = vpop.permute.xlu1 %3099 }
 0x46b   : > { %v3247_v30 = vsel %vm2244_vm2, %v6235_v42, %v3098_v20  ;;  %v3248_v48 = vsel %vm2244_vm2, %v6236_v26, %v3100_v8  ;;  %v6256_v20 = vld [vmem:[#allocation64_spill] sm:$0xff] }
 0x46c   : > { %3312 = vst.msk [vmem:[%s5719_s8 + $0x150] sm:$0xff] %vm3269_vm3, %v3247_v30  ;;  %3313 = vst.msk [vmem:[%s5719_s8 + $0x158] sm:$0xff] %vm3269_vm3, %v3248_v48 }
 0x46e   : > { %v3102_v55 = vpop.permute.xlu0 %3101  ;;  %v3104_v52 = vpop.permute.xlu1 %3103 }
 0x46f   : > { %v3249_v41 = vsel %vm2244_vm2, %v6237_v17, %v3102_v55  ;;  %v3250_v28 = vsel %vm2244_vm2, %v6238_v25, %v3104_v52 }
 0x470   : > { %3314 = vst.msk [vmem:[%s5719_s8 + $0x160] sm:$0xff] %vm3269_vm3, %v3249_v41  ;;  %3315 = vst.msk [vmem:[%s5719_s8 + $0x168] sm:$0xff] %vm3269_vm3, %v3250_v28 }
 0x472   : > { %v3106_v0 = vpop.permute.xlu0 %3105  ;;  %v3108_v22 = vpop.permute.xlu1 %3107 }
 0x473   : > { %v3251_v60 = vsel %vm2244_vm2, %v6239_v58, %v3106_v0  ;;  %v3252_v7 = vsel %vm2244_vm2, %v6240_v53, %v3108_v22 }
 0x474   : > { %3316 = vst.msk [vmem:[%s5719_s8 + $0x170] sm:$0xff] %vm3269_vm3, %v3251_v60  ;;  %3317 = vst.msk [vmem:[%s5719_s8 + $0x178] sm:$0xff] %vm3269_vm3, %v3252_v7 }
 0x476   : > { %v3110_v12 = vpop.permute.xlu0 %3109  ;;  %v3112_v18 = vpop.permute.xlu1 %3111 }
 0x477   : > { %v3253_v63 = vsel %vm2244_vm2, %v6241_v49, %v3110_v12  ;;  %v3254_v56 = vsel %vm2244_vm2, %v6242_v21, %v3112_v18 }
 0x478   : > { %3318 = vst.msk [vmem:[%s5719_s8 + $0x180] sm:$0xff] %vm3269_vm3, %v3253_v63  ;;  %3319 = vst.msk [vmem:[%s5719_s8 + $0x188] sm:$0xff] %vm3269_vm3, %v3254_v56 }
 0x47a   : > { %v3114_v62 = vpop.permute.xlu0 %3113  ;;  %v3116_v46 = vpop.permute.xlu1 %3115 }
 0x47b   : > { %v3255_v33 = vsel %vm2244_vm2, %v6243_v37, %v3114_v62  ;;  %v3256_v4 = vsel %vm2244_vm2, %v6244_v1, %v3116_v46 }
 0x47c   : > { %3320 = vst.msk [vmem:[%s5719_s8 + $0x190] sm:$0xff] %vm3269_vm3, %v3255_v33  ;;  %3321 = vst.msk [vmem:[%s5719_s8 + $0x198] sm:$0xff] %vm3269_vm3, %v3256_v4 }
 0x47e   : > { %v3118_v61 = vpop.permute.xlu0 %3117  ;;  %v3120_v57 = vpop.permute.xlu1 %3119 }
 0x47f   : > { %v3257_v6 = vsel %vm2244_vm2, %v6245_v45, %v3118_v61  ;;  %v3258_v47 = vsel %vm2244_vm2, %v6246_v15, %v3120_v57 }
 0x480   : > { %3322 = vst.msk [vmem:[%s5719_s8 + $0x1a0] sm:$0xff] %vm3269_vm3, %v3257_v6  ;;  %3323 = vst.msk [vmem:[%s5719_s8 + $0x1a8] sm:$0xff] %vm3269_vm3, %v3258_v47 }
 0x482   : > { %v3122_v29 = vpop.permute.xlu0 %3121  ;;  %v3124_v43 = vpop.permute.xlu1 %3123 }
 0x483   : > { %v3259_v54 = vsel %vm2244_vm2, %v6247_v3, %v3122_v29  ;;  %v3260_v14 = vsel %vm2244_vm2, %v6248_v19, %v3124_v43 }
 0x484   : > { %3324 = vst.msk [vmem:[%s5719_s8 + $0x1b0] sm:$0xff] %vm3269_vm3, %v3259_v54  ;;  %3325 = vst.msk [vmem:[%s5719_s8 + $0x1b8] sm:$0xff] %vm3269_vm3, %v3260_v14 }
 0x486   : > { %v3126_v39 = vpop.permute.xlu0 %3125  ;;  %v3128_v5 = vpop.permute.xlu1 %3127 }
 0x487   : > { %v3261_v34 = vsel %vm2244_vm2, %v6249_v9, %v3126_v39  ;;  %v3262_v24 = vsel %vm2244_vm2, %v6250_v10, %v3128_v5 }
 0x488   : > { %3326 = vst.msk [vmem:[%s5719_s8 + $0x1c0] sm:$0xff] %vm3269_vm3, %v3261_v34  ;;  %3327 = vst.msk [vmem:[%s5719_s8 + $0x1c8] sm:$0xff] %vm3269_vm3, %v3262_v24 }
 0x48a   : > { %v3130_v16 = vpop.permute.xlu0 %3129  ;;  %v3132_v2 = vpop.permute.xlu1 %3131 }
 0x48b   : > { %v3263_v51 = vsel %vm2244_vm2, %v6251_v35, %v3130_v16  ;;  %v3264_v36 = vsel %vm2244_vm2, %v6252_v27, %v3132_v2 }
 0x48c   : > { %3328 = vst.msk [vmem:[%s5719_s8 + $0x1d0] sm:$0xff] %vm3269_vm3, %v3263_v51  ;;  %3329 = vst.msk [vmem:[%s5719_s8 + $0x1d8] sm:$0xff] %vm3269_vm3, %v3264_v36 }
 0x48e   : > { %v3134_v32 = vpop.permute.xlu0 %3133  ;;  %v3136_v11 = vpop.permute.xlu1 %3135 }
 0x48f   : > { %v3265_v38 = vsel %vm2244_vm2, %v6253_v13, %v3134_v32  ;;  %v3266_v50 = vsel %vm2244_vm2, %v6254_v40, %v3136_v11 }
 0x490   : > { %3330 = vst.msk [vmem:[%s5719_s8 + $0x1e0] sm:$0xff] %vm3269_vm3, %v3265_v38  ;;  %3331 = vst.msk [vmem:[%s5719_s8 + $0x1e8] sm:$0xff] %vm3269_vm3, %v3266_v50 }
 0x492   : > { %v3138_v31 = vpop.permute.xlu0 %3137  ;;  %v3140_v23 = vpop.permute.xlu1 %3139 }
 0x493   : > { %v3267_v44 = vsel %vm2244_vm2, %v6255_v59, %v3138_v31  ;;  %v3268_v8 = vsel %vm2244_vm2, %v6256_v20, %v3140_v23 }
 0x494   : > { %3332 = vst.msk [vmem:[%s5719_s8 + $0x1f0] sm:$0xff] %vm3269_vm3, %v3267_v44  ;;  %3333 = vst.msk [vmem:[%s5719_s8 + $0x1f8] sm:$0xff] %vm3269_vm3, %v3268_v8 }
 0x495 PF: > { %s17_s24 = sadd.s32 1, %s4403_s24  }
 0x496   : > { %p14_p4 = scmp.ge.s32.totalorder %s17_s24, 4  }
 0x498   :  { %16 = sbr.rel (!%p14_p4) target bundleno = 1 (0x1), region = 78 }

</bundles_post_ra>
